<compile_context>
chip_gen: v5e
topology: v5e:2x2
jax: 0.10.0
libtpu: 0.0.40
codegen_flags: <defaults>
</compile_context>

<pallas_src>
import math
import functools

import jax
import jax.numpy as jnp
from jax.experimental import pallas as pl
from jax.experimental.pallas import tpu as pltpu

TIMBRE_EMB_DIM = 32      # D
NUM_HEADS = 8            # AttSubBlock(timbre_emb_dim, 8)
NUM_LAYERS = 2
LN_EPS = 1e-5


def _timbre_transformer_kernel(x_ref, te_ref, mask_ref,
                               wqkv_ref, bqkv_ref, wo_ref, bo_ref,
                               g_ref, beta_ref,
                               o_ref,
                               *, num_heads, num_blocks):
    """Runs all `num_blocks` AttSubBlocks (self/cross alternating) for one batch element."""
    x = x_ref[0].astype(jnp.float32)      # (T, D) — stays resident across all blocks
    te = te_ref[0].astype(jnp.float32)    # (S, D)
    mask = mask_ref[...]                  # (H, 1, D) one-hot head mask over feature columns

    d = x.shape[-1]
    dh = d // num_heads
    scale = 1.0 / math.sqrt(dh)

    def att_sub_block(q, kv, blk, is_self):
        # --- fused QKV projection: one matmul per distinct input ---
        wqkv = wqkv_ref[blk]              # (D, 3D)
        bqkv = bqkv_ref[blk]              # (1, 3D)
        qkv_q = jnp.dot(q, wqkv, preferred_element_type=jnp.float32) + bqkv
        qkv_kv = qkv_q if is_self else (
            jnp.dot(kv, wqkv, preferred_element_type=jnp.float32) + bqkv)
        Q = qkv_q[:, 0:d]                 # (T, D)
        K = qkv_kv[:, d:2 * d]            # (S, D)
        V = qkv_kv[:, 2 * d:3 * d]        # (S, D)

        # --- all heads at once via head-masked batched matmuls ---
        # mask[h] zeroes feature columns outside head h, so a full-D contraction
        # equals the per-head dh-wide contraction (no reshape/transpose/slices).
        Qb = jnp.broadcast_to(Q[None], (num_heads,) + Q.shape)   # (H, T, D)
        Km = K[None] * mask                                      # (H, S, D)
        Vm = V[None] * mask                                      # (H, S, D)

        s = jnp.einsum("htd,hsd->hts", Qb, Km,
                       preferred_element_type=jnp.float32) * scale   # (H, T, S)
        s = s - jnp.max(s, axis=-1, keepdims=True)
        p = jnp.exp(s)
        # NOTE: pl.reciprocal(denom, approx=True) would push this divide to the
        # otherwise-idle EUP slot; kept exact to stay bit-close to the f32 reference.
        p = p / jnp.sum(p, axis=-1, keepdims=True)

        att = jnp.einsum("hts,hsd->htd", p, Vm,
                         preferred_element_type=jnp.float32)          # (H, T, D)
        # Each head's output occupies only its own (masked) columns, so summing
        # over the head axis is exactly the concat of per-head outputs.
        att = jnp.sum(att, axis=0)                                    # (T, D)

        # --- output projection + residual + LayerNorm ---
        out = jnp.dot(att, wo_ref[blk], preferred_element_type=jnp.float32) + bo_ref[blk]
        y = out + q
        mean = jnp.mean(y, axis=-1, keepdims=True)
        var = jnp.mean(jnp.square(y - mean), axis=-1, keepdims=True)
        yn = (y - mean) * jax.lax.rsqrt(var + LN_EPS)
        return yn * g_ref[blk] + beta_ref[blk]

    # Static loop over the 2*layers blocks: (self-att, cross-att) per layer.
    for layer in range(num_blocks // 2):
        x = att_sub_block(x, x, 2 * layer, True)
        x = att_sub_block(x, te, 2 * layer + 1, False)

    # TODO(synk): if the deployed T grows to hundreds of frames, tile T and
    # present a lane-dense (>=128 wide) output slab instead of this 32-wide store.
    o_ref[0] = x.astype(o_ref.dtype)


def _stack_block_params(all_params):
    """Stack per-block params into (NB, ...) arrays, with fused QKV weights/biases."""
    blocks = []
    for lp in all_params:
        blocks.append(lp["self_att"])
        blocks.append(lp["cross_att"])
    wqkv = jnp.stack([jnp.concatenate([b["wq"], b["wk"], b["wv"]], axis=1) for b in blocks])
    bqkv = jnp.stack([jnp.concatenate([b["bq"], b["bk"], b["bv"]], axis=1) for b in blocks])
    wo = jnp.stack([b["wo"] for b in blocks])
    bo = jnp.stack([b["bo"] for b in blocks])
    gamma = jnp.stack([b["gamma"] for b in blocks])
    beta = jnp.stack([b["beta"] for b in blocks])
    return wqkv, bqkv, wo, bo, gamma, beta


def timbre_transformer(x, timbre_emb, all_params):
    """Full TimbreTransformer forward in a single pallas_call.

    x: (B, T, D), timbre_emb: (B, S, D)  ->  (B, T, D)
    """
    B, T, D = x.shape
    _, S, _ = timbre_emb.shape
    H = NUM_HEADS
    assert D % H == 0
    dh = D // H
    NB = 2 * len(all_params)

    wqkv, bqkv, wo, bo, gamma, beta = _stack_block_params(all_params)
    head_mask = (jnp.arange(D)[None, :] // dh
                 == jnp.arange(H)[:, None]).astype(jnp.float32)[:, None, :]   # (H, 1, D)

    kernel = functools.partial(_timbre_transformer_kernel,
                               num_heads=H, num_blocks=NB)

    def const(shape):
        return pl.BlockSpec(shape, lambda b: (0,) * len(shape))

    return pl.pallas_call(
        kernel,
        out_shape=jax.ShapeDtypeStruct((B, T, D), x.dtype),
        grid=(B,),                                        # parallel over batch (-> 2 TCs on v7x)
        in_specs=[
            pl.BlockSpec((1, T, D), lambda b: (b, 0, 0)),  # x
            pl.BlockSpec((1, S, D), lambda b: (b, 0, 0)),  # timbre_emb
            const((H, 1, D)),                              # head column mask
            const((NB, D, 3 * D)),                         # fused QKV weights, all blocks
            const((NB, 1, 3 * D)),                         # fused QKV biases
            const((NB, D, D)),                             # output proj weights
            const((NB, 1, D)),                             # output proj biases
            const((NB, 1, D)),                             # LN gamma
            const((NB, 1, D)),                             # LN beta
        ],
        out_specs=pl.BlockSpec((1, T, D), lambda b: (b, 0, 0)),
        compiler_params=pltpu.CompilerParams(
            dimension_semantics=("parallel",)),
    )(x, timbre_emb, head_mask, wqkv, bqkv, wo, bo, gamma, beta)


# ----------------------- reference (pure JAX) -----------------------------

def _att_sub_block_ref(q, kv, p):
    B, T, D = q.shape
    dh = D // NUM_HEADS
    Q = q @ p["wq"] + p["bq"]
    K = kv @ p["wk"] + p["bk"]
    V = kv @ p["wv"] + p["bv"]
    Q = Q.reshape(B, T, NUM_HEADS, dh).transpose(0, 2, 1, 3)
    K = K.reshape(B, -1, NUM_HEADS, dh).transpose(0, 2, 1, 3)
    V = V.reshape(B, -1, NUM_HEADS, dh).transpose(0, 2, 1, 3)
    s = jnp.einsum("bhtd,bhsd->bhts", Q, K) / math.sqrt(dh)
    p_att = jax.nn.softmax(s, axis=-1)
    o = jnp.einsum("bhts,bhsd->bhtd", p_att, V)
    o = o.transpose(0, 2, 1, 3).reshape(B, T, D)
    o = o @ p["wo"] + p["bo"]
    x = o + q
    mean = jnp.mean(x, axis=-1, keepdims=True)
    var = jnp.mean((x - mean) ** 2, axis=-1, keepdims=True)
    xn = (x - mean) * jax.lax.rsqrt(var + LN_EPS)
    return xn * p["gamma"] + p["beta"]


def timbre_transformer_ref(x, timbre_emb, all_params):
    for lp in all_params:
        x = _att_sub_block_ref(x, x, lp["self_att"])
        x = _att_sub_block_ref(x, timbre_emb, lp["cross_att"])
    return x


# ----------------------------- param init ---------------------------------

def init_block_params(key, dim):
    ks = jax.random.split(key, 8)
    scale = 1.0 / math.sqrt(dim)
    return {
        "wq": jax.random.normal(ks[0], (dim, dim), jnp.float32) * scale,
        "wk": jax.random.normal(ks[1], (dim, dim), jnp.float32) * scale,
        "wv": jax.random.normal(ks[2], (dim, dim), jnp.float32) * scale,
        "wo": jax.random.normal(ks[3], (dim, dim), jnp.float32) * scale,
        "bq": jax.random.normal(ks[4], (1, dim), jnp.float32) * 0.01,
        "bk": jax.random.normal(ks[5], (1, dim), jnp.float32) * 0.01,
        "bv": jax.random.normal(ks[6], (1, dim), jnp.float32) * 0.01,
        "bo": jax.random.normal(ks[7], (1, dim), jnp.float32) * 0.01,
        "gamma": jnp.ones((1, dim), jnp.float32),
        "beta": jnp.zeros((1, dim), jnp.float32),
    }


def init_params(key, dim, layers):
    params = []
    for _ in range(layers):
        key, k_self, k_cross = jax.random.split(key, 3)
        params.append({
            "self_att": init_block_params(k_self, dim),
            "cross_att": init_block_params(k_cross, dim),
        })
    return params


if __name__ == "__main__":
    key = jax.random.PRNGKey(0)
    k_x, k_t, k_p = jax.random.split(key, 3)

    B, T, S, D = 2, 8, 4, TIMBRE_EMB_DIM
    x = jax.random.normal(k_x, (B, T, D), jnp.float32)
    timbre_emb = jax.random.normal(k_t, (B, S, D), jnp.float32)
    params = init_params(k_p, D, NUM_LAYERS)

    out = timbre_transformer(x, timbre_emb, params)
    out = jax.block_until_ready(out)

    ref = timbre_transformer_ref(x, timbre_emb, params)
    assert out.shape == (B, T, D)
    assert jnp.allclose(out, ref, atol=2e-4, rtol=2e-4), "mismatch vs JAX reference"

    print("KERNEL_OK")
</pallas_src>

<mosaic_0001>
module attributes {stable_mosaic.version = 11 : i64} {
  func.func @_timbre_transformer_kernel(%arg0: i32, %arg1: memref<1x8x32xf32, #tpu.memory_space<vmem>>, %arg2: memref<1x4x32xf32, #tpu.memory_space<vmem>>, %arg3: memref<8x1x32xf32, #tpu.memory_space<vmem>>, %arg4: memref<4x32x96xf32, #tpu.memory_space<vmem>>, %arg5: memref<4x1x96xf32, #tpu.memory_space<vmem>>, %arg6: memref<4x32x32xf32, #tpu.memory_space<vmem>>, %arg7: memref<4x1x32xf32, #tpu.memory_space<vmem>>, %arg8: memref<4x1x32xf32, #tpu.memory_space<vmem>>, %arg9: memref<4x1x32xf32, #tpu.memory_space<vmem>>, %arg10: memref<1x8x32xf32, #tpu.memory_space<vmem>>) attributes {dimension_semantics = [#tpu.dimension_semantics<parallel>], iteration_bounds = array<i64: 2>, scalar_prefetch = 0 : i64, scratch_operands = 0 : i64, tpu.core_type = #tpu.core_type<tc>, window_params = [{transform_indices = @transform_0, window_bounds = array<i64: 1, 8, 32>}, {transform_indices = @transform_1, window_bounds = array<i64: 1, 4, 32>}, {pipeline_mode = #tpu.pipeline_mode<synchronous>, transform_indices = @transform_2, window_bounds = array<i64: 8, 1, 32>}, {pipeline_mode = #tpu.pipeline_mode<synchronous>, transform_indices = @transform_3, window_bounds = array<i64: 4, 32, 96>}, {pipeline_mode = #tpu.pipeline_mode<synchronous>, transform_indices = @transform_4, window_bounds = array<i64: 4, 1, 96>}, {pipeline_mode = #tpu.pipeline_mode<synchronous>, transform_indices = @transform_5, window_bounds = array<i64: 4, 32, 32>}, {pipeline_mode = #tpu.pipeline_mode<synchronous>, transform_indices = @transform_6, window_bounds = array<i64: 4, 1, 32>}, {pipeline_mode = #tpu.pipeline_mode<synchronous>, transform_indices = @transform_7, window_bounds = array<i64: 4, 1, 32>}, {pipeline_mode = #tpu.pipeline_mode<synchronous>, transform_indices = @transform_8, window_bounds = array<i64: 4, 1, 32>}, {transform_indices = @transform_9, window_bounds = array<i64: 1, 8, 32>}]} {
    %c0 = arith.constant 0 : index
    %c0_0 = arith.constant 0 : index
    %c0_1 = arith.constant 0 : index
    %0 = vector.load %arg1[%c0, %c0_0, %c0_1] : memref<1x8x32xf32, #tpu.memory_space<vmem>>, vector<1x8x32xf32>
    %1 = vector.shape_cast %0 : vector<1x8x32xf32> to vector<8x32xf32>
    %c0_2 = arith.constant 0 : index
    %c0_3 = arith.constant 0 : index
    %c0_4 = arith.constant 0 : index
    %2 = vector.load %arg2[%c0_2, %c0_3, %c0_4] : memref<1x4x32xf32, #tpu.memory_space<vmem>>, vector<1x4x32xf32>
    %3 = vector.shape_cast %2 : vector<1x4x32xf32> to vector<4x32xf32>
    %c0_5 = arith.constant 0 : index
    %c0_6 = arith.constant 0 : index
    %c0_7 = arith.constant 0 : index
    %4 = vector.load %arg3[%c0_5, %c0_6, %c0_7] : memref<8x1x32xf32, #tpu.memory_space<vmem>>, vector<8x1x32xf32>
    %c0_8 = arith.constant 0 : index
    %c0_9 = arith.constant 0 : index
    %c0_10 = arith.constant 0 : index
    %5 = vector.load %arg4[%c0_8, %c0_9, %c0_10] : memref<4x32x96xf32, #tpu.memory_space<vmem>>, vector<1x32x96xf32>
    %6 = vector.shape_cast %5 : vector<1x32x96xf32> to vector<32x96xf32>
    %c0_11 = arith.constant 0 : index
    %c0_12 = arith.constant 0 : index
    %c0_13 = arith.constant 0 : index
    %7 = vector.load %arg5[%c0_11, %c0_12, %c0_13] : memref<4x1x96xf32, #tpu.memory_space<vmem>>, vector<1x1x96xf32>
    %8 = vector.shape_cast %7 : vector<1x1x96xf32> to vector<1x96xf32>
    %cst = arith.constant dense<0.000000e+00> : vector<8x96xf32>
    %9 = tpu.matmul %1, %6, %cst {dimension_numbers = #tpu.dot_dimension_numbers<[1], [0], [0], [1], [0, 0, 1, 1], [], []>} : vector<8x32xf32>, vector<32x96xf32>, vector<8x96xf32> -> vector<8x96xf32>
    %10 = vector.broadcast %8 : vector<1x96xf32> to vector<8x96xf32>
    %11 = arith.addf %9, %10 : vector<8x96xf32>
    %12 = vector.extract_strided_slice %11 {offsets = [0, 0], sizes = [8, 32], strides = [1, 1]} : vector<8x96xf32> to vector<8x32xf32>
    %13 = vector.extract_strided_slice %11 {offsets = [0, 32], sizes = [8, 32], strides = [1, 1]} : vector<8x96xf32> to vector<8x32xf32>
    %14 = vector.extract_strided_slice %11 {offsets = [0, 64], sizes = [8, 32], strides = [1, 1]} : vector<8x96xf32> to vector<8x32xf32>
    %15 = vector.shape_cast %12 : vector<8x32xf32> to vector<1x8x32xf32>
    %16 = vector.shape_cast %15 : vector<1x8x32xf32> to vector<1x8x32xf32>
    %17 = vector.broadcast %16 : vector<1x8x32xf32> to vector<8x8x32xf32>
    %18 = vector.shape_cast %13 : vector<8x32xf32> to vector<1x8x32xf32>
    %19 = vector.broadcast %18 : vector<1x8x32xf32> to vector<8x8x32xf32>
    %20 = vector.broadcast %4 : vector<8x1x32xf32> to vector<8x8x32xf32>
    %21 = arith.mulf %19, %20 : vector<8x8x32xf32>
    %22 = vector.shape_cast %14 : vector<8x32xf32> to vector<1x8x32xf32>
    %23 = vector.broadcast %22 : vector<1x8x32xf32> to vector<8x8x32xf32>
    %24 = vector.broadcast %4 : vector<8x1x32xf32> to vector<8x8x32xf32>
    %25 = arith.mulf %23, %24 : vector<8x8x32xf32>
    "tpu.trace_start"() <{level = 10 : i32, message = "htd,hsd->hts"}> : () -> ()
    %cst_14 = arith.constant dense<0.000000e+00> : vector<8x8x8xf32>
    %26 = tpu.matmul %17, %21, %cst_14 {dimension_numbers = #tpu.dot_dimension_numbers<[2], [2], [1], [1], [0, 0, 0, 1, 1, 1], [0], [0]>} : vector<8x8x32xf32>, vector<8x8x32xf32>, vector<8x8x8xf32> -> vector<8x8x8xf32>
    "tpu.trace_stop"() : () -> ()
    %cst_15 = arith.constant 5.000000e-01 : f32
    %27 = vector.broadcast %cst_15 : f32 to vector<8x8x8xf32>
    %28 = arith.mulf %26, %27 : vector<8x8x8xf32>
    %cst_16 = arith.constant dense<0xFF800000> : vector<8x8xf32>
    %29 = vector.multi_reduction <maximumf>, %28, %cst_16 [2] : vector<8x8x8xf32> to vector<8x8xf32>
    %30 = vector.shape_cast %29 : vector<8x8xf32> to vector<8x8x1xf32>
    %31 = vector.broadcast %30 : vector<8x8x1xf32> to vector<8x8x8xf32>
    %32 = arith.subf %28, %31 : vector<8x8x8xf32>
    %33 = math.exp %32 : vector<8x8x8xf32>
    %cst_17 = arith.constant dense<0.000000e+00> : vector<8x8xf32>
    %34 = vector.multi_reduction <add>, %33, %cst_17 [2] : vector<8x8x8xf32> to vector<8x8xf32>
    %35 = vector.shape_cast %34 : vector<8x8xf32> to vector<8x8x1xf32>
    %36 = vector.broadcast %35 : vector<8x8x1xf32> to vector<8x8x8xf32>
    %37 = arith.divf %33, %36 : vector<8x8x8xf32>
    "tpu.trace_start"() <{level = 10 : i32, message = "hts,hsd->htd"}> : () -> ()
    %cst_18 = arith.constant dense<0.000000e+00> : vector<8x8x32xf32>
    %38 = tpu.matmul %37, %25, %cst_18 {dimension_numbers = #tpu.dot_dimension_numbers<[2], [1], [1], [2], [0, 0, 0, 1, 1, 2], [0], [0]>} : vector<8x8x8xf32>, vector<8x8x32xf32>, vector<8x8x32xf32> -> vector<8x8x32xf32>
    "tpu.trace_stop"() : () -> ()
    %cst_19 = arith.constant dense<0.000000e+00> : vector<8x32xf32>
    %39 = vector.multi_reduction <add>, %38, %cst_19 [0] : vector<8x8x32xf32> to vector<8x32xf32>
    %c0_20 = arith.constant 0 : index
    %c0_21 = arith.constant 0 : index
    %c0_22 = arith.constant 0 : index
    %40 = vector.load %arg6[%c0_20, %c0_21, %c0_22] : memref<4x32x32xf32, #tpu.memory_space<vmem>>, vector<1x32x32xf32>
    %41 = vector.shape_cast %40 : vector<1x32x32xf32> to vector<32x32xf32>
    %cst_23 = arith.constant dense<0.000000e+00> : vector<8x32xf32>
    %42 = tpu.matmul %39, %41, %cst_23 {dimension_numbers = #tpu.dot_dimension_numbers<[1], [0], [0], [1], [0, 0, 1, 1], [], []>} : vector<8x32xf32>, vector<32x32xf32>, vector<8x32xf32> -> vector<8x32xf32>
    %c0_24 = arith.constant 0 : index
    %c0_25 = arith.constant 0 : index
    %c0_26 = arith.constant 0 : index
    %43 = vector.load %arg7[%c0_24, %c0_25, %c0_26] : memref<4x1x32xf32, #tpu.memory_space<vmem>>, vector<1x1x32xf32>
    %44 = vector.shape_cast %43 : vector<1x1x32xf32> to vector<1x32xf32>
    %45 = vector.broadcast %44 : vector<1x32xf32> to vector<8x32xf32>
    %46 = arith.addf %42, %45 : vector<8x32xf32>
    %47 = arith.addf %46, %1 : vector<8x32xf32>
    %cst_27 = arith.constant dense<0.000000e+00> : vector<8xf32>
    %48 = vector.multi_reduction <add>, %47, %cst_27 [1] : vector<8x32xf32> to vector<8xf32>
    %49 = vector.shape_cast %48 : vector<8xf32> to vector<8x1xf32>
    %cst_28 = arith.constant 3.200000e+01 : f32
    %50 = vector.broadcast %cst_28 : f32 to vector<8x1xf32>
    %51 = arith.divf %49, %50 : vector<8x1xf32>
    %52 = vector.broadcast %51 : vector<8x1xf32> to vector<8x32xf32>
    %53 = arith.subf %47, %52 : vector<8x32xf32>
    %54 = arith.mulf %53, %53 : vector<8x32xf32>
    %cst_29 = arith.constant dense<0.000000e+00> : vector<8xf32>
    %55 = vector.multi_reduction <add>, %54, %cst_29 [1] : vector<8x32xf32> to vector<8xf32>
    %56 = vector.shape_cast %55 : vector<8xf32> to vector<8x1xf32>
    %cst_30 = arith.constant 3.200000e+01 : f32
    %57 = vector.broadcast %cst_30 : f32 to vector<8x1xf32>
    %58 = arith.divf %56, %57 : vector<8x1xf32>
    %59 = vector.broadcast %51 : vector<8x1xf32> to vector<8x32xf32>
    %60 = arith.subf %47, %59 : vector<8x32xf32>
    %cst_31 = arith.constant 9.99999974E-6 : f32
    %61 = vector.broadcast %cst_31 : f32 to vector<8x1xf32>
    %62 = arith.addf %58, %61 : vector<8x1xf32>
    %63 = math.rsqrt %62 : vector<8x1xf32>
    %64 = vector.broadcast %63 : vector<8x1xf32> to vector<8x32xf32>
    %65 = arith.mulf %60, %64 : vector<8x32xf32>
    %c0_32 = arith.constant 0 : index
    %c0_33 = arith.constant 0 : index
    %c0_34 = arith.constant 0 : index
    %66 = vector.load %arg8[%c0_32, %c0_33, %c0_34] : memref<4x1x32xf32, #tpu.memory_space<vmem>>, vector<1x1x32xf32>
    %67 = vector.shape_cast %66 : vector<1x1x32xf32> to vector<1x32xf32>
    %68 = vector.broadcast %67 : vector<1x32xf32> to vector<8x32xf32>
    %69 = arith.mulf %65, %68 : vector<8x32xf32>
    %c0_35 = arith.constant 0 : index
    %c0_36 = arith.constant 0 : index
    %c0_37 = arith.constant 0 : index
    %70 = vector.load %arg9[%c0_35, %c0_36, %c0_37] : memref<4x1x32xf32, #tpu.memory_space<vmem>>, vector<1x1x32xf32>
    %71 = vector.shape_cast %70 : vector<1x1x32xf32> to vector<1x32xf32>
    %72 = vector.broadcast %71 : vector<1x32xf32> to vector<8x32xf32>
    %73 = arith.addf %69, %72 : vector<8x32xf32>
    %c1 = arith.constant 1 : index
    %c0_38 = arith.constant 0 : index
    %c0_39 = arith.constant 0 : index
    %74 = vector.load %arg4[%c1, %c0_38, %c0_39] : memref<4x32x96xf32, #tpu.memory_space<vmem>>, vector<1x32x96xf32>
    %75 = vector.shape_cast %74 : vector<1x32x96xf32> to vector<32x96xf32>
    %c1_40 = arith.constant 1 : index
    %c0_41 = arith.constant 0 : index
    %c0_42 = arith.constant 0 : index
    %76 = vector.load %arg5[%c1_40, %c0_41, %c0_42] : memref<4x1x96xf32, #tpu.memory_space<vmem>>, vector<1x1x96xf32>
    %77 = vector.shape_cast %76 : vector<1x1x96xf32> to vector<1x96xf32>
    %cst_43 = arith.constant dense<0.000000e+00> : vector<8x96xf32>
    %78 = tpu.matmul %73, %75, %cst_43 {dimension_numbers = #tpu.dot_dimension_numbers<[1], [0], [0], [1], [0, 0, 1, 1], [], []>} : vector<8x32xf32>, vector<32x96xf32>, vector<8x96xf32> -> vector<8x96xf32>
    %79 = vector.broadcast %77 : vector<1x96xf32> to vector<8x96xf32>
    %80 = arith.addf %78, %79 : vector<8x96xf32>
    %cst_44 = arith.constant dense<0.000000e+00> : vector<4x96xf32>
    %81 = tpu.matmul %3, %75, %cst_44 {dimension_numbers = #tpu.dot_dimension_numbers<[1], [0], [0], [1], [0, 0, 1, 1], [], []>} : vector<4x32xf32>, vector<32x96xf32>, vector<4x96xf32> -> vector<4x96xf32>
    %82 = vector.broadcast %77 : vector<1x96xf32> to vector<4x96xf32>
    %83 = arith.addf %81, %82 : vector<4x96xf32>
    %84 = vector.extract_strided_slice %80 {offsets = [0, 0], sizes = [8, 32], strides = [1, 1]} : vector<8x96xf32> to vector<8x32xf32>
    %85 = vector.extract_strided_slice %83 {offsets = [0, 32], sizes = [4, 32], strides = [1, 1]} : vector<4x96xf32> to vector<4x32xf32>
    %86 = vector.extract_strided_slice %83 {offsets = [0, 64], sizes = [4, 32], strides = [1, 1]} : vector<4x96xf32> to vector<4x32xf32>
    %87 = vector.shape_cast %84 : vector<8x32xf32> to vector<1x8x32xf32>
    %88 = vector.shape_cast %87 : vector<1x8x32xf32> to vector<1x8x32xf32>
    %89 = vector.broadcast %88 : vector<1x8x32xf32> to vector<8x8x32xf32>
    %90 = vector.shape_cast %85 : vector<4x32xf32> to vector<1x4x32xf32>
    %91 = vector.broadcast %90 : vector<1x4x32xf32> to vector<8x4x32xf32>
    %92 = vector.broadcast %4 : vector<8x1x32xf32> to vector<8x4x32xf32>
    %93 = arith.mulf %91, %92 : vector<8x4x32xf32>
    %94 = vector.shape_cast %86 : vector<4x32xf32> to vector<1x4x32xf32>
    %95 = vector.broadcast %94 : vector<1x4x32xf32> to vector<8x4x32xf32>
    %96 = vector.broadcast %4 : vector<8x1x32xf32> to vector<8x4x32xf32>
    %97 = arith.mulf %95, %96 : vector<8x4x32xf32>
    "tpu.trace_start"() <{level = 10 : i32, message = "htd,hsd->hts"}> : () -> ()
    %cst_45 = arith.constant dense<0.000000e+00> : vector<8x8x4xf32>
    %98 = tpu.matmul %89, %93, %cst_45 {dimension_numbers = #tpu.dot_dimension_numbers<[2], [2], [1], [1], [0, 0, 0, 1, 1, 1], [0], [0]>} : vector<8x8x32xf32>, vector<8x4x32xf32>, vector<8x8x4xf32> -> vector<8x8x4xf32>
    "tpu.trace_stop"() : () -> ()
    %cst_46 = arith.constant 5.000000e-01 : f32
    %99 = vector.broadcast %cst_46 : f32 to vector<8x8x4xf32>
    %100 = arith.mulf %98, %99 : vector<8x8x4xf32>
    %cst_47 = arith.constant dense<0xFF800000> : vector<8x8xf32>
    %101 = vector.multi_reduction <maximumf>, %100, %cst_47 [2] : vector<8x8x4xf32> to vector<8x8xf32>
    %102 = vector.shape_cast %101 : vector<8x8xf32> to vector<8x8x1xf32>
    %103 = vector.broadcast %102 : vector<8x8x1xf32> to vector<8x8x4xf32>
    %104 = arith.subf %100, %103 : vector<8x8x4xf32>
    %105 = math.exp %104 : vector<8x8x4xf32>
    %cst_48 = arith.constant dense<0.000000e+00> : vector<8x8xf32>
    %106 = vector.multi_reduction <add>, %105, %cst_48 [2] : vector<8x8x4xf32> to vector<8x8xf32>
    %107 = vector.shape_cast %106 : vector<8x8xf32> to vector<8x8x1xf32>
    %108 = vector.broadcast %107 : vector<8x8x1xf32> to vector<8x8x4xf32>
    %109 = arith.divf %105, %108 : vector<8x8x4xf32>
    "tpu.trace_start"() <{level = 10 : i32, message = "hts,hsd->htd"}> : () -> ()
    %cst_49 = arith.constant dense<0.000000e+00> : vector<8x8x32xf32>
    %110 = tpu.matmul %109, %97, %cst_49 {dimension_numbers = #tpu.dot_dimension_numbers<[2], [1], [1], [2], [0, 0, 0, 1, 1, 2], [0], [0]>} : vector<8x8x4xf32>, vector<8x4x32xf32>, vector<8x8x32xf32> -> vector<8x8x32xf32>
    "tpu.trace_stop"() : () -> ()
    %cst_50 = arith.constant dense<0.000000e+00> : vector<8x32xf32>
    %111 = vector.multi_reduction <add>, %110, %cst_50 [0] : vector<8x8x32xf32> to vector<8x32xf32>
    %c1_51 = arith.constant 1 : index
    %c0_52 = arith.constant 0 : index
    %c0_53 = arith.constant 0 : index
    %112 = vector.load %arg6[%c1_51, %c0_52, %c0_53] : memref<4x32x32xf32, #tpu.memory_space<vmem>>, vector<1x32x32xf32>
    %113 = vector.shape_cast %112 : vector<1x32x32xf32> to vector<32x32xf32>
    %cst_54 = arith.constant dense<0.000000e+00> : vector<8x32xf32>
    %114 = tpu.matmul %111, %113, %cst_54 {dimension_numbers = #tpu.dot_dimension_numbers<[1], [0], [0], [1], [0, 0, 1, 1], [], []>} : vector<8x32xf32>, vector<32x32xf32>, vector<8x32xf32> -> vector<8x32xf32>
    %c1_55 = arith.constant 1 : index
    %c0_56 = arith.constant 0 : index
    %c0_57 = arith.constant 0 : index
    %115 = vector.load %arg7[%c1_55, %c0_56, %c0_57] : memref<4x1x32xf32, #tpu.memory_space<vmem>>, vector<1x1x32xf32>
    %116 = vector.shape_cast %115 : vector<1x1x32xf32> to vector<1x32xf32>
    %117 = vector.broadcast %116 : vector<1x32xf32> to vector<8x32xf32>
    %118 = arith.addf %114, %117 : vector<8x32xf32>
    %119 = arith.addf %118, %73 : vector<8x32xf32>
    %cst_58 = arith.constant dense<0.000000e+00> : vector<8xf32>
    %120 = vector.multi_reduction <add>, %119, %cst_58 [1] : vector<8x32xf32> to vector<8xf32>
    %121 = vector.shape_cast %120 : vector<8xf32> to vector<8x1xf32>
    %cst_59 = arith.constant 3.200000e+01 : f32
    %122 = vector.broadcast %cst_59 : f32 to vector<8x1xf32>
    %123 = arith.divf %121, %122 : vector<8x1xf32>
    %124 = vector.broadcast %123 : vector<8x1xf32> to vector<8x32xf32>
    %125 = arith.subf %119, %124 : vector<8x32xf32>
    %126 = arith.mulf %125, %125 : vector<8x32xf32>
    %cst_60 = arith.constant dense<0.000000e+00> : vector<8xf32>
    %127 = vector.multi_reduction <add>, %126, %cst_60 [1] : vector<8x32xf32> to vector<8xf32>
    %128 = vector.shape_cast %127 : vector<8xf32> to vector<8x1xf32>
    %cst_61 = arith.constant 3.200000e+01 : f32
    %129 = vector.broadcast %cst_61 : f32 to vector<8x1xf32>
    %130 = arith.divf %128, %129 : vector<8x1xf32>
    %131 = vector.broadcast %123 : vector<8x1xf32> to vector<8x32xf32>
    %132 = arith.subf %119, %131 : vector<8x32xf32>
    %cst_62 = arith.constant 9.99999974E-6 : f32
    %133 = vector.broadcast %cst_62 : f32 to vector<8x1xf32>
    %134 = arith.addf %130, %133 : vector<8x1xf32>
    %135 = math.rsqrt %134 : vector<8x1xf32>
    %136 = vector.broadcast %135 : vector<8x1xf32> to vector<8x32xf32>
    %137 = arith.mulf %132, %136 : vector<8x32xf32>
    %c1_63 = arith.constant 1 : index
    %c0_64 = arith.constant 0 : index
    %c0_65 = arith.constant 0 : index
    %138 = vector.load %arg8[%c1_63, %c0_64, %c0_65] : memref<4x1x32xf32, #tpu.memory_space<vmem>>, vector<1x1x32xf32>
    %139 = vector.shape_cast %138 : vector<1x1x32xf32> to vector<1x32xf32>
    %140 = vector.broadcast %139 : vector<1x32xf32> to vector<8x32xf32>
    %141 = arith.mulf %137, %140 : vector<8x32xf32>
    %c1_66 = arith.constant 1 : index
    %c0_67 = arith.constant 0 : index
    %c0_68 = arith.constant 0 : index
    %142 = vector.load %arg9[%c1_66, %c0_67, %c0_68] : memref<4x1x32xf32, #tpu.memory_space<vmem>>, vector<1x1x32xf32>
    %143 = vector.shape_cast %142 : vector<1x1x32xf32> to vector<1x32xf32>
    %144 = vector.broadcast %143 : vector<1x32xf32> to vector<8x32xf32>
    %145 = arith.addf %141, %144 : vector<8x32xf32>
    %c2 = arith.constant 2 : index
    %c0_69 = arith.constant 0 : index
    %c0_70 = arith.constant 0 : index
    %146 = vector.load %arg4[%c2, %c0_69, %c0_70] : memref<4x32x96xf32, #tpu.memory_space<vmem>>, vector<1x32x96xf32>
    %147 = vector.shape_cast %146 : vector<1x32x96xf32> to vector<32x96xf32>
    %c2_71 = arith.constant 2 : index
    %c0_72 = arith.constant 0 : index
    %c0_73 = arith.constant 0 : index
    %148 = vector.load %arg5[%c2_71, %c0_72, %c0_73] : memref<4x1x96xf32, #tpu.memory_space<vmem>>, vector<1x1x96xf32>
    %149 = vector.shape_cast %148 : vector<1x1x96xf32> to vector<1x96xf32>
    %cst_74 = arith.constant dense<0.000000e+00> : vector<8x96xf32>
    %150 = tpu.matmul %145, %147, %cst_74 {dimension_numbers = #tpu.dot_dimension_numbers<[1], [0], [0], [1], [0, 0, 1, 1], [], []>} : vector<8x32xf32>, vector<32x96xf32>, vector<8x96xf32> -> vector<8x96xf32>
    %151 = vector.broadcast %149 : vector<1x96xf32> to vector<8x96xf32>
    %152 = arith.addf %150, %151 : vector<8x96xf32>
    %153 = vector.extract_strided_slice %152 {offsets = [0, 0], sizes = [8, 32], strides = [1, 1]} : vector<8x96xf32> to vector<8x32xf32>
    %154 = vector.extract_strided_slice %152 {offsets = [0, 32], sizes = [8, 32], strides = [1, 1]} : vector<8x96xf32> to vector<8x32xf32>
    %155 = vector.extract_strided_slice %152 {offsets = [0, 64], sizes = [8, 32], strides = [1, 1]} : vector<8x96xf32> to vector<8x32xf32>
    %156 = vector.shape_cast %153 : vector<8x32xf32> to vector<1x8x32xf32>
    %157 = vector.shape_cast %156 : vector<1x8x32xf32> to vector<1x8x32xf32>
    %158 = vector.broadcast %157 : vector<1x8x32xf32> to vector<8x8x32xf32>
    %159 = vector.shape_cast %154 : vector<8x32xf32> to vector<1x8x32xf32>
    %160 = vector.broadcast %159 : vector<1x8x32xf32> to vector<8x8x32xf32>
    %161 = vector.broadcast %4 : vector<8x1x32xf32> to vector<8x8x32xf32>
    %162 = arith.mulf %160, %161 : vector<8x8x32xf32>
    %163 = vector.shape_cast %155 : vector<8x32xf32> to vector<1x8x32xf32>
    %164 = vector.broadcast %163 : vector<1x8x32xf32> to vector<8x8x32xf32>
    %165 = vector.broadcast %4 : vector<8x1x32xf32> to vector<8x8x32xf32>
    %166 = arith.mulf %164, %165 : vector<8x8x32xf32>
    "tpu.trace_start"() <{level = 10 : i32, message = "htd,hsd->hts"}> : () -> ()
    %cst_75 = arith.constant dense<0.000000e+00> : vector<8x8x8xf32>
    %167 = tpu.matmul %158, %162, %cst_75 {dimension_numbers = #tpu.dot_dimension_numbers<[2], [2], [1], [1], [0, 0, 0, 1, 1, 1], [0], [0]>} : vector<8x8x32xf32>, vector<8x8x32xf32>, vector<8x8x8xf32> -> vector<8x8x8xf32>
    "tpu.trace_stop"() : () -> ()
    %cst_76 = arith.constant 5.000000e-01 : f32
    %168 = vector.broadcast %cst_76 : f32 to vector<8x8x8xf32>
    %169 = arith.mulf %167, %168 : vector<8x8x8xf32>
    %cst_77 = arith.constant dense<0xFF800000> : vector<8x8xf32>
    %170 = vector.multi_reduction <maximumf>, %169, %cst_77 [2] : vector<8x8x8xf32> to vector<8x8xf32>
    %171 = vector.shape_cast %170 : vector<8x8xf32> to vector<8x8x1xf32>
    %172 = vector.broadcast %171 : vector<8x8x1xf32> to vector<8x8x8xf32>
    %173 = arith.subf %169, %172 : vector<8x8x8xf32>
    %174 = math.exp %173 : vector<8x8x8xf32>
    %cst_78 = arith.constant dense<0.000000e+00> : vector<8x8xf32>
    %175 = vector.multi_reduction <add>, %174, %cst_78 [2] : vector<8x8x8xf32> to vector<8x8xf32>
    %176 = vector.shape_cast %175 : vector<8x8xf32> to vector<8x8x1xf32>
    %177 = vector.broadcast %176 : vector<8x8x1xf32> to vector<8x8x8xf32>
    %178 = arith.divf %174, %177 : vector<8x8x8xf32>
    "tpu.trace_start"() <{level = 10 : i32, message = "hts,hsd->htd"}> : () -> ()
    %cst_79 = arith.constant dense<0.000000e+00> : vector<8x8x32xf32>
    %179 = tpu.matmul %178, %166, %cst_79 {dimension_numbers = #tpu.dot_dimension_numbers<[2], [1], [1], [2], [0, 0, 0, 1, 1, 2], [0], [0]>} : vector<8x8x8xf32>, vector<8x8x32xf32>, vector<8x8x32xf32> -> vector<8x8x32xf32>
    "tpu.trace_stop"() : () -> ()
    %cst_80 = arith.constant dense<0.000000e+00> : vector<8x32xf32>
    %180 = vector.multi_reduction <add>, %179, %cst_80 [0] : vector<8x8x32xf32> to vector<8x32xf32>
    %c2_81 = arith.constant 2 : index
    %c0_82 = arith.constant 0 : index
    %c0_83 = arith.constant 0 : index
    %181 = vector.load %arg6[%c2_81, %c0_82, %c0_83] : memref<4x32x32xf32, #tpu.memory_space<vmem>>, vector<1x32x32xf32>
    %182 = vector.shape_cast %181 : vector<1x32x32xf32> to vector<32x32xf32>
    %cst_84 = arith.constant dense<0.000000e+00> : vector<8x32xf32>
    %183 = tpu.matmul %180, %182, %cst_84 {dimension_numbers = #tpu.dot_dimension_numbers<[1], [0], [0], [1], [0, 0, 1, 1], [], []>} : vector<8x32xf32>, vector<32x32xf32>, vector<8x32xf32> -> vector<8x32xf32>
    %c2_85 = arith.constant 2 : index
    %c0_86 = arith.constant 0 : index
    %c0_87 = arith.constant 0 : index
    %184 = vector.load %arg7[%c2_85, %c0_86, %c0_87] : memref<4x1x32xf32, #tpu.memory_space<vmem>>, vector<1x1x32xf32>
    %185 = vector.shape_cast %184 : vector<1x1x32xf32> to vector<1x32xf32>
    %186 = vector.broadcast %185 : vector<1x32xf32> to vector<8x32xf32>
    %187 = arith.addf %183, %186 : vector<8x32xf32>
    %188 = arith.addf %187, %145 : vector<8x32xf32>
    %cst_88 = arith.constant dense<0.000000e+00> : vector<8xf32>
    %189 = vector.multi_reduction <add>, %188, %cst_88 [1] : vector<8x32xf32> to vector<8xf32>
    %190 = vector.shape_cast %189 : vector<8xf32> to vector<8x1xf32>
    %cst_89 = arith.constant 3.200000e+01 : f32
    %191 = vector.broadcast %cst_89 : f32 to vector<8x1xf32>
    %192 = arith.divf %190, %191 : vector<8x1xf32>
    %193 = vector.broadcast %192 : vector<8x1xf32> to vector<8x32xf32>
    %194 = arith.subf %188, %193 : vector<8x32xf32>
    %195 = arith.mulf %194, %194 : vector<8x32xf32>
    %cst_90 = arith.constant dense<0.000000e+00> : vector<8xf32>
    %196 = vector.multi_reduction <add>, %195, %cst_90 [1] : vector<8x32xf32> to vector<8xf32>
    %197 = vector.shape_cast %196 : vector<8xf32> to vector<8x1xf32>
    %cst_91 = arith.constant 3.200000e+01 : f32
    %198 = vector.broadcast %cst_91 : f32 to vector<8x1xf32>
    %199 = arith.divf %197, %198 : vector<8x1xf32>
    %200 = vector.broadcast %192 : vector<8x1xf32> to vector<8x32xf32>
    %201 = arith.subf %188, %200 : vector<8x32xf32>
    %cst_92 = arith.constant 9.99999974E-6 : f32
    %202 = vector.broadcast %cst_92 : f32 to vector<8x1xf32>
    %203 = arith.addf %199, %202 : vector<8x1xf32>
    %204 = math.rsqrt %203 : vector<8x1xf32>
    %205 = vector.broadcast %204 : vector<8x1xf32> to vector<8x32xf32>
    %206 = arith.mulf %201, %205 : vector<8x32xf32>
    %c2_93 = arith.constant 2 : index
    %c0_94 = arith.constant 0 : index
    %c0_95 = arith.constant 0 : index
    %207 = vector.load %arg8[%c2_93, %c0_94, %c0_95] : memref<4x1x32xf32, #tpu.memory_space<vmem>>, vector<1x1x32xf32>
    %208 = vector.shape_cast %207 : vector<1x1x32xf32> to vector<1x32xf32>
    %209 = vector.broadcast %208 : vector<1x32xf32> to vector<8x32xf32>
    %210 = arith.mulf %206, %209 : vector<8x32xf32>
    %c2_96 = arith.constant 2 : index
    %c0_97 = arith.constant 0 : index
    %c0_98 = arith.constant 0 : index
    %211 = vector.load %arg9[%c2_96, %c0_97, %c0_98] : memref<4x1x32xf32, #tpu.memory_space<vmem>>, vector<1x1x32xf32>
    %212 = vector.shape_cast %211 : vector<1x1x32xf32> to vector<1x32xf32>
    %213 = vector.broadcast %212 : vector<1x32xf32> to vector<8x32xf32>
    %214 = arith.addf %210, %213 : vector<8x32xf32>
    %c3 = arith.constant 3 : index
    %c0_99 = arith.constant 0 : index
    %c0_100 = arith.constant 0 : index
    %215 = vector.load %arg4[%c3, %c0_99, %c0_100] : memref<4x32x96xf32, #tpu.memory_space<vmem>>, vector<1x32x96xf32>
    %216 = vector.shape_cast %215 : vector<1x32x96xf32> to vector<32x96xf32>
    %c3_101 = arith.constant 3 : index
    %c0_102 = arith.constant 0 : index
    %c0_103 = arith.constant 0 : index
    %217 = vector.load %arg5[%c3_101, %c0_102, %c0_103] : memref<4x1x96xf32, #tpu.memory_space<vmem>>, vector<1x1x96xf32>
    %218 = vector.shape_cast %217 : vector<1x1x96xf32> to vector<1x96xf32>
    %cst_104 = arith.constant dense<0.000000e+00> : vector<8x96xf32>
    %219 = tpu.matmul %214, %216, %cst_104 {dimension_numbers = #tpu.dot_dimension_numbers<[1], [0], [0], [1], [0, 0, 1, 1], [], []>} : vector<8x32xf32>, vector<32x96xf32>, vector<8x96xf32> -> vector<8x96xf32>
    %220 = vector.broadcast %218 : vector<1x96xf32> to vector<8x96xf32>
    %221 = arith.addf %219, %220 : vector<8x96xf32>
    %cst_105 = arith.constant dense<0.000000e+00> : vector<4x96xf32>
    %222 = tpu.matmul %3, %216, %cst_105 {dimension_numbers = #tpu.dot_dimension_numbers<[1], [0], [0], [1], [0, 0, 1, 1], [], []>} : vector<4x32xf32>, vector<32x96xf32>, vector<4x96xf32> -> vector<4x96xf32>
    %223 = vector.broadcast %218 : vector<1x96xf32> to vector<4x96xf32>
    %224 = arith.addf %222, %223 : vector<4x96xf32>
    %225 = vector.extract_strided_slice %221 {offsets = [0, 0], sizes = [8, 32], strides = [1, 1]} : vector<8x96xf32> to vector<8x32xf32>
    %226 = vector.extract_strided_slice %224 {offsets = [0, 32], sizes = [4, 32], strides = [1, 1]} : vector<4x96xf32> to vector<4x32xf32>
    %227 = vector.extract_strided_slice %224 {offsets = [0, 64], sizes = [4, 32], strides = [1, 1]} : vector<4x96xf32> to vector<4x32xf32>
    %228 = vector.shape_cast %225 : vector<8x32xf32> to vector<1x8x32xf32>
    %229 = vector.shape_cast %228 : vector<1x8x32xf32> to vector<1x8x32xf32>
    %230 = vector.broadcast %229 : vector<1x8x32xf32> to vector<8x8x32xf32>
    %231 = vector.shape_cast %226 : vector<4x32xf32> to vector<1x4x32xf32>
    %232 = vector.broadcast %231 : vector<1x4x32xf32> to vector<8x4x32xf32>
    %233 = vector.broadcast %4 : vector<8x1x32xf32> to vector<8x4x32xf32>
    %234 = arith.mulf %232, %233 : vector<8x4x32xf32>
    %235 = vector.shape_cast %227 : vector<4x32xf32> to vector<1x4x32xf32>
    %236 = vector.broadcast %235 : vector<1x4x32xf32> to vector<8x4x32xf32>
    %237 = vector.broadcast %4 : vector<8x1x32xf32> to vector<8x4x32xf32>
    %238 = arith.mulf %236, %237 : vector<8x4x32xf32>
    "tpu.trace_start"() <{level = 10 : i32, message = "htd,hsd->hts"}> : () -> ()
    %cst_106 = arith.constant dense<0.000000e+00> : vector<8x8x4xf32>
    %239 = tpu.matmul %230, %234, %cst_106 {dimension_numbers = #tpu.dot_dimension_numbers<[2], [2], [1], [1], [0, 0, 0, 1, 1, 1], [0], [0]>} : vector<8x8x32xf32>, vector<8x4x32xf32>, vector<8x8x4xf32> -> vector<8x8x4xf32>
    "tpu.trace_stop"() : () -> ()
    %cst_107 = arith.constant 5.000000e-01 : f32
    %240 = vector.broadcast %cst_107 : f32 to vector<8x8x4xf32>
    %241 = arith.mulf %239, %240 : vector<8x8x4xf32>
    %cst_108 = arith.constant dense<0xFF800000> : vector<8x8xf32>
    %242 = vector.multi_reduction <maximumf>, %241, %cst_108 [2] : vector<8x8x4xf32> to vector<8x8xf32>
    %243 = vector.shape_cast %242 : vector<8x8xf32> to vector<8x8x1xf32>
    %244 = vector.broadcast %243 : vector<8x8x1xf32> to vector<8x8x4xf32>
    %245 = arith.subf %241, %244 : vector<8x8x4xf32>
    %246 = math.exp %245 : vector<8x8x4xf32>
    %cst_109 = arith.constant dense<0.000000e+00> : vector<8x8xf32>
    %247 = vector.multi_reduction <add>, %246, %cst_109 [2] : vector<8x8x4xf32> to vector<8x8xf32>
    %248 = vector.shape_cast %247 : vector<8x8xf32> to vector<8x8x1xf32>
    %249 = vector.broadcast %248 : vector<8x8x1xf32> to vector<8x8x4xf32>
    %250 = arith.divf %246, %249 : vector<8x8x4xf32>
    "tpu.trace_start"() <{level = 10 : i32, message = "hts,hsd->htd"}> : () -> ()
    %cst_110 = arith.constant dense<0.000000e+00> : vector<8x8x32xf32>
    %251 = tpu.matmul %250, %238, %cst_110 {dimension_numbers = #tpu.dot_dimension_numbers<[2], [1], [1], [2], [0, 0, 0, 1, 1, 2], [0], [0]>} : vector<8x8x4xf32>, vector<8x4x32xf32>, vector<8x8x32xf32> -> vector<8x8x32xf32>
    "tpu.trace_stop"() : () -> ()
    %cst_111 = arith.constant dense<0.000000e+00> : vector<8x32xf32>
    %252 = vector.multi_reduction <add>, %251, %cst_111 [0] : vector<8x8x32xf32> to vector<8x32xf32>
    %c3_112 = arith.constant 3 : index
    %c0_113 = arith.constant 0 : index
    %c0_114 = arith.constant 0 : index
    %253 = vector.load %arg6[%c3_112, %c0_113, %c0_114] : memref<4x32x32xf32, #tpu.memory_space<vmem>>, vector<1x32x32xf32>
    %254 = vector.shape_cast %253 : vector<1x32x32xf32> to vector<32x32xf32>
    %cst_115 = arith.constant dense<0.000000e+00> : vector<8x32xf32>
    %255 = tpu.matmul %252, %254, %cst_115 {dimension_numbers = #tpu.dot_dimension_numbers<[1], [0], [0], [1], [0, 0, 1, 1], [], []>} : vector<8x32xf32>, vector<32x32xf32>, vector<8x32xf32> -> vector<8x32xf32>
    %c3_116 = arith.constant 3 : index
    %c0_117 = arith.constant 0 : index
    %c0_118 = arith.constant 0 : index
    %256 = vector.load %arg7[%c3_116, %c0_117, %c0_118] : memref<4x1x32xf32, #tpu.memory_space<vmem>>, vector<1x1x32xf32>
    %257 = vector.shape_cast %256 : vector<1x1x32xf32> to vector<1x32xf32>
    %258 = vector.broadcast %257 : vector<1x32xf32> to vector<8x32xf32>
    %259 = arith.addf %255, %258 : vector<8x32xf32>
    %260 = arith.addf %259, %214 : vector<8x32xf32>
    %cst_119 = arith.constant dense<0.000000e+00> : vector<8xf32>
    %261 = vector.multi_reduction <add>, %260, %cst_119 [1] : vector<8x32xf32> to vector<8xf32>
    %262 = vector.shape_cast %261 : vector<8xf32> to vector<8x1xf32>
    %cst_120 = arith.constant 3.200000e+01 : f32
    %263 = vector.broadcast %cst_120 : f32 to vector<8x1xf32>
    %264 = arith.divf %262, %263 : vector<8x1xf32>
    %265 = vector.broadcast %264 : vector<8x1xf32> to vector<8x32xf32>
    %266 = arith.subf %260, %265 : vector<8x32xf32>
    %267 = arith.mulf %266, %266 : vector<8x32xf32>
    %cst_121 = arith.constant dense<0.000000e+00> : vector<8xf32>
    %268 = vector.multi_reduction <add>, %267, %cst_121 [1] : vector<8x32xf32> to vector<8xf32>
    %269 = vector.shape_cast %268 : vector<8xf32> to vector<8x1xf32>
    %cst_122 = arith.constant 3.200000e+01 : f32
    %270 = vector.broadcast %cst_122 : f32 to vector<8x1xf32>
    %271 = arith.divf %269, %270 : vector<8x1xf32>
    %272 = vector.broadcast %264 : vector<8x1xf32> to vector<8x32xf32>
    %273 = arith.subf %260, %272 : vector<8x32xf32>
    %cst_123 = arith.constant 9.99999974E-6 : f32
    %274 = vector.broadcast %cst_123 : f32 to vector<8x1xf32>
    %275 = arith.addf %271, %274 : vector<8x1xf32>
    %276 = math.rsqrt %275 : vector<8x1xf32>
    %277 = vector.broadcast %276 : vector<8x1xf32> to vector<8x32xf32>
    %278 = arith.mulf %273, %277 : vector<8x32xf32>
    %c3_124 = arith.constant 3 : index
    %c0_125 = arith.constant 0 : index
    %c0_126 = arith.constant 0 : index
    %279 = vector.load %arg8[%c3_124, %c0_125, %c0_126] : memref<4x1x32xf32, #tpu.memory_space<vmem>>, vector<1x1x32xf32>
    %280 = vector.shape_cast %279 : vector<1x1x32xf32> to vector<1x32xf32>
    %281 = vector.broadcast %280 : vector<1x32xf32> to vector<8x32xf32>
    %282 = arith.mulf %278, %281 : vector<8x32xf32>
    %c3_127 = arith.constant 3 : index
    %c0_128 = arith.constant 0 : index
    %c0_129 = arith.constant 0 : index
    %283 = vector.load %arg9[%c3_127, %c0_128, %c0_129] : memref<4x1x32xf32, #tpu.memory_space<vmem>>, vector<1x1x32xf32>
    %284 = vector.shape_cast %283 : vector<1x1x32xf32> to vector<1x32xf32>
    %285 = vector.broadcast %284 : vector<1x32xf32> to vector<8x32xf32>
    %286 = arith.addf %282, %285 : vector<8x32xf32>
    %c0_130 = arith.constant 0 : index
    %c0_131 = arith.constant 0 : index
    %c0_132 = arith.constant 0 : index
    %287 = vector.load %arg10[%c0_130, %c0_131, %c0_132] : memref<1x8x32xf32, #tpu.memory_space<vmem>>, vector<1x8x32xf32>
    %288 = vector.shape_cast %287 : vector<1x8x32xf32> to vector<8x32xf32>
    %289 = vector.shape_cast %286 : vector<8x32xf32> to vector<1x8x32xf32>
    tpu.vector_store %arg10[%c0_130, %c0_131, %c0_132], %289 {strides = array<i32>} : memref<1x8x32xf32, #tpu.memory_space<vmem>>, vector<1x8x32xf32>,
    return
  }
  func.func @transform_0(%arg0: i32) -> (i32, i32, i32) {
    %c0_i32 = arith.constant 0 : i32
    %c0_i32_0 = arith.constant 0 : i32
    %c0_i32_1 = arith.constant 0 : i32
    return %arg0, %c0_i32, %c0_i32_0 : i32, i32, i32
  }
  func.func @transform_1(%arg0: i32) -> (i32, i32, i32) {
    %c0_i32 = arith.constant 0 : i32
    %c0_i32_0 = arith.constant 0 : i32
    %c0_i32_1 = arith.constant 0 : i32
    return %arg0, %c0_i32, %c0_i32_0 : i32, i32, i32
  }
  func.func @transform_2(%arg0: i32) -> (i32, i32, i32) {
    %c0_i32 = arith.constant 0 : i32
    %c0_i32_0 = arith.constant 0 : i32
    %c0_i32_1 = arith.constant 0 : i32
    %c0_i32_2 = arith.constant 0 : i32
    return %c0_i32, %c0_i32_0, %c0_i32_1 : i32, i32, i32
  }
  func.func @transform_3(%arg0: i32) -> (i32, i32, i32) {
    %c0_i32 = arith.constant 0 : i32
    %c0_i32_0 = arith.constant 0 : i32
    %c0_i32_1 = arith.constant 0 : i32
    %c0_i32_2 = arith.constant 0 : i32
    return %c0_i32, %c0_i32_0, %c0_i32_1 : i32, i32, i32
  }
  func.func @transform_4(%arg0: i32) -> (i32, i32, i32) {
    %c0_i32 = arith.constant 0 : i32
    %c0_i32_0 = arith.constant 0 : i32
    %c0_i32_1 = arith.constant 0 : i32
    %c0_i32_2 = arith.constant 0 : i32
    return %c0_i32, %c0_i32_0, %c0_i32_1 : i32, i32, i32
  }
  func.func @transform_5(%arg0: i32) -> (i32, i32, i32) {
    %c0_i32 = arith.constant 0 : i32
    %c0_i32_0 = arith.constant 0 : i32
    %c0_i32_1 = arith.constant 0 : i32
    %c0_i32_2 = arith.constant 0 : i32
    return %c0_i32, %c0_i32_0, %c0_i32_1 : i32, i32, i32
  }
  func.func @transform_6(%arg0: i32) -> (i32, i32, i32) {
    %c0_i32 = arith.constant 0 : i32
    %c0_i32_0 = arith.constant 0 : i32
    %c0_i32_1 = arith.constant 0 : i32
    %c0_i32_2 = arith.constant 0 : i32
    return %c0_i32, %c0_i32_0, %c0_i32_1 : i32, i32, i32
  }
  func.func @transform_7(%arg0: i32) -> (i32, i32, i32) {
    %c0_i32 = arith.constant 0 : i32
    %c0_i32_0 = arith.constant 0 : i32
    %c0_i32_1 = arith.constant 0 : i32
    %c0_i32_2 = arith.constant 0 : i32
    return %c0_i32, %c0_i32_0, %c0_i32_1 : i32, i32, i32
  }
  func.func @transform_8(%arg0: i32) -> (i32, i32, i32) {
    %c0_i32 = arith.constant 0 : i32
    %c0_i32_0 = arith.constant 0 : i32
    %c0_i32_1 = arith.constant 0 : i32
    %c0_i32_2 = arith.constant 0 : i32
    return %c0_i32, %c0_i32_0, %c0_i32_1 : i32, i32, i32
  }
  func.func @transform_9(%arg0: i32) -> (i32, i32, i32) {
    %c0_i32 = arith.constant 0 : i32
    %c0_i32_0 = arith.constant 0 : i32
    %c0_i32_1 = arith.constant 0 : i32
    return %arg0, %c0_i32, %c0_i32_0 : i32, i32, i32
  }
}

</mosaic_0001>

<bundles_post_ra>
// kernel: tpu_custom_call.1
= control target key start
LH: loop header
LB: loop body
LE: loop exit
PB: predicated region body
PF: predicated region fallthrough
CT: control target
= control target key end

     0   :  { %s5903_s0 = inlined_call_operand.hbm [shape: f32[2,8,32], index: 0, kind: input, shape index: {}]   ;;  %s5904_s1 = inlined_call_operand.hbm [shape: f32[2,4,32], index: 1, kind: input, shape index: {}]   ;;  %s5905_s2 = inlined_call_operand.hbm [shape: f32[8,1,32], index: 2, kind: input, shape index: {}]   ;;  %s5906_s3 = inlined_call_operand.hbm [shape: f32[4,32,96], index: 3, kind: input, shape index: {}]   ;;  %s5907_s4 = inlined_call_operand.hbm [shape: f32[4,1,96], index: 4, kind: input, shape index: {}]   ;;  %s5908_s5 = inlined_call_operand.hbm [shape: f32[4,32,32], index: 5, kind: input, shape index: {}]   ;;  %s5909_s6 = inlined_call_operand.vmem [shape: f32[4,1,32], index: 6, kind: input, shape index: {}]   ;;  %s5910_s7 = inlined_call_operand.hbm [shape: f32[4,1,32], index: 7, kind: input, shape index: {}]   ;;  %s5911_s8 = inlined_call_operand.hbm [shape: f32[4,1,32], index: 8, kind: input, shape index: {}]   ;;  %s5912_s9 = inlined_call_operand.hbm [shape: f32[2,8,32], index: 9, kind: output, shape index: {}]  }
   0x1   :  { %5914 = sst [smem:[#allocation26_spill]] %s5905_s2 }
   0x2   :  { %5915 = sst [smem:[#allocation27_spill]] %s5906_s3 }
   0x3   :  { %5916 = sst [smem:[#allocation28_spill]] %s5907_s4 }
   0x4   :  { %5917 = sst [smem:[#allocation29_spill]] %s5908_s5 }
   0x5   :  { %5918 = sst [smem:[#allocation30_spill]] %s5910_s7 }
   0x6   :  { %5919 = sst [smem:[#allocation31_spill]] %s5911_s8 }
   0x7   :  { %14 = vsyncpa [#allocation3], 0 }
   0x8   :  { %16 = vsyncpa [#allocation3 + $0x1], 0 }
   0x9   :  { %17 = vsyncpa [#allocation6], 0 }
   0xa   :  { %19 = vsyncpa [#allocation6 + $0x1], 0 }
   0xb   :  { %20 = vsyncpa [#allocation9], 0 }
   0xc   :  { %21 = vsyncpa [#allocation12], 0 }
   0xd   :  { %22 = vsyncpa [#allocation15], 0 }
   0xe   :  { %23 = vsyncpa [#allocation4], 0 }
   0xf   :  { %25 = vsyncpa [#allocation4 + $0x1], 0  ;;  %s4664_s30 = smov 0   ;;  %s4666_s10 = smov 0  }
  0x10   :  { %s4668_s11 = smov 0   ;;  %s4670_s12 = smov 0  }
  0x11 LB: > { %5920 = sst [smem:[#allocation24_spill]] %s4594_s11  ;;  %s4688_s16 = sadd.s32 4294967295, %s4598_s12   ;;  %s4598_s12 = sphi %s4670_s12, %s5976_s12   ;;  %s4594_s11 = sphi %s4668_s11, %s5973_s11   ;;  %s4590_s10 = sphi %s4666_s10, %s5975_s10   ;;  %s4586_s30 = sphi %s4664_s30, %s5974_s30  }
  0x12   : > { %s5921_s2 = sld [smem:[#allocation26_spill]]  ;;  %p3798_p0 = scmp.ge.s32.totalorder %s4598_s12, 1 }
  0x13   : > { %p52_p1 = scmp.eq.s32.totalorder %s4688_s16, 0  ;;  %p261_p2 = scmp.lt.s32.totalorder %s4598_s12, 3 }
  0x14   : > { %s4600_s18 = smov [#allocation7]   ;;  %s5923_s3 = sld [smem:[#allocation27_spill]] }
  0x15   : > { %p4693_p3 = pnand %p3798_p0, %p261_p2  ;;  %s274_s19 = sshll.u32 %s4600_s18, 4  ;;  %s275_s19 = int_to_ptr.vmem [resolvable:$true] %s274_s19 }
  0x16   : > { %s4601_s24 = smov [#allocation8]   ;;  %s4602_s26 = smov 16  }
  0x17   : > { %p3979_p4 = pneg %p4693_p3  ;;  %s288_s25 = sshll.u32 %s4601_s24, 4  ;;  %s289_s25 = int_to_ptr.vmem [resolvable:$true] %s288_s25 }
  0x18   : > { %s272_s15 = sshll.u32 %s5921_s2, 4  ;;  %s4603_s27 = smov 1   ;;  %s273_s15 = int_to_ptr.hbm [resolvable:$true] %s272_s15 }
  0x19   : > { %p4705_p6 = pnand %p3979_p4, %p52_p1  ;;  %s4604_s28 = smov 128  }
  0x1a   : > { %s286_s22 = sshll.u32 %s5923_s3, 4  ;;  %s4605_s29 = smov 8   ;;  %s287_s22 = int_to_ptr.hbm [resolvable:$true] %s286_s22 }
  0x1b   : > { %3982 = dma.hbm_to_vmem [thread:$0]  (!%p4705_p6), %s273_s15, 128, %s275_s19, [#allocation6], %s4602_s26, %s4602_s26, %s4603_s27  }
  0x1c   : > { %3985 = dma.hbm_to_vmem [thread:$0]  (!%p4705_p6), %s287_s22, 2048, %s289_s25, [#allocation9], %s4604_s28, %s4604_s28, %s4605_s29  }
  0x1d   : > { %s5925_s5 = sld [smem:[#allocation29_spill]]  ;;  %s4606_s20 = smov [#allocation11]  }
  0x1e   : > { %s316_s21 = sshll.u32 %s4606_s20, 4  ;;  %s5926_s4 = sld [smem:[#allocation28_spill]]  ;;  %s317_s21 = int_to_ptr.vmem [resolvable:$true] %s316_s21 }
  0x1f   : > { %s4607_s15 = smov [#allocation10]   ;;  %s5927_s7 = sld [smem:[#allocation30_spill]] }
  0x20   : > { %s302_s19 = sshll.u32 %s4607_s15, 4  ;;  %s5928_s8 = sld [smem:[#allocation31_spill]]  ;;  %s303_s19 = int_to_ptr.vmem [resolvable:$true] %s302_s19 }
  0x21   : > { %s4608_s14 = smov [#allocation13]   ;;  %s4747_s24 = sadd.s32 1, %s4598_s12  }
  0x22   : > { %s35_s15 = ssub.s32 %s4598_s12, %s4747_s24  ;;  %p45_p8 = scmp.ne.s32.totalorder %s4594_s11, %s4590_s10 }
  0x23   : > { %s314_s18 = sshll.u32 %s5925_s5, 4  ;;  %p36_p7 = scmp.eq.s32.totalorder %s35_s15, 0  ;;  %s315_s18 = int_to_ptr.hbm [resolvable:$true] %s314_s18 }
  0x24   : > { %s300_s3 = sshll.u32 %s5926_s4, 4  ;;  %p46_p9 = scmp.eq.s32.totalorder %s4598_s12, 0  ;;  %s301_s3 = int_to_ptr.hbm [resolvable:$true] %s300_s3 }
  0x25   : > { %3991 = dma.hbm_to_vmem [thread:$0]  (!%p4705_p6), %s315_s18, 2048, %s317_s21, [#allocation12], %s4604_s28, %s4604_s28, %s4605_s29  }
  0x26   : > { %s331_s13 = sshll.u32 %s5927_s7, 4  ;;  %s345_s29 = sshll.u32 %s5928_s8, 4  ;;  %s332_s13 = int_to_ptr.hbm [resolvable:$true] %s331_s13  ;;  %s346_s29 = int_to_ptr.hbm [resolvable:$true] %s345_s29 }
  0x27   : > { %3988 = dma.hbm_to_vmem [thread:$0]  (!%p4705_p6), %s301_s3, 64, %s303_s19, [#allocation9], %s4602_s26, %s4602_s26, %s4603_s27  }
  0x28   : > { %s333_s18 = sshll.u32 %s4608_s14, 4  ;;  %s4609_s3 = smov [#allocation14]   ;;  %s334_s18 = int_to_ptr.vmem [resolvable:$true] %s333_s18 }
  0x29   : > { %3994 = dma.hbm_to_vmem [thread:$0]  (!%p4705_p6), %s332_s13, 64, %s334_s18, [#allocation12], %s4602_s26, %s4602_s26, %s4603_s27  }
  0x2a   : > { %s347_s20 = sshll.u32 %s4609_s3, 4  ;;  %s3797_s21 = sadd.s32 4294967294, %s4598_s12   ;;  %s348_s20 = int_to_ptr.vmem [resolvable:$true] %s347_s20 }
  0x2b   : > { %3997 = dma.hbm_to_vmem [thread:$0]  (!%p4705_p6), %s346_s29, 64, %s348_s20, [#allocation15], %s4602_s26, %s4602_s26, %s4603_s27  }
  0x2c   : > { %s38_s19 = sadd.s32 1, %s4594_s11  ;;  %p51_p10 = scmp.ne.s32.totalorder %s4590_s10, %s4586_s30 }
  0x2d   : > { %s4758_s22 = scalar_select %p36_p7, %s4594_s11, %s38_s19  }
  0x2e   : > { %p4760_p11 = por %p46_p9, %p45_p8  ;;  %p4766_p12 = por %p52_p1, %p51_p10 }
  0x2f   : > { %5929 = sst [smem:[#allocation25_spill]] %s4758_s22  ;;  %p248_p13 = scmp.eq.s32.totalorder %s4688_s16, 1 }
  0x30   : > { %p254_p0 = scmp.eq.s32.totalorder %s3797_s21, 1  ;;  %p4015_p2 = scmp.lt.s32.totalorder %s4598_s12, 2 }
  0x31   : > { %s4773_s27 = sand.u32 1, %s4594_s11   ;;  %p4775_p4 = por %p248_p13, %p45_p8 }
  0x32   : > { %p4779_p6 = por %p254_p0, %p51_p10  ;;  %s3806_s2 = sshll.u32 %s4773_s27, 3 }
  0x33   : > { %s3807_s28 = sshll.u32 %s4598_s12, 3  ;;  %s365_s3 = scalar_lea.vmem [#allocation2], %s3806_s2 }
  0x34   : > { %s369_s18 = scalar_lea.hbm %s5903_s0, %s3807_s28  ;;  %s373_s20 = sshll.u32 %s365_s3, 4  ;;  %s374_s20 = int_to_ptr.vmem [resolvable:$true] %s373_s20 }
  0x35   : > { %s371_s21 = sshll.u32 %s369_s18, 4  ;;  %p4790_p7 = pnand %p4015_p2, %p4760_p11  ;;  %s372_s21 = int_to_ptr.hbm [resolvable:$true] %s371_s21 }
  0x36   : > { %s380_s19 = sand.u32 1, %s4598_s12   ;;  %s3808_s4 = sshll.u32 %s4773_s27, 2 }
  0x37   : > { %s362_s5 = scalar_lea.sflag [#allocation3], %s4773_s27  ;;  %s4452_s7 = sshra.s32 %s372_s21, 4  ;;  %s4453_s7 = int_to_ptr.hbm [resolvable:$true] %s4452_s7 }
  0x38   : > { %s4454_s8 = scalar_lea.hbm %s4453_s7, 8  ;;  %p4456_p9 = pneg %p4790_p7 }
  0x39   : > { %p4455_p8 = scmp.ne.s32.totalorder %s4453_s7, %s4454_s8  ;;  %s4459_s28 = scalar_lea.hbm %s5903_s0, 16 }
  0x3a   : > { %p4460_p11 = scmp.lt.s32.totalorder %s4453_s7, %s5903_s0  ;;  %p4461_p0 = scmp.lt.s32.totalorder %s4459_s28, %s4454_s8 }
  0x3b   : > { %p4457_p10 = pnand %p4456_p9, %p4455_p8 }
  0x3c   : > { %p4462_p2 = por %p4461_p0, %p4460_p11 }
  0x3d   : > { %p4458_p13 = pneg %p4457_p10 }
  0x3f   : > { %p4463_p5 = pnand %p4462_p2, %p4458_p13 }
  0x41   : > { %4466 = shalt.err (!%p4463_p5)
}
  0x42   : > { %4001 = dma.hbm_to_vmem [thread:$0]  (!%p4790_p7), %s372_s21, 128, %s374_s20, %s362_s5  }
  0x43   : > { %s3809_s27 = sshll.u32 %s4598_s12, 2  ;;  %s384_s23 = scalar_lea.vmem [#allocation5], %s3808_s4 }
  0x44   : > { %s388_s22 = scalar_lea.hbm %s5904_s1, %s3809_s27  ;;  %s392_s2 = sshll.u32 %s384_s23, 4  ;;  %s393_s2 = int_to_ptr.vmem [resolvable:$true] %s392_s2 }
  0x45   : > { %s390_s11 = sshll.u32 %s388_s22, 4  ;;  %s381_s7 = scalar_lea.sflag [#allocation6], %s380_s19  ;;  %s391_s11 = int_to_ptr.hbm [resolvable:$true] %s390_s11 }
  0x46   : > { %s4482_s8 = sshra.s32 %s391_s11, 4  ;;  %s4489_s21 = scalar_lea.hbm %s5904_s1, 8  ;;  %s4483_s8 = int_to_ptr.hbm [resolvable:$true] %s4482_s8 }
  0x47   : > { %s4484_s28 = scalar_lea.hbm %s4483_s8, 4  ;;  %p4490_p13 = scmp.lt.s32.totalorder %s4483_s8, %s5904_s1 }
  0x48   : > { %p4485_p5 = scmp.ne.s32.totalorder %s4483_s8, %s4484_s28  ;;  %p4491_p11 = scmp.lt.s32.totalorder %s4489_s21, %s4484_s28 }
  0x4a   : > { %p4487_p8 = pnand %p4485_p5, %p4456_p9  ;;  %p4492_p0 = por %p4491_p11, %p4490_p13 }
  0x4c   : > { %p4488_p10 = pneg %p4487_p8 }
  0x4e   : > { %p4493_p2 = pnand %p4492_p0, %p4488_p10 }
  0x50   : > { %4496 = shalt.err (!%p4493_p2)
}
  0x51   : > { %4004 = dma.hbm_to_vmem [thread:$0]  (!%p4790_p7), %s391_s11, 64, %s393_s2, %s381_s7  }
  0x52   : > { %401 = sbr.rel (%p4693_p3) target bundleno = 4747 (0x128b), region = 56  ;;  %s4828_s4 = sand.u32 (!%p4693_p3), 1, %s4590_s10  }
  0x53   : > { %s3811_s22 = sshll.u32 (!%p4693_p3), %s4828_s4, 3  ;;  %s404_s19 = scalar_lea.sflag (!%p4693_p3), [#allocation3], %s4828_s4 }
  0x54   : > { %s407_s27 = scalar_lea.vmem (!%p4693_p3), [#allocation2], %s3811_s22 }
  0x57   : > { %4557 = dma.done.wait (%p4766_p12), %s404_s19, 128  }
  0x58   : > { %4559 = vsyncadd (%p4766_p12), %s404_s19, 4294967168  ;;  %s413_s11 = sand.u32 1, %s4688_s16   ;;  %s3812_s17 = sshll.u32 %s4828_s4, 2 }
  0x59   : > { %s414_s15 = scalar_lea.sflag [#allocation6], %s413_s11  ;;  %s4840_s18 = scalar_lea.vmem [#allocation5], %s3812_s17 }
  0x5a   : > { %4561 = dma.done.wait (%p4766_p12), %s414_s15, 64  }
  0x5b   : > { %4563 = vsyncadd (%p4766_p12), %s414_s15, 4294967232 }
  0x5c   : > { %4565 = dma.done.wait (%p52_p1), [#allocation6], 128  }
  0x5d   : > { %4567 = vsyncadd (%p52_p1), [#allocation6], 4294967168 }
  0x5e   : > { %4569 = dma.done.wait (%p52_p1), [#allocation9], 2112  }
  0x5f   : > { %4571 = vsyncadd (%p52_p1), [#allocation9], 4294965184 }
  0x60   : > { %4573 = dma.done.wait (%p52_p1), [#allocation12], 2112  }
  0x61   : > { %4575 = vsyncadd (%p52_p1), [#allocation12], 4294965184 }
  0x62   : > { %4577 = dma.done.wait (%p52_p1), [#allocation15], 64  }
  0x63   : > { %4579 = vsyncadd (%p52_p1), [#allocation15], 4294967232  ;;  %v501_v0 = vld [vmem:[#allocation8 + $0x18] sm:$0xff]  ;;  %v500_v1 = vld [vmem:[#allocation8 + $0x10] sm:$0xff]  ;;  %s4610_s26 = smov 32   ;;  %vm506_vm0 = vcmask 261120  }
  0x64   : > { %522 = vmatpush.msra.mxu0 %v501_v0  ;;  %v4109_v2 = vld [vmem:[#allocation7 + $0x1] ss:$0 sm:$0xff]  ;;  %v499_v3 = vld [vmem:[#allocation8 + $0x8] sm:$0xff]  ;;  %v4110_v4 = vld [vmem:[#allocation7] ss:$0 sm:$0xff]  ;;  %s4611_s3 = smov 96  }
  0x65   : > { %548 = vrot.lane.b32.xlu0 %v4109_v2, %s4610_s26  ;;  %546 = vrot.lane.b32.xlu1 %v4110_v4, %s4610_s26  ;;  %v498_v5 = vld [vmem:[#allocation8] sm:$0xff]  ;;  %v4111_v7 = vld [vmem:[#allocation7 + $0x2] ss:$0 sm:$0xff]  ;;  %v4115_v8 = vld [vmem:[#allocation7 + $0x5] ss:$0 sm:$0xff]  ;;  %s4612_s23 = smov 64  }
  0x66   : > { %523 = vmatpush.msra.mxu0 %v500_v1  ;;  %v4862_v6 = vld [vmem:[%s407_s27] sm:$0xff]  ;;  %v4112_v9 = vld [vmem:[#allocation7 + $0x4] ss:$0 sm:$0xff]  ;;  %556 = vrot.lane.b32.xlu2 %v4115_v8, %s4610_s26  ;;  %v4116_v10 = vld [vmem:[#allocation7 + $0x3] ss:$0 sm:$0xff]  ;;  %vm821_vm1 = vcmask 64512  }
  0x67   : > { %v4113_v11 = vld [vmem:[#allocation7 + $0x6] ss:$0 sm:$0xff]  ;;  %v4866_v12 = vld [vmem:[#allocation7 + $0x7] ss:$0 sm:$0xff]  ;;  %v4117_v15 = vld [vmem:[#allocation10] ss:$0 sm:$0xff] }
  0x68   : > { %524 = vmatpush.msra.mxu0 %v499_v3  ;;  %s3946_s14 = sshll.u32 %s4688_s16, 3  ;;  %s487_s17 = scalar_lea.vmem [#allocation16], %s3811_s22 }
  0x69   : > { %s3642_s11 = scalar_lea.hbm %s5912_s9, %s3946_s14  ;;  %s3644_s15 = sshll.u32 %s487_s17, 4  ;;  %s3645_s15 = int_to_ptr.vmem [resolvable:$true] %s3644_s15 }
  0x6a   : > { %525 = vmatpush.msra.mxu0 %v498_v5  ;;  %s3632_s16 = scalar_lea.sflag [#allocation4], %s4828_s4  ;;  %s4532_s22 = scalar_lea.hbm %s5912_s9, 16 }
  0x6b   : > { %3820 = vmatmul.msk.f32.vlgmr.msra.gmra.mxu0 %vm506_vm0, %v4862_v6 }
  0x6d   : > { %550 = vrot.lane.b32.xlu0 %v4111_v7, %s4610_s26  ;;  %554 = vrot.lane.b32.xlu1 %v4112_v9, %s4610_s26 }
  0x6e   : > { %552 = vrot.lane.b32.xlu2 %v4116_v10, %s4610_s26 }
  0x75   : > { %558 = vrot.lane.b32.xlu0 %v4113_v11, %s4610_s26  ;;  %560 = vrot.lane.b32.xlu1 %v4866_v12, %s4610_s26 }
  0xc0   : > { %v4873_v16 = vpop.permute.xlu2 %556 }
  0xc8   : > { %v4890_v24 = vpop.permute.xlu2 %552 }
  0xd7   : > { %v4869_v13 = vpop.permute.xlu0 %548  ;;  %v4871_v14 = vpop.permute.xlu1 %546 }
  0xdf   : > { %v4877_v19 = vpop.permute.xlu0 %550  ;;  %v4887_v23 = vpop.permute.xlu1 %554 }
  0xe7   : > { %v4901_v28 = vpop.permute.xlu0 %558  ;;  %v4903_v29 = vpop.permute.xlu1 %560 }
  0xe8   : > { %v527_v17 = vpop.f32.mrf.mxu0 }
  0xe9   : > { %v4875_v18 = vadd.f32 %v4117_v15, %v527_v17 }
  0xeb   : > { %v572_v20 = vmul.f32 %v4877_v19, %v4875_v18  ;;  %v571_v21 = vmul.f32 %v4869_v13, %v4875_v18  ;;  %v570_v22 = vmul.f32 %v4871_v14, %v4875_v18  ;;  %v575_v25 = vmul.f32 %v4873_v16, %v4875_v18 }
  0xec   : > { %v574_v26 = vmul.f32 %v4887_v23, %v4875_v18  ;;  %v573_v27 = vmul.f32 %v4890_v24, %v4875_v18  ;;  %v577_v30 = vmul.f32 %v4903_v29, %v4875_v18  ;;  %v576_v31 = vmul.f32 %v4901_v28, %v4875_v18 }
  0xed   : > { %664 = vrot.lane.b32.xlu0 %v572_v20, %s4611_s3  ;;  %639 = vrot.lane.b32.xlu2 %v571_v21, %s4611_s3 }
  0xee   : > { %611 = vrot.lane.b32.xlu1 %v570_v22, %s4611_s3 }
  0xf5   : > { %739 = vrot.lane.b32.xlu0 %v575_v25, %s4611_s3  ;;  %714 = vrot.lane.b32.xlu2 %v574_v26, %s4611_s3 }
  0xf6   : > { %689 = vrot.lane.b32.xlu1 %v573_v27, %s4611_s3 }
  0xfd   : > { %789 = vrot.lane.b32.xlu0 %v577_v30, %s4611_s3  ;;  %764 = vrot.lane.b32.xlu2 %v576_v31, %s4611_s3 }
  0xfe   : > { %586 = vrot.lane.b32.xlu1 %v4112_v9, %s4612_s23 }
 0x105   : > { %580 = vrot.lane.b32.xlu0 %v4109_v2, %s4612_s23  ;;  %578 = vrot.lane.b32.xlu2 %v4110_v4, %s4612_s23 }
 0x106   : > { %584 = vrot.lane.b32.xlu1 %v4116_v10, %s4612_s23 }
 0x10d   : > { %582 = vrot.lane.b32.xlu0 %v4111_v7, %s4612_s23  ;;  %588 = vrot.lane.b32.xlu2 %v4115_v8, %s4612_s23 }
 0x115   : > { %590 = vrot.lane.b32.xlu0 %v4113_v11, %s4612_s23 }
 0x147   : > { %v640_v32 = vpop.permute.xlu2 %639 }
 0x148   : > { %3823 = vmatpush.xpose.msk.msra.mxu2 %vm506_vm0, %v640_v32 }
 0x14b   : > { %3824 = vmatmul.msk.f32.vlgmr.msra.gmra.mxu2 %vm506_vm0, %v4875_v18 }
 0x14f   : > { %v715_v33 = vpop.permute.xlu2 %714 }
 0x150   : > { %3829 = vmatpush.xpose.msk.msrb.mxu2 %vm506_vm0, %v715_v33 }
 0x153   : > { %3830 = vmatmul.msk.f32.vlgmr.msrb.gmra.mxu2 %vm506_vm0, %v4875_v18 }
 0x157   : > { %v765_v34 = vpop.permute.xlu2 %764 }
 0x158   : > { %3833 = vmatpush.xpose.msk.msrb.mxu0 %vm506_vm0, %v765_v34 }
 0x15b   : > { %3834 = vmatmul.msk.f32.vlgmr.msrb.gmra.mxu0 %vm506_vm0, %v4875_v18 }
 0x15f   : > { %v665_v35 = vpop.permute.xlu0 %664  ;;  %v4952_v60 = vpop.permute.xlu2 %578 }
 0x160   : > { %v612_v36 = vpop.permute.xlu1 %611  ;;  %3825 = vmatpush.xpose.msk.msra.mxu3 %vm506_vm0, %v665_v35  ;;  %v602_v1 = vmul.f32 %v4952_v60, %v4875_v18 }
 0x161   : > { %3821 = vmatpush.xpose.msk.msra.mxu1 %vm506_vm0, %v612_v36 }
 0x163   : > { %3826 = vmatmul.msk.f32.vlgmr.msra.gmra.mxu3 %vm506_vm0, %v4875_v18 }
 0x164   : > { %3822 = vmatmul.msk.f32.vlgmr.msra.gmra.mxu1 %vm506_vm0, %v4875_v18 }
 0x167   : > { %v740_v37 = vpop.permute.xlu0 %739  ;;  %v4964_v5 = vpop.permute.xlu2 %588 }
 0x168   : > { %v690_v38 = vpop.permute.xlu1 %689  ;;  %3831 = vmatpush.xpose.msk.msrb.mxu3 %vm506_vm0, %v740_v37 }
 0x169   : > { %3827 = vmatpush.xpose.msk.msrb.mxu1 %vm506_vm0, %v690_v38 }
 0x16b   : > { %3832 = vmatmul.msk.f32.vlgmr.msrb.gmra.mxu3 %vm506_vm0, %v4875_v18 }
 0x16c   : > { %3828 = vmatmul.msk.f32.vlgmr.msrb.gmra.mxu1 %vm506_vm0, %v4875_v18 }
 0x16f   : > { %v790_v39 = vpop.permute.xlu0 %789 }
 0x170   : > { %3835 = vmatpush.xpose.msk.msra.mxu1 %vm506_vm0, %v790_v39  ;;  %v4966_v8 = vpop.permute.xlu1 %586 }
 0x174   : > { %3836 = vmatmul.msk.f32.vlgmr.msra.gmra.mxu1 %vm506_vm0, %v4875_v18 }
 0x177   : > { %v4950_v58 = vpop.permute.xlu0 %580 }
 0x178   : > { %v603_v63 = vmul.f32 %v4950_v58, %v4875_v18  ;;  %v4972_v17 = vpop.permute.xlu1 %584 }
 0x17a   : > { %v4069_v3 = vpack.i.bf16 %v603_v63, %v602_v1 }
 0x17f   : > { %v4968_v9 = vpop.permute.xlu0 %582 }
 0x187   : > { %v4974_v20 = vpop.permute.xlu0 %590 }
 0x1ce   : > { %v660_v40 = vpop.f32.mrf.mxu2 }
 0x1cf   : > { %v814_v41 = vmul.f32 0.5, %v660_v40 }
 0x1d1   : > { %v825_v42 = vsel %vm821_vm1, %v814_v41, -inf }
 0x1d2   : > { %826 = vmax.xlane.f32.xlu2 %v825_v42 }
 0x1d6   : > { %v735_v46 = vpop.f32.mrf.mxu2 }
 0x1d7   : > { %v4944_v47 = vmul.f32 0.5, %v735_v46 }
 0x1d8   : > { %v785_v43 = vpop.f32.mrf.mxu0 }
 0x1d9   : > { %v819_v44 = vmul.f32 0.5, %v785_v43  ;;  %v834_v50 = vsel %vm821_vm1, %v4944_v47, -inf }
 0x1db   : > { %v840_v45 = vsel %vm821_vm1, %v819_v44, -inf }
 0x1dc   : > { %841 = vmax.xlane.f32.xlu0 %v840_v45 }
 0x1e1   : > { %v635_v48 = vpop.f32.mrf.mxu1 }
 0x1e2   : > { %v813_v49 = vmul.f32 0.5, %v635_v48 }
 0x1e4   : > { %835 = vmax.xlane.f32.xlu0 %v834_v50  ;;  %v822_v51 = vsel %vm821_vm1, %v813_v49, -inf }
 0x1e5   : > { %823 = vmax.xlane.f32.xlu1 %v822_v51 }
 0x1e6   : > { %v685_v52 = vpop.f32.mrf.mxu3 }
 0x1e7   : > { %v815_v53 = vmul.f32 0.5, %v685_v52 }
 0x1e9   : > { %v710_v54 = vpop.f32.mrf.mxu1  ;;  %v828_v55 = vsel %vm821_vm1, %v815_v53, -inf }
 0x1ea   : > { %829 = vmax.xlane.f32.xlu2 %v828_v55  ;;  %v816_v56 = vmul.f32 0.5, %v710_v54 }
 0x1ec   : > { %v831_v62 = vsel %vm821_vm1, %v816_v56, -inf }
 0x1ee   : > { %v760_v57 = vpop.f32.mrf.mxu3 }
 0x1ef   : > { %v818_v59 = vmul.f32 0.5, %v760_v57 }
 0x1f1   : > { %v837_v61 = vsel %vm821_vm1, %v818_v59, -inf  ;;  %v810_v0 = vpop.f32.mrf.mxu1 }
 0x1f2   : > { %838 = vmax.xlane.f32.xlu1 %v837_v61  ;;  %832 = vmax.xlane.f32.xlu2 %v831_v62  ;;  %v820_v2 = vmul.f32 0.5, %v810_v0 }
 0x1f4   : > { %v843_v4 = vsel %vm821_vm1, %v820_v2, -inf }
 0x1f8   : > { %4070 = vrot.lane.b32.xlu0 %v4069_v3, %s4612_s23  ;;  %v608_v3 = vmul.f32 %v4974_v20, %v4875_v18 }
 0x1fa   : > { %844 = vmax.xlane.f32.xlu1 %v843_v4 }
 0x20a   : > { %592 = vrot.lane.b32.xlu2 %v4866_v12, %s4612_s23 }
 0x245   : > { %v827_v7 = vpop.xlane.xlu2 %826 }
 0x246   : > { %v847_v10 = vsub.f32 %v814_v41, %v827_v7  ;;  %v604_v7 = vmul.f32 %v4968_v9, %v4875_v18 }
 0x248   : > { %v856_v11 = vmul.f32 1.442695, %v847_v10  ;;  %v606_v10 = vmul.f32 %v4966_v8, %v4875_v18 }
 0x24a   : > { %4133 = vpow2.f32 %v856_v11  ;;  %v4074_v11 = vpack.i.bf16 %v604_v7, %v606_v10 }
 0x24f   : > { %v842_v12 = vpop.xlane.xlu0 %841 }
 0x250   : > { %v4970_v15 = vpop.eup %4133  ;;  %v852_v26 = vsub.f32 %v819_v44, %v842_v12  ;;  %v607_v12 = vmul.f32 %v4964_v5, %v4875_v18 }
 0x251   : > { %v873_v21 = vsel %vm821_vm1, %v4970_v15, 0.0 }
 0x252   : > { %874 = vadd.xlane.f32.xlu0 %v873_v21  ;;  %v866_v31 = vmul.f32 1.442695, %v852_v26  ;;  %v605_v21 = vmul.f32 %v4972_v17, %v4875_v18 }
 0x257   : > { %v836_v33 = vpop.xlane.xlu0 %835 }
 0x258   : > { %v824_v22 = vpop.xlane.xlu1 %823  ;;  %v850_v41 = vsub.f32 %v4944_v47, %v836_v33 }
 0x259   : > { %v846_v25 = vsub.f32 %v813_v49, %v824_v22  ;;  %v4079_v22 = vpack.i.bf16 %v605_v21, %v607_v12 }
 0x25a   : > { %v862_v49 = vmul.f32 1.442695, %v850_v41 }
 0x25b   : > { %v854_v27 = vmul.f32 1.442695, %v846_v25 }
 0x25d   : > { %4135 = vpow2.f32 %v854_v27  ;;  %v830_v30 = vpop.xlane.xlu2 %829 }
 0x25e   : > { %v848_v32 = vsub.f32 %v815_v53, %v830_v30  ;;  %4137 = vpow2.f32 %v866_v31 }
 0x260   : > { %v858_v36 = vmul.f32 1.442695, %v848_v32 }
 0x262   : > { %4139 = vpow2.f32 %v858_v36 }
 0x263   : > { %v4978_v34 = vpop.eup %4135 }
 0x264   : > { %v870_v35 = vsel %vm821_vm1, %v4978_v34, 0.0  ;;  %v4983_v44 = vpop.eup %4137 }
 0x265   : > { %871 = vadd.xlane.f32.xlu1 %v870_v35  ;;  %v833_v37 = vpop.xlane.xlu2 %832  ;;  %v839_v38 = vpop.xlane.xlu1 %838  ;;  %v888_v50 = vsel %vm821_vm1, %v4983_v44, 0.0 }
 0x266   : > { %v849_v39 = vsub.f32 %v816_v56, %v833_v37  ;;  %v851_v40 = vsub.f32 %v818_v59, %v839_v38 }
 0x268   : > { %v860_v42 = vmul.f32 1.442695, %v849_v39  ;;  %v864_v43 = vmul.f32 1.442695, %v851_v40  ;;  %v4987_v52 = vpop.eup %4139 }
 0x269   : > { %v876_v59 = vsel %vm821_vm1, %v4987_v52, 0.0 }
 0x26a   : > { %4141 = vpow2.f32 %v860_v42  ;;  %v4071_v45 = vpop.permute.xlu0 %4070 }
 0x26b   : > { %4143 = vpow2.f32 %v864_v43  ;;  %v4073_v46 = vunpack.i.h.bf16 %v4071_v45  ;;  %v4072_v48 = vunpack.i.l.bf16 %v4071_v45 }
 0x26c   : > { %4145 = vpow2.f32 %v862_v49 }
 0x26d   : > { %889 = vadd.xlane.f32.xlu1 %v888_v50  ;;  %1036 = vmatpush.msra.mxu2 %v4072_v48  ;;  %v845_v51 = vpop.xlane.xlu1 %844  ;;  %v5005_v0 = vpop.permute.xlu2 %592 }
 0x26e   : > { %1063 = vmatpush.msra.mxu3 %v4073_v46  ;;  %v853_v53 = vsub.f32 %v820_v2, %v845_v51  ;;  %v609_v1 = vmul.f32 %v5005_v0, %v4875_v18 }
 0x270   : > { %v4989_v47 = vpop.eup %4141  ;;  %v868_v57 = vmul.f32 1.442695, %v853_v53  ;;  %v4084_v4 = vpack.i.bf16 %v609_v1, %v608_v3 }
 0x271   : > { %v4991_v54 = vpop.eup %4143  ;;  %v879_v55 = vsel %vm821_vm1, %v4989_v47, 0.0 }
 0x272   : > { %880 = vadd.xlane.f32.xlu2 %v879_v55  ;;  %v885_v56 = vsel %vm821_vm1, %v4991_v54, 0.0  ;;  %v4999_v61 = vpop.eup %4145  ;;  %4147 = vpow2.f32 %v868_v57 }
 0x273   : > { %886 = vadd.xlane.f32.xlu0 %v885_v56  ;;  %v882_v62 = vsel %vm821_vm1, %v4999_v61, 0.0 }
 0x275   : > { %877 = vadd.xlane.f32.xlu1 %v876_v59 }
 0x278   : > { %v5003_v63 = vpop.eup %4147 }
 0x279   : > { %v891_v2 = vsel %vm821_vm1, %v5003_v63, 0.0 }
 0x27a   : > { %883 = vadd.xlane.f32.xlu2 %v882_v62 }
 0x282   : > { %892 = vadd.xlane.f32.xlu2 %v891_v2 }
 0x287   : > { %4085 = vrot.lane.b32.xlu0 %v4084_v4, %s4612_s23 }
 0x28e   : > { %4075 = vrot.lane.b32.xlu1 %v4074_v11, %s4612_s23 }
 0x29a   : > { %4080 = vrot.lane.b32.xlu2 %v4079_v22, %s4612_s23 }
 0x2c5   : > { %v875_v25 = vpop.xlane.xlu0 %874 }
 0x2c6   : > { %4149 = vrcp.f32 %v875_v25  ;;  %v920_v31 = vand.u32 2147483648, %v875_v25  ;;  %v918_v33 = vand.u32 2147483647, %v875_v25  ;;  %vm914_vm3 = vweird.f32 %v875_v25 }
 0x2c8   : > { %v921_v36 = vor.u32 1.1754944e-38, %v920_v31  ;;  %vm919_vm5 = vcmp.eq.f32.partialorder %v918_v33, 8.507059e+37 }
 0x2cc   : > { %v4150_v26 = vpop.eup %4149 }
 0x2cd   : > { %v910_v27 = vmul.f32 %v4150_v26, %v875_v25  ;;  %vm915_vm2 = vweird.f32 %v4150_v26 }
 0x2ce   : > { %vm916_vm4 = vmor %vm914_vm3, %vm915_vm2 }
 0x2cf   : > { %v911_v30 = vsub.f32 1.0, %v910_v27 }
 0x2d1   : > { %v912_v32 = vmul.f32 %v4150_v26, %v911_v30 }
 0x2d3   : > { %v913_v35 = vadd.f32 %v4150_v26, %v912_v32 }
 0x2d5   : > { %v917_v37 = vsel %vm916_vm4, %v4150_v26, %v913_v35 }
 0x2d6   : > { %v922_v38 = vsel %vm919_vm5, %v921_v36, %v917_v37 }
 0x2d7   : > { %v923_v18 = vmul.f32 %v4970_v15, %v922_v38 }
 0x2d8   : > { %v872_v39 = vpop.xlane.xlu1 %871 }
 0x2d9   : > { %4151 = vrcp.f32 %v872_v39  ;;  %3838 = vmatmul.msk.f32.vlgmr.msra.gmra.mxu3 %vm821_vm1, %v923_v18  ;;  %v905_v45 = vand.u32 2147483648, %v872_v39  ;;  %v903_v48 = vand.u32 2147483647, %v872_v39  ;;  %vm899_vm7 = vweird.f32 %v872_v39 }
 0x2db   : > { %v906_v15 = vor.u32 1.1754944e-38, %v905_v45  ;;  %vm904_vm9 = vcmp.eq.f32.partialorder %v903_v48, 8.507059e+37 }
 0x2df   : > { %v4152_v40 = vpop.eup %4151 }
 0x2e0   : > { %v895_v41 = vmul.f32 %v4152_v40, %v872_v39  ;;  %v5026_v42 = vpop.xlane.xlu1 %889  ;;  %vm900_vm6 = vweird.f32 %v4152_v40 }
 0x2e1   : > { %vm901_vm8 = vmor %vm899_vm7, %vm900_vm6  ;;  %v995_v25 = vand.u32 2147483648, %v5026_v42 }
 0x2e2   : > { %v896_v43 = vsub.f32 1.0, %v895_v41 }
 0x2e4   : > { %v897_v46 = vmul.f32 %v4152_v40, %v896_v43 }
 0x2e5   : > { %v881_v49 = vpop.xlane.xlu2 %880 }
 0x2e6   : > { %v898_v50 = vadd.f32 %v4152_v40, %v897_v46  ;;  %4153 = vrcp.f32 %v881_v49  ;;  %v5028_v51 = vpop.xlane.xlu0 %886  ;;  %v950_v26 = vand.u32 2147483648, %v881_v49  ;;  %vm944_vm10 = vweird.f32 %v881_v49 }
 0x2e7   : > { %4155 = vrcp.f32 %v5028_v51  ;;  %v948_v32 = vand.u32 2147483647, %v881_v49  ;;  %vm974_vm13 = vweird.f32 %v5028_v51  ;;  %v978_v38 = vand.u32 2147483647, %v5028_v51 }
 0x2e8   : > { %v902_v53 = vsel %vm901_vm8, %v4152_v40, %v898_v50  ;;  %v5031_v55 = vpop.xlane.xlu1 %877  ;;  %4157 = vrcp.f32 %v5026_v42  ;;  %v980_v18 = vand.u32 2147483648, %v5028_v51  ;;  %v951_v41 = vor.u32 1.1754944e-38, %v950_v26 }
 0x2e9   : > { %v907_v56 = vsel %vm904_vm9, %v906_v15, %v902_v53  ;;  %4159 = vrcp.f32 %v5031_v55  ;;  %v933_v43 = vand.u32 2147483647, %v5031_v55  ;;  %v935_v50 = vand.u32 2147483648, %v5031_v55 }
 0x2ea   : > { %v908_v57 = vmul.f32 %v4978_v34, %v907_v56  ;;  %vm949_vm5 = vcmp.eq.f32.partialorder %v948_v32, 8.507059e+37  ;;  %v981_v56 = vor.u32 1.1754944e-38, %v980_v18  ;;  %vm929_vm6 = vweird.f32 %v5031_v55 }
 0x2eb   : > { %vm979_vm7 = vcmp.eq.f32.partialorder %v978_v38, 8.507059e+37 }
 0x2ec   : > { %v4154_v59 = vpop.eup %4153  ;;  %3837 = vmatmul.msk.f32.vlgmr.msra.gmra.mxu2 %vm821_vm1, %v908_v57 }
 0x2ed   : > { %v4156_v62 = vpop.eup %4155  ;;  %v940_v1 = vmul.f32 %v4154_v59, %v881_v49  ;;  %v5037_v2 = vpop.xlane.xlu2 %883  ;;  %vm945_vm11 = vweird.f32 %v4154_v59 }
 0x2ee   : > { %v970_v3 = vmul.f32 %v4156_v62, %v5028_v51  ;;  %4161 = vrcp.f32 %v5037_v2  ;;  %v5041_v4 = vpop.eup %4157  ;;  %vm975_vm12 = vweird.f32 %v4156_v62  ;;  %vm5058_vm14 = vmor %vm944_vm10, %vm945_vm11  ;;  %v965_v53 = vand.u32 2147483648, %v5037_v2 }
 0x2ef   : > { %v941_v7 = vsub.f32 1.0, %v940_v1  ;;  %v5043_v10 = vpop.eup %4159  ;;  %v985_v22 = vmul.f32 %v5041_v4, %v5026_v42  ;;  %vm990_vm15 = vweird.f32 %v5041_v4  ;;  %vm5067_vm2 = vmor %vm974_vm13, %vm975_vm12  ;;  %v963_v57 = vand.u32 2147483647, %v5037_v2  ;;  %v1317_v1 = vld [vmem:[#allocation8 + $0x20] sm:$0xff] }
 0x2f0   : > { %v971_v11 = vsub.f32 1.0, %v970_v3  ;;  %v925_v34 = vmul.f32 %v5043_v10, %v5031_v55  ;;  %vm930_vm3 = vweird.f32 %v5043_v10  ;;  %vm959_vm9 = vweird.f32 %v5037_v2 }
 0x2f1   : > { %v942_v21 = vmul.f32 %v4154_v59, %v941_v7  ;;  %v986_v39 = vsub.f32 1.0, %v985_v22  ;;  %vm5079_vm8 = vmor %vm929_vm6, %vm930_vm3  ;;  %vm934_vm10 = vcmp.eq.f32.partialorder %v933_v43, 8.507059e+37  ;;  %v936_v55 = vor.u32 1.1754944e-38, %v935_v50 }
 0x2f2   : > { %v972_v12 = vmul.f32 %v4156_v62, %v971_v11  ;;  %v926_v27 = vsub.f32 1.0, %v925_v34  ;;  %vm964_vm12 = vcmp.eq.f32.partialorder %v963_v57, 8.507059e+37 }
 0x2f3   : > { %v943_v31 = vadd.f32 %v4154_v59, %v942_v21  ;;  %v987_v7 = vmul.f32 %v5041_v4, %v986_v39 }
 0x2f4   : > { %v4162_v30 = vpop.eup %4161  ;;  %v973_v33 = vadd.f32 %v4156_v62, %v972_v12  ;;  %v927_v35 = vmul.f32 %v5043_v10, %v926_v27  ;;  %v966_v12 = vor.u32 1.1754944e-38, %v965_v53  ;;  %v996_v53 = vor.u32 1.1754944e-38, %v995_v25  ;;  %v489_v25 = vld [vmem:[%s4840_s18] sm:$0xf] }
 0x2f5   : > { %v955_v36 = vmul.f32 %v4162_v30, %v5037_v2  ;;  %v5052_v37 = vpop.xlane.xlu2 %892  ;;  %v947_v46 = vsel %vm5058_vm14, %v4154_v59, %v943_v31  ;;  %vm960_vm4 = vweird.f32 %v4162_v30  ;;  %v988_v38 = vadd.f32 %v5041_v4, %v987_v7  ;;  %v1245_v7 = vld [vmem:[#allocation11] sm:$0xff] }
 0x2f6   : > { %4163 = vrcp.f32 %v5052_v37  ;;  %v928_v49 = vadd.f32 %v5043_v10, %v927_v35  ;;  %v977_v51 = vsel %vm5067_vm2, %v4156_v62, %v973_v33  ;;  %v952_v59 = vsel %vm949_vm5, %v951_v41, %v947_v46  ;;  %vm961_vm11 = vmor %vm959_vm9, %vm960_vm4 }
 0x2f7   : > { %v956_v45 = vsub.f32 1.0, %v955_v36  ;;  %v982_v11 = vsel %vm979_vm7, %v981_v56, %v977_v51  ;;  %v953_v32 = vmul.f32 %v4989_v47, %v952_v59  ;;  %v1008_v18 = vand.u32 2147483647, %v5052_v37  ;;  %v1320_v47 = vld [vmem:[#allocation8 + $0x38] sm:$0xff] }
 0x2f8   : > { %v932_v21 = vsel %vm5079_vm8, %v5043_v10, %v928_v49  ;;  %v983_v10 = vmul.f32 %v4991_v54, %v982_v11  ;;  %vm989_vm14 = vweird.f32 %v5026_v42  ;;  %v993_v54 = vand.u32 2147483647, %v5026_v42 }
 0x2f9   : > { %v957_v15 = vmul.f32 %v4162_v30, %v956_v45  ;;  %v4086_v26 = vpop.permute.xlu0 %4085  ;;  %v937_v33 = vsel %vm934_vm10, %v936_v55, %v932_v21  ;;  %vm5103_vm2 = vmor %vm989_vm14, %vm990_vm15  ;;  %vm1004_vm3 = vweird.f32 %v5052_v37  ;;  %vm1009_vm15 = vcmp.eq.f32.partialorder %v1008_v18, 8.507059e+37 }
 0x2fa   : > { %v4088_v39 = vunpack.i.h.bf16 %v4086_v26  ;;  %v938_v46 = vmul.f32 %v4987_v52, %v937_v33  ;;  %v4087_v51 = vunpack.i.l.bf16 %v4086_v26  ;;  %vm994_vm5 = vcmp.eq.f32.partialorder %v993_v54, 8.507059e+37 }
 0x2fb   : > { %v958_v3 = vadd.f32 %v4162_v30, %v957_v15  ;;  %v992_v15 = vsel %vm5103_vm2, %v5041_v4, %v988_v38  ;;  %v1318_v4 = vld [vmem:[#allocation8 + $0x28] sm:$0xff]  ;;  %vm1798_vm10 = vcmask 1043456  }
 0x2fc   : > { %v4164_v62 = vpop.eup %4163  ;;  %v997_v57 = vsel %vm994_vm5, %v996_v53, %v992_v15 }
 0x2fd   : > { %v962_v34 = vsel %vm961_vm11, %v4162_v30, %v958_v3  ;;  %v1000_v22 = vmul.f32 %v4164_v62, %v5052_v37  ;;  %v4081_v27 = vpop.permute.xlu2 %4080  ;;  %v1010_v30 = vand.u32 2147483648, %v5052_v37  ;;  %vm1005_vm13 = vweird.f32 %v4164_v62  ;;  %v1248_v3 = vld [vmem:[#allocation11 + $0x18] sm:$0xff] }
 0x2fe   : > { %v4083_v2 = vunpack.i.h.bf16 %v4081_v27  ;;  %v4082_v31 = vunpack.i.l.bf16 %v4081_v27  ;;  %v967_v35 = vsel %vm964_vm12, %v966_v12, %v962_v34  ;;  %vm1006_vm4 = vmor %vm1004_vm3, %vm1005_vm13  ;;  %v998_v42 = vmul.f32 %v4983_v44, %v997_v57 }
 0x2ff   : > { %v1001_v36 = vsub.f32 1.0, %v1000_v22  ;;  %v968_v48 = vmul.f32 %v4999_v61, %v967_v35  ;;  %v1011_v52 = vor.u32 1.1754944e-38, %v1010_v30  ;;  %v1319_v61 = vld [vmem:[#allocation8 + $0x30] sm:$0xff]  ;;  %vm1599_vm11 = vcmask 31744  }
 0x300   : > { %v4076_v40 = vpop.permute.xlu1 %4075  ;;  %1117 = vmatpush.msrb.mxu1 %v4083_v2  ;;  %1171 = vmatpush.msrb.mxu3 %v4082_v31 }
 0x301   : > { %v1002_v41 = vmul.f32 %v4164_v62, %v1001_v36  ;;  %v4078_v43 = vunpack.i.h.bf16 %v4076_v40  ;;  %v4077_v45 = vunpack.i.l.bf16 %v4076_v40  ;;  %3840 = vmatmul.msk.f32.vlgmr.msrb.gmra.mxu1 %vm821_vm1, %v953_v32  ;;  %3842 = vmatmul.msk.f32.vlgmr.msrb.gmra.mxu3 %vm821_vm1, %v983_v10 }
 0x302   : > { %1225 = vmatpush.msra.mxu1 %v4088_v39  ;;  %1341 = vmatpush.msra.mxu3 %v1320_v47 }
 0x303   : > { %v1003_v50 = vadd.f32 %v4164_v62, %v1002_v41  ;;  %1090 = vmatpush.msra.mxu0 %v4078_v43  ;;  %1144 = vmatpush.msrb.mxu2 %v4077_v45  ;;  %v5130_v43 = vld [vmem:[#allocation10 + $0x1] ss:$0 sm:$0xff] }
 0x304   : > { %3839 = vmatmul.msk.f32.vlgmr.msra.gmra.mxu0 %vm821_vm1, %v938_v46  ;;  %3841 = vmatmul.msk.f32.vlgmr.msrb.gmra.mxu2 %vm821_vm1, %v968_v48 }
 0x305   : > { %v1007_v56 = vsel %vm1006_vm4, %v4164_v62, %v1003_v50  ;;  %1198 = vmatpush.msrb.mxu0 %v4087_v51  ;;  %1342 = vmatpush.msra.mxu3 %v1319_v61  ;;  %v1247_v62 = vld [vmem:[#allocation11 + $0x10] sm:$0xff] }
 0x306   : > { %v1012_v37 = vsel %vm1009_vm15, %v1011_v52, %v1007_v56  ;;  %1268 = vmatpush.msra.mxu2 %v1248_v3 }
 0x307   : > { %1364 = vmatpush.msra.mxu0 %v1320_v47  ;;  %v1013_v59 = vmul.f32 %v5003_v63, %v1012_v37  ;;  %1343 = vmatpush.msra.mxu3 %v1318_v4  ;;  %v1246_v63 = vld [vmem:[#allocation11 + $0x8] sm:$0xff] }
 0x308   : > { %1269 = vmatpush.msra.mxu2 %v1247_v62  ;;  %v4613_v62 = vmov 32.0  }
 0x309   : > { %1365 = vmatpush.msra.mxu0 %v1319_v61  ;;  %3844 = vmatmul.msk.f32.vlgmr.msra.gmra.mxu1 %vm821_vm1, %v1013_v59  ;;  %4165 = vrcp.f32 %v4613_v62 }
 0x30a   : > { %1344 = vmatpush.msra.mxu3 %v1317_v1  ;;  %1270 = vmatpush.msra.mxu2 %v1246_v63 }
 0x30b   : > { %1366 = vmatpush.msra.mxu0 %v1318_v4  ;;  %v4119_v4 = vld [vmem:[%s5909_s6] ss:$0 sm:$0xff] }
 0x30c   : > { %3843 = vmatmul.msk.f32.vlgmr.msrb.gmra.mxu0 %vm821_vm1, %v998_v42  ;;  %1271 = vmatpush.msra.mxu2 %v1245_v7 }
 0x30d   : > { %1367 = vmatpush.msra.mxu0 %v1317_v1 }
 0x30f   : > { %v4166_v63 = vpop.eup %4165 }
 0x310   : > { %v1281_v7 = vmul.f32 32.0, %v4166_v63  ;;  %vm1285_vm6 = vweird.f32 %v4166_v63 }
 0x314   : > { %3847 = vmatmul.msk.f32.vlgmr.msra.gmra.mxu0 %vm506_vm0, %v489_v25 }
 0x35c   : > { %v1065_v21 = vpop.f32.mrf.mxu3 }
 0x35d   : > { %v1231_v44 = vsel %vm506_vm0, %v1065_v21, 0.0 }
 0x36f   : > { %v1038_v11 = vpop.f32.mrf.mxu2 }
 0x370   : > { %v1230_v55 = vsel %vm506_vm0, %v1038_v11, 0.0  ;;  %v1282_v11 = vsub.f32 1.0, %v1281_v7 }
 0x371   : > { %v1232_v34 = vadd.f32 %v1231_v44, %v1230_v55 }
 0x372   : > { %v1283_v21 = vmul.f32 %v4166_v63, %v1282_v11 }
 0x37e   : > { %v1119_v12 = vpop.f32.mrf.mxu1 }
 0x37f   : > { %v1235_v2 = vsel %vm506_vm0, %v1119_v12, 0.0 }
 0x381   : > { %v1092_v22 = vpop.f32.mrf.mxu0 }
 0x382   : > { %v1233_v26 = vsel %vm506_vm0, %v1092_v22, 0.0 }
 0x383   : > { %v1234_v27 = vadd.f32 %v1233_v26, %v1232_v34 }
 0x384   : > { %v1173_v31 = vpop.f32.mrf.mxu3 }
 0x385   : > { %v1236_v33 = vadd.f32 %v1235_v2, %v1234_v27  ;;  %v1239_v38 = vsel %vm506_vm0, %v1173_v31, 0.0 }
 0x386   : > { %v1227_v18 = vpop.f32.mrf.mxu1 }
 0x387   : > { %v1146_v32 = vpop.f32.mrf.mxu2  ;;  %v1243_v41 = vsel %vm506_vm0, %v1227_v18, 0.0 }
 0x388   : > { %v1237_v35 = vsel %vm506_vm0, %v1146_v32, 0.0 }
 0x389   : > { %v1238_v36 = vadd.f32 %v1237_v35, %v1236_v33  ;;  %v1200_v10 = vpop.f32.mrf.mxu0 }
 0x38a   : > { %v1241_v39 = vsel %vm506_vm0, %v1200_v10, 0.0 }
 0x38b   : > { %v1240_v30 = vadd.f32 %v1239_v38, %v1238_v36 }
 0x38d   : > { %v1242_v40 = vadd.f32 %v1241_v39, %v1240_v30 }
 0x38f   : > { %v1244_v45 = vadd.f32 %v1243_v41, %v1242_v40  ;;  %v4120_v41 = vld [vmem:[#allocation13] ss:$0 sm:$0xff] }
 0x391   : > { %3845 = vmatmul.msk.f32.vlgmr.msra.gmra.mxu2 %vm506_vm0, %v1244_v45  ;;  %v1369_v47 = vpop.f32.mrf.mxu0 }
 0x392   : > { %v5134_v54 = vadd.f32 %v5130_v43, %v1369_v47 }
 0x394   : > { %v1373_v46 = vmul.f32 %v5134_v54, %v4869_v13  ;;  %v1374_v48 = vmul.f32 %v5134_v54, %v4877_v19  ;;  %v1377_v49 = vmul.f32 %v5134_v54, %v4873_v16  ;;  %v1372_v50 = vmul.f32 %v5134_v54, %v4871_v14 }
 0x395   : > { %v1378_v51 = vmul.f32 %v5134_v54, %v4901_v28  ;;  %v1379_v15 = vmul.f32 %v5134_v54, %v4903_v29  ;;  %v1381_v52 = vmul.f32 %v5134_v54, %v4950_v58  ;;  %v1375_v25 = vmul.f32 %v5134_v54, %v4890_v24 }
 0x396   : > { %1417 = vrot.lane.b32.xlu2 %v1373_v46, %s4611_s3  ;;  %v1382_v3 = vmul.f32 %v5134_v54, %v4968_v9  ;;  %v1376_v32 = vmul.f32 %v5134_v54, %v4887_v23  ;;  %v4121_v46 = vld [vmem:[#allocation14] ss:$0 sm:$0xff] }
 0x39e   : > { %1442 = vrot.lane.b32.xlu2 %v1374_v48, %s4611_s3 }
 0x3a6   : > { %1517 = vrot.lane.b32.xlu2 %v1377_v49, %s4611_s3 }
 0x3ae   : > { %1389 = vrot.lane.b32.xlu2 %v1372_v50, %s4611_s3 }
 0x3b6   : > { %1542 = vrot.lane.b32.xlu2 %v1378_v51, %s4611_s3 }
 0x3be   : > { %1567 = vrot.lane.b32.xlu2 %v1379_v15, %s4611_s3 }
 0x3c6   : > { %1822 = vrot.lane.b32.xlu2 %v1381_v52, %s4612_s23 }
 0x3f0   : > { %v1418_v61 = vpop.permute.xlu2 %1417 }
 0x3f1   : > { %3850 = vmatpush.xpose.msk.msrb.mxu2 %vm506_vm0, %v1418_v61 }
 0x3f8   : > { %v1443_v53 = vpop.permute.xlu2 %1442 }
 0x3f9   : > { %3852 = vmatpush.xpose.msk.msrb.mxu3 %vm506_vm0, %v1443_v53 }
 0x400   : > { %v1518_v56 = vpop.permute.xlu2 %1517 }
 0x401   : > { %3858 = vmatpush.xpose.msk.msra.mxu2 %vm506_vm0, %v1518_v56 }
 0x408   : > { %v1390_v37 = vpop.permute.xlu2 %1389 }
 0x409   : > { %3848 = vmatpush.xpose.msk.msrb.mxu1 %vm506_vm0, %v1390_v37 }
 0x410   : > { %v1543_v27 = vpop.permute.xlu2 %1542 }
 0x414   : > { %v1273_v57 = vpop.f32.mrf.mxu2 }
 0x415   : > { %v1274_v59 = vadd.f32 %v4119_v4, %v1273_v57 }
 0x417   : > { %v1276_v1 = vadd.f32 %v1274_v59, %v4862_v6  ;;  %v1284_v6 = vadd.f32 %v4166_v63, %v1283_v21 }
 0x418   : > { %v1568_v31 = vpop.permute.xlu2 %1567 }
 0x419   : > { %v1277_v42 = vsel %vm506_vm0, %v1276_v1, 0.0  ;;  %v5172_v55 = vsel %vm1285_vm6, %v4166_v63, %v1284_v6 }
 0x41a   : > { %1278 = vadd.xlane.f32.xlu0 %v1277_v42 }
 0x420   : > { %v1823_v52 = vpop.permute.xlu2 %1822 }
 0x42e   : > { %1467 = vrot.lane.b32.xlu0 %v1375_v25, %s4611_s3 }
 0x436   : > { %1850 = vrot.lane.b32.xlu0 %v1382_v3, %s4612_s23 }
 0x48d   : > { %v1279_v44 = vpop.xlane.xlu0 %1278 }
 0x48e   : > { %v1287_v34 = vmul.f32 %v5172_v55, %v1279_v44 }
 0x490   : > { %v1288_v12 = vsub.f32 %v1276_v1, %v1287_v34 }
 0x492   : > { %v1289_v22 = vmul.f32 %v1288_v12, %v1288_v12 }
 0x494   : > { %v1290_v26 = vsel %vm506_vm0, %v1289_v22, 0.0 }
 0x495   : > { %1291 = vadd.xlane.f32.xlu1 %v1290_v26 }
 0x4a0   : > { %v1468_v2 = vpop.permute.xlu0 %1467 }
 0x4a1   : > { %3854 = vmatpush.xpose.msk.msrb.mxu0 %vm506_vm0, %v1468_v2 }
 0x4a5   : > { %3862 = vmatpush.xpose.msk.msra.mxu0 %vm506_vm0, %v1568_v31  ;;  %v1380_v31 = vmul.f32 %v5134_v54, %v4952_v60 }
 0x4a8   : > { %v1851_v61 = vpop.permute.xlu0 %1850 }
 0x4ae   : > { %1492 = vrot.lane.b32.xlu1 %v1376_v32, %s4611_s3  ;;  %v1385_v32 = vmul.f32 %v5134_v54, %v4964_v5 }
 0x508   : > { %v1292_v33 = vpop.xlane.xlu1 %1291 }
 0x509   : > { %v1293_v35 = vmul.f32 %v1292_v33, %v5172_v55  ;;  %v1383_v33 = vmul.f32 %v5134_v54, %v4972_v17 }
 0x50b   : > { %v1294_v36 = vadd.f32 1e-05, %v1293_v35 }
 0x50d   : > { %4167 = vrsqrt.f32 %v1294_v36  ;;  %vm1301_vm8 = vweird.f32 %v1294_v36 }
 0x513   : > { %v4168_v10 = vpop.eup %4167 }
 0x514   : > { %v1296_v38 = vmul.f32 %v4168_v10, %v1294_v36  ;;  %vm1302_vm7 = vweird.f32 %v4168_v10 }
 0x515   : > { %vm1303_vm9 = vmor %vm1301_vm8, %vm1302_vm7 }
 0x516   : > { %v1297_v18 = vmul.f32 %v4168_v10, %v1296_v38 }
 0x518   : > { %v1298_v30 = vmul.f32 0.5, %v1297_v18 }
 0x51a   : > { %v1299_v39 = vsub.f32 1.5, %v1298_v30 }
 0x51c   : > { %v1300_v40 = vmul.f32 %v4168_v10, %v1299_v39 }
 0x51e   : > { %v1304_v45 = vsel %vm1303_vm9, %v4168_v10, %v1300_v40 }
 0x51f   : > { %v1305_v47 = vmul.f32 %v1304_v45, %v1288_v12 }
 0x520   : > { %v1493_v48 = vpop.permute.xlu1 %1492 }
 0x521   : > { %v1310_v49 = vmul.f32 %v4120_v41, %v1305_v47  ;;  %3856 = vmatpush.xpose.msk.msra.mxu1 %vm506_vm0, %v1493_v48 }
 0x523   : > { %v5183_v50 = vadd.f32 %v4121_v46, %v1310_v49 }
 0x525   : > { %3846 = vmatmul.msk.f32.vlgmr.msra.gmra.mxu3 %vm506_vm0, %v5183_v50 }
 0x526   : > { %3860 = vmatpush.xpose.msk.msra.mxu3 %vm506_vm0, %v1543_v27 }
 0x5a8   : > { %v1346_v51 = vpop.f32.mrf.mxu3 }
 0x5a9   : > { %v1347_v15 = vadd.f32 %v5130_v43, %v1346_v51 }
 0x5ab   : > { %3849 = vmatmul.msk.f32.vlgmr.msrb.gmra.mxu1 %vm506_vm0, %v1347_v15  ;;  %3851 = vmatmul.msk.f32.vlgmr.msrb.gmra.mxu2 %vm506_vm0, %v1347_v15 }
 0x5ac   : > { %3853 = vmatmul.msk.f32.vlgmr.msrb.gmra.mxu3 %vm506_vm0, %v1347_v15  ;;  %3855 = vmatmul.msk.f32.vlgmr.msrb.gmra.mxu0 %vm506_vm0, %v1347_v15 }
 0x5ad   : > { %3866 = vmatpush.msk.msrb.mxu2 %vm1798_vm10, %v1823_v52  ;;  %3868 = vmatpush.msk.msrb.mxu3 %vm1798_vm10, %v1851_v61 }
 0x5b3   : > { %3857 = vmatmul.msk.f32.vlgmr.msra.gmra.mxu1 %vm506_vm0, %v1347_v15  ;;  %3859 = vmatmul.msk.f32.vlgmr.msra.gmra.mxu2 %vm506_vm0, %v1347_v15 }
 0x5b4   : > { %3861 = vmatmul.msk.f32.vlgmr.msra.gmra.mxu3 %vm506_vm0, %v1347_v15  ;;  %3863 = vmatmul.msk.f32.vlgmr.msra.gmra.mxu0 %vm506_vm0, %v1347_v15 }
 0x628   : > { %v1413_v43 = vpop.f32.mrf.mxu1 }
 0x629   : > { %v1591_v53 = vmul.f32 0.5, %v1413_v43  ;;  %v1488_v56 = vpop.f32.mrf.mxu0 }
 0x62a   : > { %v1594_v37 = vmul.f32 0.5, %v1488_v56 }
 0x62b   : > { %v1600_v4 = vsel %vm1599_vm11, %v1591_v53, -inf }
 0x62c   : > { %1601 = vmax.xlane.f32.xlu1 %v1600_v4  ;;  %v1609_v57 = vsel %vm1599_vm11, %v1594_v37, -inf }
 0x62d   : > { %1610 = vmax.xlane.f32.xlu2 %v1609_v57 }
 0x62e   : > { %v1438_v59 = vpop.f32.mrf.mxu2 }
 0x62f   : > { %v1463_v1 = vpop.f32.mrf.mxu3  ;;  %v1592_v42 = vmul.f32 0.5, %v1438_v59 }
 0x630   : > { %v1593_v25 = vmul.f32 0.5, %v1463_v1  ;;  %v1513_v3 = vpop.f32.mrf.mxu1 }
 0x631   : > { %v1595_v62 = vmul.f32 0.5, %v1513_v3  ;;  %v1603_v11 = vsel %vm1599_vm11, %v1592_v42, -inf  ;;  %v1588_v21 = vpop.f32.mrf.mxu0 }
 0x632   : > { %v1606_v63 = vsel %vm1599_vm11, %v1593_v25, -inf  ;;  %v1598_v44 = vmul.f32 0.5, %v1588_v21 }
 0x633   : > { %1607 = vmax.xlane.f32.xlu0 %v1606_v63  ;;  %v1612_v7 = vsel %vm1599_vm11, %v1595_v62, -inf }
 0x634   : > { %1613 = vmax.xlane.f32.xlu1 %v1612_v7  ;;  %v1621_v22 = vsel %vm1599_vm11, %v1598_v44, -inf }
 0x635   : > { %1604 = vmax.xlane.f32.xlu2 %v1603_v11 }
 0x636   : > { %v1538_v26 = vpop.f32.mrf.mxu2 }
 0x637   : > { %v1563_v6 = vpop.f32.mrf.mxu3  ;;  %v1596_v27 = vmul.f32 0.5, %v1538_v26 }
 0x638   : > { %v1597_v34 = vmul.f32 0.5, %v1563_v6 }
 0x639   : > { %v1615_v2 = vsel %vm1599_vm11, %v1596_v27, -inf }
 0x63a   : > { %v1618_v12 = vsel %vm1599_vm11, %v1597_v34, -inf }
 0x63b   : > { %1619 = vmax.xlane.f32.xlu0 %v1618_v12 }
 0x63d   : > { %1622 = vmax.xlane.f32.xlu2 %v1621_v22 }
 0x645   : > { %1616 = vmax.xlane.f32.xlu2 %v1615_v2 }
 0x64d   : > { %1793 = vrot.lane.b32.xlu1 %v1380_v31, %s4612_s23 }
 0x64f   : > { %1934 = vrot.lane.b32.xlu0 %v1385_v32, %s4612_s23  ;;  %v1384_v32 = vmul.f32 %v5134_v54, %v4966_v8 }
 0x65d   : > { %1878 = vrot.lane.b32.xlu2 %v1383_v33, %s4612_s23  ;;  %v1387_v33 = vmul.f32 %v5134_v54, %v5005_v0 }
 0x69f   : > { %v1602_v35 = vpop.xlane.xlu1 %1601 }
 0x6a0   : > { %v1624_v36 = vsub.f32 %v1591_v53, %v1602_v35  ;;  %v1611_v10 = vpop.xlane.xlu2 %1610  ;;  %v1386_v35 = vmul.f32 %v5134_v54, %v4974_v20 }
 0x6a1   : > { %v1627_v38 = vsub.f32 %v1594_v37, %v1611_v10 }
 0x6a2   : > { %v1632_v18 = vmul.f32 1.442695, %v1624_v36 }
 0x6a3   : > { %v1638_v30 = vmul.f32 1.442695, %v1627_v38 }
 0x6a4   : > { %4169 = vpow2.f32 %v1632_v18 }
 0x6a5   : > { %4171 = vpow2.f32 %v1638_v30 }
 0x6a6   : > { %v1608_v39 = vpop.xlane.xlu0 %1607 }
 0x6a7   : > { %v1626_v40 = vsub.f32 %v1593_v25, %v1608_v39  ;;  %v1614_v41 = vpop.xlane.xlu1 %1613 }
 0x6a8   : > { %v1605_v45 = vpop.xlane.xlu2 %1604  ;;  %v1628_v49 = vsub.f32 %v1595_v62, %v1614_v41 }
 0x6a9   : > { %v1636_v47 = vmul.f32 1.442695, %v1626_v40  ;;  %v1625_v46 = vsub.f32 %v1592_v42, %v1605_v45 }
 0x6aa   : > { %v5216_v48 = vpop.eup %4169  ;;  %v1640_v43 = vmul.f32 1.442695, %v1628_v49 }
 0x6ab   : > { %v5218_v51 = vpop.eup %4171  ;;  %4173 = vpow2.f32 %v1636_v47  ;;  %v1634_v15 = vmul.f32 1.442695, %v1625_v46  ;;  %v1648_v52 = vsel %vm1599_vm11, %v5216_v48, 0.0 }
 0x6ac   : > { %v1657_v61 = vsel %vm1599_vm11, %v5218_v51, 0.0  ;;  %1649 = vadd.xlane.f32.xlu2 %v1648_v52 }
 0x6ad   : > { %4175 = vpow2.f32 %v1634_v15  ;;  %1658 = vadd.xlane.f32.xlu1 %v1657_v61 }
 0x6ae   : > { %v1620_v53 = vpop.xlane.xlu0 %1619  ;;  %4177 = vpow2.f32 %v1640_v43 }
 0x6af   : > { %v1630_v56 = vsub.f32 %v1597_v34, %v1620_v53 }
 0x6b0   : > { %v1623_v37 = vpop.xlane.xlu2 %1622 }
 0x6b1   : > { %v5224_v4 = vpop.eup %4173  ;;  %v1644_v57 = vmul.f32 1.442695, %v1630_v56  ;;  %v1631_v59 = vsub.f32 %v1598_v44, %v1623_v37 }
 0x6b2   : > { %v1654_v3 = vsel %vm1599_vm11, %v5224_v4, 0.0 }
 0x6b3   : > { %v5226_v1 = vpop.eup %4175  ;;  %4179 = vpow2.f32 %v1644_v57  ;;  %v1646_v42 = vmul.f32 1.442695, %v1631_v59 }
 0x6b4   : > { %v1651_v25 = vsel %vm1599_vm11, %v5226_v1, 0.0  ;;  %v5232_v62 = vpop.eup %4177 }
 0x6b5   : > { %4181 = vpow2.f32 %v1646_v42  ;;  %1652 = vadd.xlane.f32.xlu0 %v1651_v25  ;;  %1655 = vadd.xlane.f32.xlu1 %v1654_v3  ;;  %v1660_v34 = vsel %vm1599_vm11, %v5232_v62, 0.0 }
 0x6b8   : > { %v1617_v63 = vpop.xlane.xlu2 %1616 }
 0x6b9   : > { %v5234_v7 = vpop.eup %4179  ;;  %v1629_v11 = vsub.f32 %v1596_v27, %v1617_v63 }
 0x6ba   : > { %v1666_v21 = vsel %vm1599_vm11, %v5234_v7, 0.0 }
 0x6bb   : > { %v5238_v6 = vpop.eup %4181  ;;  %v1642_v44 = vmul.f32 1.442695, %v1629_v11  ;;  %1667 = vadd.xlane.f32.xlu2 %v1666_v21 }
 0x6bc   : > { %v1669_v12 = vsel %vm1599_vm11, %v5238_v6, 0.0 }
 0x6bd   : > { %4183 = vpow2.f32 %v1642_v44  ;;  %1661 = vadd.xlane.f32.xlu0 %v1660_v34  ;;  %1670 = vadd.xlane.f32.xlu1 %v1669_v12 }
 0x6bf   : > { %v1794_v22 = vpop.permute.xlu1 %1793 }
 0x6c0   : > { %v1879_v26 = vpop.permute.xlu2 %1878  ;;  %3864 = vmatpush.msk.msrb.mxu1 %vm1798_vm10, %v1794_v22 }
 0x6c1   : > { %3870 = vmatpush.msk.msrb.mxu0 %vm1798_vm10, %v1879_v26  ;;  %v1935_v27 = vpop.permute.xlu0 %1934 }
 0x6c2   : > { %3874 = vmatpush.msk.msra.mxu2 %vm1798_vm10, %v1935_v27 }
 0x6c3   : > { %v5247_v2 = vpop.eup %4183 }
 0x6c4   : > { %v1663_v31 = vsel %vm1599_vm11, %v5247_v2, 0.0 }
 0x6c5   : > { %1664 = vadd.xlane.f32.xlu0 %v1663_v31 }
 0x6d3   : > { %1906 = vrot.lane.b32.xlu2 %v1384_v32, %s4612_s23 }
 0x6d6   : > { %1990 = vrot.lane.b32.xlu1 %v1387_v33, %s4612_s23 }
 0x6d9   : > { %1962 = vrot.lane.b32.xlu0 %v1386_v35, %s4612_s23 }
 0x71f   : > { %v1650_v36 = vpop.xlane.xlu2 %1649 }
 0x720   : > { %v1659_v10 = vpop.xlane.xlu1 %1658  ;;  %4185 = vrcp.f32 %v1650_v36  ;;  %v1681_v49 = vand.u32 2147483647, %v1650_v36  ;;  %v1683_v15 = vand.u32 2147483648, %v1650_v36  ;;  %vm1677_vm14 = vweird.f32 %v1650_v36 }
 0x721   : > { %4187 = vrcp.f32 %v1659_v10  ;;  %v1726_v52 = vand.u32 2147483647, %v1659_v10  ;;  %v1728_v53 = vand.u32 2147483648, %v1659_v10  ;;  %vm1722_vm2 = vweird.f32 %v1659_v10 }
 0x722   : > { %vm5274_vm15 = vcmp.eq.f32.partialorder %v1681_v49, 8.507059e+37  ;;  %v1684_v3 = vor.u32 1.1754944e-38, %v1683_v15 }
 0x723   : > { %vm1727_vm5 = vcmp.eq.f32.partialorder %v1726_v52, 8.507059e+37  ;;  %v1729_v22 = vor.u32 1.1754944e-38, %v1728_v53 }
 0x726   : > { %v4186_v38 = vpop.eup %4185 }
 0x727   : > { %v4188_v18 = vpop.eup %4187  ;;  %v1673_v30 = vmul.f32 %v4186_v38, %v1650_v36  ;;  %vm1678_vm12 = vweird.f32 %v4186_v38 }
 0x728   : > { %v1718_v39 = vmul.f32 %v4188_v18, %v1659_v10  ;;  %v1656_v40 = vpop.xlane.xlu1 %1655  ;;  %v5260_v41 = vpop.xlane.xlu0 %1652  ;;  %vm1723_vm13 = vweird.f32 %v4188_v18  ;;  %vm5265_vm3 = vmor %vm1677_vm14, %vm1678_vm12 }
 0x729   : > { %v1674_v45 = vsub.f32 1.0, %v1673_v30  ;;  %4189 = vrcp.f32 %v1656_v40  ;;  %vm5270_vm4 = vmor %vm1722_vm2, %vm1723_vm13  ;;  %v1711_v27 = vand.u32 2147483647, %v1656_v40  ;;  %v1713_v31 = vand.u32 2147483648, %v1656_v40 }
 0x72a   : > { %v1719_v47 = vsub.f32 1.0, %v1718_v39  ;;  %4191 = vrcp.f32 %v5260_v41  ;;  %v1698_v33 = vand.u32 2147483648, %v5260_v41  ;;  %v1696_v30 = vand.u32 2147483647, %v5260_v41 }
 0x72b   : > { %v1675_v46 = vmul.f32 %v4186_v38, %v1674_v45  ;;  %vm1707_vm8 = vweird.f32 %v1656_v40  ;;  %vm1692_vm12 = vweird.f32 %v5260_v41  ;;  %vm1712_vm13 = vcmp.eq.f32.partialorder %v1711_v27, 8.507059e+37 }
 0x72c   : > { %v1720_v54 = vmul.f32 %v4188_v18, %v1719_v47  ;;  %vm1697_vm2 = vcmp.eq.f32.partialorder %v1696_v30, 8.507059e+37 }
 0x72d   : > { %v1676_v61 = vadd.f32 %v4186_v38, %v1675_v46 }
 0x72e   : > { %v1721_v43 = vadd.f32 %v4188_v18, %v1720_v54  ;;  %v5263_v56 = vpop.xlane.xlu2 %1667 }
 0x72f   : > { %v4190_v37 = vpop.eup %4189  ;;  %4193 = vrcp.f32 %v5263_v56  ;;  %v1680_v34 = vsel %vm5265_vm3, %v4186_v38, %v1676_v61  ;;  %v1714_v61 = vor.u32 1.1754944e-38, %v1713_v31 }
 0x730   : > { %v4192_v59 = vpop.eup %4191  ;;  %v1703_v63 = vmul.f32 %v4190_v37, %v1656_v40  ;;  %v5278_v11 = vpop.xlane.xlu1 %1670  ;;  %v1725_v44 = vsel %vm5270_vm4, %v4188_v18, %v1721_v43  ;;  %v1685_v36 = vsel %vm5274_vm15, %v1684_v3, %v1680_v34  ;;  %vm1708_vm6 = vweird.f32 %v4190_v37 }
 0x731   : > { %v5280_v21 = vpop.xlane.xlu0 %1661  ;;  %v1688_v12 = vmul.f32 %v4192_v59, %v5260_v41  ;;  %4195 = vrcp.f32 %v5278_v11  ;;  %v1730_v35 = vsel %vm1727_vm5, %v1729_v22, %v1725_v44  ;;  %vm1693_vm7 = vweird.f32 %v4192_v59  ;;  %vm5297_vm9 = vmor %vm1707_vm8, %vm1708_vm6 }
 0x732   : > { %v1704_v26 = vsub.f32 1.0, %v1703_v63  ;;  %4197 = vrcp.f32 %v5280_v21  ;;  %v1686_v49 = vmul.f32 %v5216_v48, %v1685_v36  ;;  %v1731_v15 = vmul.f32 %v5218_v51, %v1730_v35  ;;  %vm1694_vm14 = vmor %vm1692_vm12, %vm1693_vm7 }
 0x733   : > { %v1689_v32 = vsub.f32 1.0, %v1688_v12  ;;  %v1699_v43 = vor.u32 1.1754944e-38, %v1698_v33  ;;  %v1743_v44 = vand.u32 2147483648, %v5280_v21  ;;  %v1741_v27 = vand.u32 2147483647, %v5280_v21 }
 0x734   : > { %v1705_v10 = vmul.f32 %v4190_v37, %v1704_v26  ;;  %3865 = vmatmul.msk.f32.vlgmr.msrb.gmra.mxu1 %vm1599_vm11, %v1686_v49  ;;  %3871 = vmatmul.msk.f32.vlgmr.msrb.gmra.mxu0 %vm1599_vm11, %v1731_v15  ;;  %vm1782_vm15 = vweird.f32 %v5278_v11  ;;  %v1786_v33 = vand.u32 2147483647, %v5278_v11  ;;  %vm1737_vm6 = vweird.f32 %v5280_v21 }
 0x735   : > { %v5292_v38 = vpop.eup %4193  ;;  %v1690_v18 = vmul.f32 %v4192_v59, %v1689_v32  ;;  %v1788_v32 = vand.u32 2147483648, %v5278_v11  ;;  %vm1767_vm12 = vweird.f32 %v5263_v56 }
 0x736   : > { %v1706_v39 = vadd.f32 %v4190_v37, %v1705_v10  ;;  %v1763_v45 = vmul.f32 %v5292_v38, %v5263_v56  ;;  %v1907_v47 = vpop.permute.xlu2 %1906  ;;  %vm1768_vm7 = vweird.f32 %v5292_v38  ;;  %v1773_v10 = vand.u32 2147483648, %v5263_v56 }
 0x737   : > { %v1691_v54 = vadd.f32 %v4192_v59, %v1690_v18  ;;  %3872 = vmatpush.msk.msra.mxu1 %vm1798_vm10, %v1907_v47  ;;  %v4196_v52 = vpop.eup %4195  ;;  %v1744_v18 = vor.u32 1.1754944e-38, %v1743_v44 }
 0x738   : > { %v1710_v40 = vsel %vm5297_vm9, %v4190_v37, %v1706_v39  ;;  %v4198_v57 = vpop.eup %4197  ;;  %v1764_v41 = vsub.f32 1.0, %v1763_v45  ;;  %v1778_v48 = vmul.f32 %v4196_v52, %v5278_v11  ;;  %vm1783_vm3 = vweird.f32 %v4196_v52 }
 0x739   : > { %v5308_v53 = vpop.xlane.xlu0 %1664  ;;  %v1695_v42 = vsel %vm1694_vm14, %v4192_v59, %v1691_v54  ;;  %v1715_v51 = vsel %vm1712_vm13, %v1714_v61, %v1710_v40  ;;  %v1733_v37 = vmul.f32 %v4198_v57, %v5280_v21  ;;  %vm1738_vm4 = vweird.f32 %v4198_v57  ;;  %vm5324_vm5 = vmor %vm1782_vm15, %vm1783_vm3 }
 0x73a   : > { %v1700_v25 = vsel %vm1697_vm2, %v1699_v43, %v1695_v42  ;;  %v1779_v3 = vsub.f32 1.0, %v1778_v48  ;;  %4199 = vrcp.f32 %v5308_v53  ;;  %v1765_v34 = vmul.f32 %v5292_v38, %v1764_v41  ;;  %vm1739_vm8 = vmor %vm1737_vm6, %vm1738_vm4 }
 0x73b   : > { %v1734_v63 = vsub.f32 1.0, %v1733_v37  ;;  %v1701_v59 = vmul.f32 %v5226_v1, %v1700_v25  ;;  %v1716_v22 = vmul.f32 %v5224_v4, %v1715_v51  ;;  %vm1742_vm9 = vcmp.eq.f32.partialorder %v1741_v27, 8.507059e+37  ;;  %vm1769_vm13 = vmor %vm1767_vm12, %vm1768_vm7 }
 0x73c   : > { %v1780_v12 = vmul.f32 %v4196_v52, %v1779_v3  ;;  %v1766_v36 = vadd.f32 %v5292_v38, %v1765_v34  ;;  %v1771_v21 = vand.u32 2147483647, %v5263_v56  ;;  %v1789_v45 = vor.u32 1.1754944e-38, %v1788_v32  ;;  %v2034_v3 = vld [vmem:[#allocation11 + $0x28] sm:$0xff] }
 0x73d   : > { %v1735_v26 = vmul.f32 %v4198_v57, %v1734_v63  ;;  %3867 = vmatmul.msk.f32.vlgmr.msrb.gmra.mxu2 %vm1599_vm11, %v1701_v59  ;;  %3869 = vmatmul.msk.f32.vlgmr.msrb.gmra.mxu3 %vm1599_vm11, %v1716_v22  ;;  %vm1787_vm14 = vcmp.eq.f32.partialorder %v1786_v33, 8.507059e+37  ;;  %v1774_v40 = vor.u32 1.1754944e-38, %v1773_v10  ;;  %v1756_v43 = vand.u32 2147483647, %v5308_v53  ;;  %v2033_v63 = vld [vmem:[#allocation11 + $0x20] sm:$0xff] }
 0x73e   : > { %v1781_v31 = vadd.f32 %v4196_v52, %v1780_v12  ;;  %v1770_v49 = vsel %vm1769_vm13, %v5292_v38, %v1766_v36  ;;  %vm1772_vm3 = vcmp.eq.f32.partialorder %v1771_v21, 8.507059e+37  ;;  %vm1752_vm4 = vweird.f32 %v5308_v53 }
 0x73f   : > { %v1736_v4 = vadd.f32 %v4198_v57, %v1735_v26  ;;  %v1775_v56 = vsel %vm1772_vm3, %v1774_v40, %v1770_v49 }
 0x740   : > { %v4200_v35 = vpop.eup %4199  ;;  %v1785_v30 = vsel %vm5324_vm5, %v4196_v52, %v1781_v31  ;;  %v1758_v52 = vand.u32 2147483648, %v5308_v53  ;;  %vm1757_vm5 = vcmp.eq.f32.partialorder %v1756_v43, 8.507059e+37  ;;  %v1776_v25 = vmul.f32 %v5234_v7, %v1775_v56 }
 0x741   : > { %v1740_v39 = vsel %vm1739_vm8, %v4198_v57, %v1736_v4  ;;  %v1748_v11 = vmul.f32 %v4200_v35, %v5308_v53  ;;  %v1790_v15 = vsel %vm1787_vm14, %v1789_v45, %v1785_v30  ;;  %vm1753_vm2 = vweird.f32 %v4200_v35  ;;  %v2035_v53 = vld [vmem:[#allocation11 + $0x30] sm:$0xff] }
 0x742   : > { %v1745_v47 = vsel %vm1742_vm9, %v1744_v18, %v1740_v39  ;;  %vm1754_vm15 = vmor %vm1752_vm4, %vm1753_vm2  ;;  %v1759_v38 = vor.u32 1.1754944e-38, %v1758_v52 }
 0x743   : > { %v1749_v46 = vsub.f32 1.0, %v1748_v11  ;;  %v1746_v54 = vmul.f32 %v5232_v62, %v1745_v47  ;;  %v1791_v62 = vmul.f32 %v5238_v6, %v1790_v15  ;;  %v2036_v6 = vld [vmem:[#allocation11 + $0x38] sm:$0xff] }
 0x744   : > { %2057 = vmatpush.msrb.mxu1 %v2036_v6  ;;  %v4122_v47 = vld [vmem:[%s5909_s6 + $0x1] ss:$0 sm:$0xff] }
 0x745   : > { %v1750_v61 = vmul.f32 %v4200_v35, %v1749_v46  ;;  %3873 = vmatmul.msk.f32.vlgmr.msra.gmra.mxu1 %vm1599_vm11, %v1746_v54 }
 0x746   : > { %2058 = vmatpush.msrb.mxu1 %v2035_v53 }
 0x747   : > { %v1751_v57 = vadd.f32 %v4200_v35, %v1750_v61 }
 0x748   : > { %v1991_v42 = vpop.permute.xlu1 %1990  ;;  %2059 = vmatpush.msrb.mxu1 %v2034_v3 }
 0x749   : > { %3878 = vmatpush.msk.msra.mxu0 %vm1798_vm10, %v1991_v42  ;;  %v1755_v41 = vsel %vm1754_vm15, %v4200_v35, %v1751_v57  ;;  %v2104_v57 = vld [vmem:[#allocation8 + $0x58] sm:$0xff]  ;;  %v2103_v42 = vld [vmem:[#allocation8 + $0x50] sm:$0xff] }
 0x74a   : > { %3879 = vmatmul.msk.f32.vlgmr.msra.gmra.mxu0 %vm1599_vm11, %v1791_v62  ;;  %v1760_v48 = vsel %vm1757_vm5, %v1759_v38, %v1755_v41  ;;  %2060 = vmatpush.msrb.mxu1 %v2033_v63  ;;  %v2102_v62 = vld [vmem:[#allocation8 + $0x48] sm:$0xff]  ;;  %v2101_v38 = vld [vmem:[#allocation8 + $0x40] sm:$0xff] }
 0x74b   : > { %v1963_v51 = vpop.permute.xlu0 %1962  ;;  %v1761_v37 = vmul.f32 %v5247_v2, %v1760_v48  ;;  %2125 = vmatpush.msrb.mxu2 %v2104_v57  ;;  %v4123_v63 = vld [vmem:[#allocation13 + $0x1] ss:$0 sm:$0xff] }
 0x74c   : > { %3876 = vmatpush.msk.msra.mxu3 %vm1798_vm10, %v1963_v51 }
 0x74d   : > { %3877 = vmatmul.msk.f32.vlgmr.msra.gmra.mxu3 %vm1599_vm11, %v1776_v25  ;;  %3875 = vmatmul.msk.f32.vlgmr.msra.gmra.mxu2 %vm1599_vm11, %v1761_v37 }
 0x74e   : > { %2126 = vmatpush.msrb.mxu2 %v2103_v42 }
 0x750   : > { %2127 = vmatpush.msrb.mxu2 %v2102_v62 }
 0x752   : > { %2128 = vmatpush.msrb.mxu2 %v2101_v38 }
 0x7b1   : > { %v1818_v44 = vpop.f32.mrf.mxu1  ;;  %v1902_v26 = vpop.f32.mrf.mxu0 }
 0x7b2   : > { %v2017_v2 = vsel %vm506_vm0, %v1818_v44, 0.0  ;;  %v2022_v31 = vsel %vm506_vm0, %v1902_v26, 0.0 }
 0x7c0   : > { %v1846_v59 = vpop.f32.mrf.mxu2  ;;  %v1874_v12 = vpop.f32.mrf.mxu3 }
 0x7c1   : > { %v2018_v7 = vsel %vm506_vm0, %v1846_v59, 0.0  ;;  %v2020_v22 = vsel %vm506_vm0, %v1874_v12, 0.0  ;;  %v4125_v12 = vld [vmem:[#allocation10 + $0x2] ss:$0 sm:$0xff] }
 0x7c2   : > { %v2019_v34 = vadd.f32 %v2018_v7, %v2017_v2  ;;  %v1930_v32 = vpop.f32.mrf.mxu1  ;;  %v4124_v7 = vld [vmem:[#allocation14 + $0x1] ss:$0 sm:$0xff] }
 0x7c3   : > { %v2024_v33 = vsel %vm506_vm0, %v1930_v32, 0.0 }
 0x7c4   : > { %v2021_v27 = vadd.f32 %v2020_v22, %v2019_v34 }
 0x7c6   : > { %v2023_v1 = vadd.f32 %v2022_v31, %v2021_v27 }
 0x7c7   : > { %v2014_v30 = vpop.f32.mrf.mxu0 }
 0x7c8   : > { %v2025_v35 = vadd.f32 %v2024_v33, %v2023_v1  ;;  %v2030_v21 = vsel %vm506_vm0, %v2014_v30, 0.0 }
 0x7d0   : > { %v1986_v4 = vpop.f32.mrf.mxu3  ;;  %v1958_v36 = vpop.f32.mrf.mxu2 }
 0x7d1   : > { %v2026_v10 = vsel %vm506_vm0, %v1958_v36, 0.0  ;;  %v2028_v18 = vsel %vm506_vm0, %v1986_v4, 0.0 }
 0x7d2   : > { %v2027_v39 = vadd.f32 %v2026_v10, %v2025_v35 }
 0x7d4   : > { %v2029_v11 = vadd.f32 %v2028_v18, %v2027_v39 }
 0x7d6   : > { %v2031_v45 = vadd.f32 %v2030_v21, %v2029_v11 }
 0x7d8   : > { %3881 = vmatmul.msk.f32.vlgmr.msrb.gmra.mxu1 %vm506_vm0, %v2031_v45 }
 0x855   : > { %v2062_v46 = vpop.f32.mrf.mxu1 }
 0x856   : > { %v2063_v54 = vadd.f32 %v4122_v47, %v2062_v46 }
 0x858   : > { %v2065_v49 = vadd.f32 %v2063_v54, %v5183_v50 }
 0x85a   : > { %v2066_v15 = vsel %vm506_vm0, %v2065_v49, 0.0 }
 0x85b   : > { %2067 = vadd.xlane.f32.xlu0 %v2066_v15 }
 0x8ce   : > { %v2068_v52 = vpop.xlane.xlu0 %2067 }
 0x8cf   : > { %v2069_v40 = vmul.f32 %v2068_v52, %v5172_v55 }
 0x8d1   : > { %v2070_v61 = vsub.f32 %v2065_v49, %v2069_v40 }
 0x8d3   : > { %v2071_v43 = vmul.f32 %v2070_v61, %v2070_v61 }
 0x8d5   : > { %v2072_v56 = vsel %vm506_vm0, %v2071_v43, 0.0 }
 0x8d6   : > { %2073 = vadd.xlane.f32.xlu2 %v2072_v56 }
 0x949   : > { %v2074_v50 = vpop.xlane.xlu2 %2073 }
 0x94a   : > { %v2075_v41 = vmul.f32 %v2074_v50, %v5172_v55 }
 0x94c   : > { %v2076_v48 = vadd.f32 1e-05, %v2075_v41 }
 0x94e   : > { %4201 = vrsqrt.f32 %v2076_v48  ;;  %vm2083_vm7 = vweird.f32 %v2076_v48 }
 0x954   : > { %v4202_v51 = vpop.eup %4201 }
 0x955   : > { %v2078_v25 = vmul.f32 %v4202_v51, %v2076_v48  ;;  %vm2084_vm6 = vweird.f32 %v4202_v51 }
 0x956   : > { %vm2085_vm8 = vmor %vm2083_vm7, %vm2084_vm6 }
 0x957   : > { %v2079_v37 = vmul.f32 %v4202_v51, %v2078_v25 }
 0x959   : > { %v2080_v6 = vmul.f32 0.5, %v2079_v37 }
 0x95b   : > { %v2081_v53 = vsub.f32 1.5, %v2080_v6 }
 0x95d   : > { %v2082_v3 = vmul.f32 %v4202_v51, %v2081_v53 }
 0x95f   : > { %v2086_v44 = vsel %vm2085_vm8, %v4202_v51, %v2082_v3 }
 0x960   : > { %v2087_v59 = vmul.f32 %v2086_v44, %v2070_v61 }
 0x962   : > { %v2093_v2 = vmul.f32 %v4123_v63, %v2087_v59 }
 0x964   : > { %v5370_v34 = vadd.f32 %v4124_v7, %v2093_v2 }
 0x966   : > { %3882 = vmatmul.msk.f32.vlgmr.msrb.gmra.mxu2 %vm506_vm0, %v5370_v34 }
 0x9e9   : > { %v2130_v22 = vpop.f32.mrf.mxu2 }
 0x9ea   : > { %v5374_v26 = vadd.f32 %v4125_v12, %v2130_v22 }
 0x9ec   : > { %v2139_v27 = vmul.f32 %v5374_v26, %v4901_v28  ;;  %v2135_v31 = vmul.f32 %v5374_v26, %v4877_v19  ;;  %v2133_v32 = vmul.f32 %v5374_v26, %v4871_v14  ;;  %v2136_v1 = vmul.f32 %v5374_v26, %v4890_v24 }
 0x9ed   : > { %v2137_v33 = vmul.f32 %v5374_v26, %v4887_v23  ;;  %v2134_v4 = vmul.f32 %v5374_v26, %v4869_v13  ;;  %v2140_v35 = vmul.f32 %v5374_v26, %v4903_v29  ;;  %v2138_v36 = vmul.f32 %v5374_v26, %v4873_v16 }
 0x9ee   : > { %2303 = vrot.lane.b32.xlu2 %v2139_v27, %s4611_s3  ;;  %2203 = vrot.lane.b32.xlu0 %v2135_v31, %s4611_s3 }
 0x9ef   : > { %2150 = vrot.lane.b32.xlu1 %v2133_v32, %s4611_s3 }
 0x9f7   : > { %2228 = vrot.lane.b32.xlu1 %v2136_v1, %s4611_s3 }
 0x9ff   : > { %2253 = vrot.lane.b32.xlu1 %v2137_v33, %s4611_s3 }
 0xa07   : > { %2178 = vrot.lane.b32.xlu1 %v2134_v4, %s4611_s3 }
 0xa0f   : > { %2328 = vrot.lane.b32.xlu1 %v2140_v35, %s4611_s3 }
 0xa17   : > { %2278 = vrot.lane.b32.xlu1 %v2138_v36, %s4611_s3 }
 0xa48   : > { %v2304_v18 = vpop.permute.xlu2 %2303 }
 0xa60   : > { %v2204_v10 = vpop.permute.xlu0 %2203 }
 0xa61   : > { %v2151_v30 = vpop.permute.xlu1 %2150  ;;  %3887 = vmatpush.xpose.msk.msra.mxu1 %vm506_vm0, %v2204_v10 }
 0xa62   : > { %3883 = vmatpush.xpose.msk.msrb.mxu3 %vm506_vm0, %v2151_v30 }
 0xa64   : > { %3888 = vmatmul.msk.f32.vlgmr.msra.gmra.mxu1 %vm506_vm0, %v5374_v26 }
 0xa65   : > { %3895 = vmatpush.xpose.msk.msrb.mxu1 %vm506_vm0, %v2304_v18  ;;  %3884 = vmatmul.msk.f32.vlgmr.msrb.gmra.mxu3 %vm506_vm0, %v5374_v26 }
 0xa69   : > { %v2229_v39 = vpop.permute.xlu1 %2228 }
 0xa6a   : > { %3889 = vmatpush.xpose.msk.msra.mxu2 %vm506_vm0, %v2229_v39 }
 0xa6c   : > { %3896 = vmatmul.msk.f32.vlgmr.msrb.gmra.mxu1 %vm506_vm0, %v5374_v26 }
 0xa6d   : > { %3890 = vmatmul.msk.f32.vlgmr.msra.gmra.mxu2 %vm506_vm0, %v5374_v26 }
 0xa71   : > { %v2254_v11 = vpop.permute.xlu1 %2253 }
 0xa72   : > { %3891 = vmatpush.xpose.msk.msra.mxu3 %vm506_vm0, %v2254_v11 }
 0xa75   : > { %3892 = vmatmul.msk.f32.vlgmr.msra.gmra.mxu3 %vm506_vm0, %v5374_v26 }
 0xa79   : > { %v2179_v21 = vpop.permute.xlu1 %2178 }
 0xa7a   : > { %3885 = vmatpush.xpose.msk.msrb.mxu0 %vm506_vm0, %v2179_v21 }
 0xa7d   : > { %3886 = vmatmul.msk.f32.vlgmr.msrb.gmra.mxu0 %vm506_vm0, %v5374_v26 }
 0xa81   : > { %v2329_v45 = vpop.permute.xlu1 %2328 }
 0xa82   : > { %3897 = vmatpush.xpose.msk.msrb.mxu2 %vm506_vm0, %v2329_v45 }
 0xa85   : > { %3898 = vmatmul.msk.f32.vlgmr.msrb.gmra.mxu2 %vm506_vm0, %v5374_v26 }
 0xa89   : > { %v2279_v47 = vpop.permute.xlu1 %2278 }
 0xa8a   : > { %3893 = vmatpush.xpose.msk.msra.mxu0 %vm506_vm0, %v2279_v47 }
 0xa8d   : > { %3894 = vmatmul.msk.f32.vlgmr.msra.gmra.mxu0 %vm506_vm0, %v5374_v26 }
 0xae1   : > { %v2224_v46 = vpop.f32.mrf.mxu1 }
 0xae2   : > { %v2354_v54 = vmul.f32 0.5, %v2224_v46 }
 0xae4   : > { %v2366_v49 = vsel %vm821_vm1, %v2354_v54, -inf }
 0xae5   : > { %2367 = vmax.xlane.f32.xlu1 %v2366_v49 }
 0xae8   : > { %v2174_v15 = vpop.f32.mrf.mxu3 }
 0xae9   : > { %v2352_v52 = vmul.f32 0.5, %v2174_v15  ;;  %v2324_v41 = vpop.f32.mrf.mxu1 }
 0xaea   : > { %v2358_v51 = vmul.f32 0.5, %v2324_v41 }
 0xaeb   : > { %v2360_v40 = vsel %vm821_vm1, %v2352_v52, -inf }
 0xaec   : > { %v2378_v25 = vsel %vm821_vm1, %v2358_v51, -inf }
 0xaed   : > { %2361 = vmax.xlane.f32.xlu1 %v2360_v40 }
 0xaf0   : > { %v2249_v61 = vpop.f32.mrf.mxu2 }
 0xaf1   : > { %v2355_v43 = vmul.f32 0.5, %v2249_v61 }
 0xaf3   : > { %v2369_v56 = vsel %vm821_vm1, %v2355_v43, -inf }
 0xaf4   : > { %2370 = vmax.xlane.f32.xlu0 %v2369_v56 }
 0xaf8   : > { %v2274_v57 = vpop.f32.mrf.mxu3 }
 0xaf9   : > { %v5427_v42 = vmul.f32 0.5, %v2274_v57 }
 0xafa   : > { %v2199_v62 = vpop.f32.mrf.mxu0 }
 0xafb   : > { %v2353_v38 = vmul.f32 0.5, %v2199_v62  ;;  %v2372_v50 = vsel %vm821_vm1, %v5427_v42, -inf }
 0xafc   : > { %2373 = vmax.xlane.f32.xlu1 %v2372_v50 }
 0xafd   : > { %v2363_v48 = vsel %vm821_vm1, %v2353_v38, -inf }
 0xafe   : > { %2364 = vmax.xlane.f32.xlu2 %v2363_v48 }
 0xb04   : > { %2379 = vmax.xlane.f32.xlu1 %v2378_v25 }
 0xb08   : > { %v2349_v37 = vpop.f32.mrf.mxu2 }
 0xb09   : > { %v2359_v6 = vmul.f32 0.5, %v2349_v37 }
 0xb0a   : > { %v2299_v53 = vpop.f32.mrf.mxu0 }
 0xb0b   : > { %v2357_v3 = vmul.f32 0.5, %v2299_v53  ;;  %v2381_v63 = vsel %vm821_vm1, %v2359_v6, -inf  ;;  %v2148_v53 = vmul.f32 %v5374_v26, %v5005_v0 }
 0xb0c   : > { %2382 = vmax.xlane.f32.xlu0 %v2381_v63  ;;  %v2141_v63 = vmul.f32 %v5374_v26, %v4952_v60 }
 0xb0d   : > { %v2375_v44 = vsel %vm821_vm1, %v2357_v3, -inf }
 0xb0e   : > { %2376 = vmax.xlane.f32.xlu2 %v2375_v44  ;;  %v2144_v44 = vmul.f32 %v5374_v26, %v4972_v17 }
 0xb58   : > { %v2368_v59 = vpop.xlane.xlu1 %2367 }
 0xb59   : > { %v2386_v7 = vsub.f32 %v2354_v54, %v2368_v59  ;;  %v4089_v59 = vpack.i.bf16 %v2144_v44, %v2141_v63 }
 0xb5b   : > { %v2396_v2 = vmul.f32 1.442695, %v2386_v7  ;;  %v2142_v7 = vmul.f32 %v5374_v26, %v4950_v58 }
 0xb5d   : > { %4203 = vpow2.f32 %v2396_v2  ;;  %v2145_v2 = vmul.f32 %v5374_v26, %v4966_v8 }
 0xb60   : > { %v2362_v12 = vpop.xlane.xlu1 %2361 }
 0xb61   : > { %v2384_v22 = vsub.f32 %v2352_v52, %v2362_v12  ;;  %v4094_v12 = vpack.i.bf16 %v2145_v2, %v2142_v7 }
 0xb63   : > { %v5435_v27 = vpop.eup %4203  ;;  %v2392_v31 = vmul.f32 1.442695, %v2384_v22  ;;  %v2146_v22 = vmul.f32 %v5374_v26, %v4964_v5 }
 0xb64   : > { %v2414_v32 = vsel %vm821_vm1, %v5435_v27, 0.0 }
 0xb65   : > { %4205 = vpow2.f32 %v2392_v31  ;;  %2415 = vadd.xlane.f32.xlu2 %v2414_v32  ;;  %v2147_v31 = vmul.f32 %v5374_v26, %v4974_v20 }
 0xb67   : > { %v2371_v1 = vpop.xlane.xlu0 %2370  ;;  %v4104_v32 = vpack.i.bf16 %v2147_v31, %v2146_v22 }
 0xb68   : > { %v2387_v33 = vsub.f32 %v2355_v43, %v2371_v1 }
 0xb6a   : > { %v2398_v4 = vmul.f32 1.442695, %v2387_v33 }
 0xb6b   : > { %v5439_v35 = vpop.eup %4205 }
 0xb6c   : > { %4207 = vpow2.f32 %v2398_v4  ;;  %v2408_v36 = vsel %vm821_vm1, %v5439_v35, 0.0 }
 0xb6d   : > { %2409 = vadd.xlane.f32.xlu0 %v2408_v36 }
 0xb6f   : > { %v2374_v10 = vpop.xlane.xlu1 %2373 }
 0xb70   : > { %v2388_v62 = vsub.f32 %v5427_v42, %v2374_v10 }
 0xb71   : > { %v2365_v18 = vpop.xlane.xlu2 %2364 }
 0xb72   : > { %v5443_v30 = vpop.eup %4207  ;;  %v2385_v39 = vsub.f32 %v2353_v38, %v2365_v18  ;;  %v2400_v50 = vmul.f32 1.442695, %v2388_v62 }
 0xb73   : > { %v2417_v11 = vsel %vm821_vm1, %v5443_v30, 0.0 }
 0xb74   : > { %v2394_v21 = vmul.f32 1.442695, %v2385_v39  ;;  %2418 = vadd.xlane.f32.xlu2 %v2417_v11 }
 0xb76   : > { %4209 = vpow2.f32 %v2394_v21 }
 0xb77   : > { %v2380_v45 = vpop.xlane.xlu1 %2379 }
 0xb78   : > { %v2390_v47 = vsub.f32 %v2358_v51, %v2380_v45 }
 0xb7a   : > { %v2404_v46 = vmul.f32 1.442695, %v2390_v47 }
 0xb7c   : > { %v5447_v54 = vpop.eup %4209  ;;  %4211 = vpow2.f32 %v2404_v46 }
 0xb7d   : > { %v2411_v49 = vsel %vm821_vm1, %v5447_v54, 0.0 }
 0xb7e   : > { %2412 = vadd.xlane.f32.xlu1 %v2411_v49 }
 0xb7f   : > { %v2383_v15 = vpop.xlane.xlu0 %2382 }
 0xb80   : > { %v2391_v52 = vsub.f32 %v2359_v6, %v2383_v15  ;;  %v2143_v6 = vmul.f32 %v5374_v26, %v4968_v9 }
 0xb81   : > { %v2377_v40 = vpop.xlane.xlu2 %2376 }
 0xb82   : > { %v5451_v61 = vpop.eup %4211  ;;  %v2406_v43 = vmul.f32 1.442695, %v2391_v52  ;;  %v2389_v56 = vsub.f32 %v2357_v3, %v2377_v40  ;;  %v4099_v3 = vpack.i.bf16 %v2148_v53, %v2143_v6 }
 0xb83   : > { %v2426_v57 = vsel %vm821_vm1, %v5451_v61, 0.0 }
 0xb84   : > { %4213 = vpow2.f32 %v2406_v43  ;;  %v2402_v38 = vmul.f32 1.442695, %v2389_v56  ;;  %2427 = vadd.xlane.f32.xlu2 %v2426_v57 }
 0xb86   : > { %4215 = vpow2.f32 %v2402_v38 }
 0xb87   : > { %4217 = vpow2.f32 %v2400_v50 }
 0xb8a   : > { %v5456_v41 = vpop.eup %4213 }
 0xb8b   : > { %v2429_v48 = vsel %vm821_vm1, %v5456_v41, 0.0 }
 0xb8c   : > { %v5460_v51 = vpop.eup %4215  ;;  %2430 = vadd.xlane.f32.xlu1 %v2429_v48 }
 0xb8d   : > { %v2423_v25 = vsel %vm821_vm1, %v5460_v51, 0.0  ;;  %v5464_v37 = vpop.eup %4217 }
 0xb8e   : > { %2424 = vadd.xlane.f32.xlu0 %v2423_v25  ;;  %v2420_v42 = vsel %vm821_vm1, %v5464_v37, 0.0 }
 0xb96   : > { %2421 = vadd.xlane.f32.xlu0 %v2420_v42 }
 0xb9c   : > { %4100 = vrot.lane.b32.xlu2 %v4099_v3, %s4612_s23 }
 0xba5   : > { %4090 = vrot.lane.b32.xlu1 %v4089_v59, %s4612_s23 }
 0xbaa   : > { %4095 = vrot.lane.b32.xlu0 %v4094_v12, %s4612_s23 }
 0xbb2   : > { %4105 = vrot.lane.b32.xlu0 %v4104_v32, %s4612_s23 }
 0xbd8   : > { %v2416_v1 = vpop.xlane.xlu2 %2415 }
 0xbd9   : > { %4219 = vrcp.f32 %v2416_v1  ;;  %v2473_v26 = vand.u32 2147483648, %v2416_v1  ;;  %vm2467_vm12 = vweird.f32 %v2416_v1  ;;  %v2471_v47 = vand.u32 2147483647, %v2416_v1 }
 0xbdb   : > { %v2474_v15 = vor.u32 1.1754944e-38, %v2473_v26  ;;  %vm2472_vm14 = vcmp.eq.f32.partialorder %v2471_v47, 8.507059e+37 }
 0xbdf   : > { %v4220_v33 = vpop.eup %4219 }
 0xbe0   : > { %v2463_v4 = vmul.f32 %v4220_v33, %v2416_v1  ;;  %v2410_v18 = vpop.xlane.xlu0 %2409  ;;  %vm2468_vm9 = vweird.f32 %v4220_v33 }
 0xbe1   : > { %4221 = vrcp.f32 %v2410_v18  ;;  %vm2469_vm13 = vmor %vm2467_vm12, %vm2468_vm9  ;;  %v2443_v7 = vand.u32 2147483648, %v2410_v18  ;;  %vm2437_vm3 = vweird.f32 %v2410_v18  ;;  %v2441_v12 = vand.u32 2147483647, %v2410_v18 }
 0xbe2   : > { %v2464_v36 = vsub.f32 1.0, %v2463_v4 }
 0xbe3   : > { %vm2442_vm5 = vcmp.eq.f32.partialorder %v2441_v12, 8.507059e+37 }
 0xbe4   : > { %v2465_v39 = vmul.f32 %v4220_v33, %v2464_v36  ;;  %v2444_v36 = vor.u32 1.1754944e-38, %v2443_v7 }
 0xbe6   : > { %v2466_v11 = vadd.f32 %v4220_v33, %v2465_v39 }
 0xbe7   : > { %v5488_v10 = vpop.xlane.xlu2 %2418  ;;  %v4222_v46 = vpop.eup %4221 }
 0xbe8   : > { %4223 = vrcp.f32 %v5488_v10  ;;  %v2470_v49 = vsel %vm2469_vm13, %v4220_v33, %v2466_v11  ;;  %v2433_v52 = vmul.f32 %v4222_v46, %v2410_v18  ;;  %vm2438_vm2 = vweird.f32 %v4222_v46 }
 0xbe9   : > { %v2475_v43 = vsel %vm2472_vm14, %v2474_v15, %v2470_v49  ;;  %vm2439_vm4 = vmor %vm2437_vm3, %vm2438_vm2  ;;  %v2486_v4 = vand.u32 2147483647, %v5488_v10  ;;  %v2488_v39 = vand.u32 2147483648, %v5488_v10  ;;  %vm2482_vm6 = vweird.f32 %v5488_v10 }
 0xbea   : > { %v2434_v38 = vsub.f32 1.0, %v2433_v52  ;;  %v2476_v25 = vmul.f32 %v5435_v27, %v2475_v43 }
 0xbeb   : > { %vm2487_vm8 = vcmp.eq.f32.partialorder %v2486_v4, 8.507059e+37 }
 0xbec   : > { %v2435_v6 = vmul.f32 %v4222_v46, %v2434_v38  ;;  %v2489_v38 = vor.u32 1.1754944e-38, %v2488_v39 }
 0xbee   : > { %v4224_v40 = vpop.eup %4223  ;;  %v2436_v44 = vadd.f32 %v4222_v46, %v2435_v6 }
 0xbef   : > { %v2478_v50 = vmul.f32 %v4224_v40, %v5488_v10  ;;  %vm2483_vm15 = vweird.f32 %v4224_v40 }
 0xbf0   : > { %v2440_v1 = vsel %vm2439_vm4, %v4222_v46, %v2436_v44  ;;  %vm5532_vm7 = vmor %vm2482_vm6, %vm2483_vm15 }
 0xbf1   : > { %v5490_v21 = vpop.xlane.xlu1 %2412  ;;  %v2479_v53 = vsub.f32 1.0, %v2478_v50  ;;  %v2445_v49 = vsel %vm2442_vm5, %v2444_v36, %v2440_v1 }
 0xbf2   : > { %4225 = vrcp.f32 %v5490_v21  ;;  %v2456_v15 = vand.u32 2147483647, %v5490_v21  ;;  %v2458_v52 = vand.u32 2147483648, %v5490_v21  ;;  %vm2452_vm9 = vweird.f32 %v5490_v21 }
 0xbf3   : > { %v2480_v27 = vmul.f32 %v4224_v40, %v2479_v53 }
 0xbf4   : > { %vm5549_vm13 = vcmp.eq.f32.partialorder %v2456_v15, 8.507059e+37 }
 0xbf5   : > { %v2481_v33 = vadd.f32 %v4224_v40, %v2480_v27  ;;  %v2459_v27 = vor.u32 1.1754944e-38, %v2458_v52 }
 0xbf7   : > { %v5492_v45 = vpop.xlane.xlu2 %2427  ;;  %v2485_v10 = vsel %vm5532_vm7, %v4224_v40, %v2481_v33 }
 0xbf8   : > { %v5506_v42 = vpop.eup %4225  ;;  %v2490_v44 = vsel %vm2487_vm8, %v2489_v38, %v2485_v10  ;;  %vm2527_vm2 = vweird.f32 %v5492_v45 }
 0xbf9   : > { %v2448_v3 = vmul.f32 %v5506_v42, %v5490_v21  ;;  %vm2453_vm12 = vweird.f32 %v5506_v42  ;;  %v2531_v21 = vand.u32 2147483647, %v5492_v45  ;;  %v2491_v52 = vmul.f32 %v5443_v30, %v2490_v44 }
 0xbfa   : > { %vm5553_vm14 = vmor %vm2452_vm9, %vm2453_vm12 }
 0xbfb   : > { %v2449_v2 = vsub.f32 1.0, %v2448_v3  ;;  %v2446_v3 = vmul.f32 %v5439_v35, %v2445_v49  ;;  %v2533_v49 = vand.u32 2147483648, %v5492_v45 }
 0xbfd   : > { %v2450_v11 = vmul.f32 %v5506_v42, %v2449_v2 }
 0xbff   : > { %v5496_v56 = vpop.permute.xlu2 %4100  ;;  %v5498_v57 = vpop.xlane.xlu1 %2430  ;;  %v2451_v50 = vadd.f32 %v5506_v42, %v2450_v11 }
 0xc00   : > { %v4102_v62 = vunpack.i.l.bf16 %v5496_v56  ;;  %4227 = vrcp.f32 %v5498_v57  ;;  %vm2542_vm3 = vweird.f32 %v5498_v57  ;;  %v2548_v1 = vand.u32 2147483648, %v5498_v57 }
 0xc01   : > { %v5502_v48 = vpop.xlane.xlu0 %2424  ;;  %4229 = vrcp.f32 %v5492_v45  ;;  %v2455_v35 = vsel %vm5553_vm14, %v5506_v42, %v2451_v50  ;;  %v4103_v10 = vunpack.i.h.bf16 %v5496_v56 }
 0xc02   : > { %2628 = vmatpush.msra.mxu1 %v4102_v62  ;;  %4231 = vrcp.f32 %v5502_v48  ;;  %vm2512_vm8 = vweird.f32 %v5502_v48  ;;  %v2516_v40 = vand.u32 2147483647, %v5502_v48 }
 0xc03   : > { %3901 = vmatmul.msk.f32.vlgmr.msra.gmra.mxu1 %vm821_vm1, %v2476_v25 }
 0xc06   : > { %v5513_v63 = vpop.eup %4227 }
 0xc07   : > { %v2538_v22 = vmul.f32 %v5513_v63, %v5498_v57  ;;  %v5520_v31 = vpop.eup %4229  ;;  %vm2543_vm4 = vweird.f32 %v5513_v63 }
 0xc08   : > { %v5522_v32 = vpop.eup %4231  ;;  %v2523_v18 = vmul.f32 %v5520_v31, %v5492_v45  ;;  %vm5576_vm5 = vmor %vm2542_vm3, %vm2543_vm4  ;;  %vm2528_vm7 = vweird.f32 %v5520_v31 }
 0xc09   : > { %v5515_v59 = vpop.xlane.xlu0 %2421  ;;  %v2539_v26 = vsub.f32 1.0, %v2538_v22  ;;  %v2508_v43 = vmul.f32 %v5522_v32, %v5502_v48  ;;  %v2546_v22 = vand.u32 2147483647, %v5498_v57  ;;  %vm5614_vm3 = vmor %vm2527_vm2, %vm2528_vm7  ;;  %vm2532_vm2 = vcmp.eq.f32.partialorder %v2531_v21, 8.507059e+37  ;;  %v2852_v21 = vld [vmem:[#allocation8 + $0x60] sm:$0xff] }
 0xc0a   : > { %4233 = vrcp.f32 %v5515_v59  ;;  %v2524_v25 = vsub.f32 1.0, %v2523_v18  ;;  %v2503_v18 = vand.u32 2147483648, %v5515_v59  ;;  %vm2497_vm6 = vweird.f32 %v5515_v59 }
 0xc0b   : > { %v2540_v6 = vmul.f32 %v5513_v63, %v2539_v26  ;;  %v2509_v7 = vsub.f32 1.0, %v2508_v43  ;;  %v2501_v15 = vand.u32 2147483647, %v5515_v59  ;;  %v2460_v43 = vsel %vm5549_vm13, %v2459_v27, %v2455_v35 }
 0xc0c   : > { %v2525_v33 = vmul.f32 %v5520_v31, %v2524_v25  ;;  %vm5597_vm12 = vcmp.eq.f32.partialorder %v2546_v22, 8.507059e+37  ;;  %vm2513_vm13 = vweird.f32 %v5522_v32 }
 0xc0d   : > { %v2541_v4 = vadd.f32 %v5513_v63, %v2540_v6  ;;  %v2510_v11 = vmul.f32 %v5522_v32, %v2509_v7  ;;  %v2518_v6 = vand.u32 2147483648, %v5502_v48  ;;  %vm2502_vm14 = vcmp.eq.f32.partialorder %v2501_v15, 8.507059e+37  ;;  %vm2514_vm4 = vmor %vm2512_vm8, %vm2513_vm13 }
 0xc0e   : > { %v2526_v38 = vadd.f32 %v5520_v31, %v2525_v33  ;;  %v2461_v7 = vmul.f32 %v5447_v54, %v2460_v43 }
 0xc0f   : > { %v2545_v30 = vsel %vm5576_vm5, %v5513_v63, %v2541_v4  ;;  %v2511_v50 = vadd.f32 %v5522_v32, %v2510_v11  ;;  %v2504_v63 = vor.u32 1.1754944e-38, %v2503_v18  ;;  %v2519_v35 = vor.u32 1.1754944e-38, %v2518_v6  ;;  %v2786_v11 = vld [vmem:[#allocation11 + $0x50] sm:$0xff]  ;;  %v2785_v18 = vld [vmem:[#allocation11 + $0x48] sm:$0xff] }
 0xc10   : > { %v5530_v47 = vpop.eup %4233  ;;  %v2530_v45 = vsel %vm5614_vm3, %v5520_v31, %v2526_v38 }
 0xc11   : > { %v2493_v62 = vmul.f32 %v5530_v47, %v5515_v59  ;;  %vm2498_vm15 = vweird.f32 %v5530_v47  ;;  %v2515_v2 = vsel %vm2514_vm4, %v5522_v32, %v2511_v50 }
 0xc12   : > { %vm5590_vm9 = vmor %vm2497_vm6, %vm2498_vm15  ;;  %vm2517_vm15 = vcmp.eq.f32.partialorder %v2516_v40, 8.507059e+37 }
 0xc13   : > { %v2494_v53 = vsub.f32 1.0, %v2493_v62  ;;  %v2549_v62 = vor.u32 1.1754944e-38, %v2548_v1  ;;  %v2520_v48 = vsel %vm2517_vm15, %v2519_v35, %v2515_v2 }
 0xc14   : > { %v2521_v32 = vmul.f32 %v5460_v51, %v2520_v48  ;;  %v2787_v51 = vld [vmem:[#allocation11 + $0x58] sm:$0xff] }
 0xc15   : > { %v2495_v12 = vmul.f32 %v5530_v47, %v2494_v53 }
 0xc17   : > { %v2496_v36 = vadd.f32 %v5530_v47, %v2495_v12  ;;  %v4091_v39 = vpop.permute.xlu1 %4090  ;;  %v2534_v12 = vor.u32 1.1754944e-38, %v2533_v49 }
 0xc18   : > { %v4093_v42 = vunpack.i.h.bf16 %v4091_v39  ;;  %v4092_v26 = vunpack.i.l.bf16 %v4091_v39  ;;  %v2855_v39 = vld [vmem:[#allocation8 + $0x78] sm:$0xff] }
 0xc19   : > { %v2500_v56 = vsel %vm5590_vm9, %v5530_v47, %v2496_v36  ;;  %v2535_v54 = vsel %vm2532_vm2, %v2534_v12, %v2530_v45  ;;  %v5645_v47 = vld [vmem:[#allocation10 + $0x3] ss:$0 sm:$0xff] }
 0xc1a   : > { %2574 = vmatpush.msrb.mxu3 %v4092_v26  ;;  %2655 = vmatpush.msra.mxu2 %v4093_v42  ;;  %v2505_v27 = vsel %vm2502_vm14, %v2504_v63, %v2500_v56  ;;  %v2536_v36 = vmul.f32 %v5451_v61, %v2535_v54  ;;  %v4271_v61 = vld [vmem:[%s4840_s18] sm:$0xf]  ;;  %v2784_v42 = vld [vmem:[#allocation11 + $0x40] sm:$0xff]  ;;  %s3646_s18 = sshll.u32 %s3642_s11, 4  ;;  %s3647_s18 = int_to_ptr.hbm [resolvable:$true] %s3646_s18 }
 0xc1b   : > { %3899 = vmatmul.msk.f32.vlgmr.msrb.gmra.mxu3 %vm821_vm1, %v2446_v3  ;;  %3902 = vmatmul.msk.f32.vlgmr.msra.gmra.mxu2 %vm821_vm1, %v2491_v52  ;;  %v2550_v3 = vsel %vm5597_vm12, %v2549_v62, %v2545_v30  ;;  %v2506_v22 = vmul.f32 %v5464_v37, %v2505_v27  ;;  %v2853_v37 = vld [vmem:[#allocation8 + $0x68] sm:$0xff]  ;;  %s4526_s26 = sshra.s32 %s3647_s18, 4  ;;  %s4527_s26 = int_to_ptr.hbm [resolvable:$true] %s4526_s26 }
 0xc1c   : > { %2763 = vmatpush.msrb.mxu2 %v4103_v10  ;;  %v4096_v25 = vpop.permute.xlu0 %4095  ;;  %v2551_v1 = vmul.f32 %v5456_v41, %v2550_v3  ;;  %v2854_v41 = vld [vmem:[#allocation8 + $0x70] sm:$0xff]  ;;  %p4533_p7 = scmp.lt.s32.totalorder %s4527_s26, %s5912_s9 }
 0xc1d   : > { %v4098_v53 = vunpack.i.h.bf16 %v4096_v25  ;;  %v4097_v44 = vunpack.i.l.bf16 %v4096_v25 }
 0xc1f   : > { %2601 = vmatpush.msrb.mxu0 %v4097_v44  ;;  %2682 = vmatpush.msra.mxu3 %v4098_v53 }
 0xc20   : > { %3900 = vmatmul.msk.f32.vlgmr.msrb.gmra.mxu0 %vm821_vm1, %v2461_v7 }
 0xc21   : > { %2808 = vmatpush.msrb.mxu3 %v2787_v51 }
 0xc23   : > { %3903 = vmatmul.msk.f32.vlgmr.msra.gmra.mxu3 %vm821_vm1, %v2506_v22  ;;  %3906 = vmatmul.msk.f32.vlgmr.msrb.gmra.mxu2 %vm821_vm1, %v2551_v1 }
 0xc24   : > { %v4106_v33 = vpop.permute.xlu0 %4105  ;;  %2809 = vmatpush.msrb.mxu3 %v2786_v11 }
 0xc25   : > { %v4108_v31 = vunpack.i.h.bf16 %v4106_v33  ;;  %v4107_v4 = vunpack.i.l.bf16 %v4106_v33 }
 0xc26   : > { %2810 = vmatpush.msrb.mxu3 %v2785_v18 }
 0xc27   : > { %2709 = vmatpush.msra.mxu0 %v4107_v4  ;;  %2736 = vmatpush.msrb.mxu1 %v4108_v31 }
 0xc28   : > { %3904 = vmatmul.msk.f32.vlgmr.msra.gmra.mxu0 %vm821_vm1, %v2521_v32  ;;  %3905 = vmatmul.msk.f32.vlgmr.msrb.gmra.mxu1 %vm821_vm1, %v2536_v36 }
 0xc29   : > { %2896 = vmatpush.msra.mxu1 %v2855_v39  ;;  %2876 = vmatpush.msrb.mxu0 %v2855_v39 }
 0xc2a   : > { %2811 = vmatpush.msrb.mxu3 %v2784_v42 }
 0xc2b   : > { %2897 = vmatpush.msra.mxu1 %v2854_v41  ;;  %2877 = vmatpush.msrb.mxu0 %v2854_v41 }
 0xc2d   : > { %2898 = vmatpush.msra.mxu1 %v2853_v37  ;;  %2878 = vmatpush.msrb.mxu0 %v2853_v37 }
 0xc2f   : > { %2899 = vmatpush.msra.mxu1 %v2852_v21  ;;  %2879 = vmatpush.msrb.mxu0 %v2852_v21 }
 0xc30   : > { %3910 = vmatmul.msk.f32.vlgmr.msra.gmra.mxu1 %vm506_vm0, %v4271_v61 }
 0xc80   : > { %v2630_v26 = vpop.f32.mrf.mxu1 }
 0xc81   : > { %v2771_v57 = vsel %vm506_vm0, %v2630_v26, 0.0 }
 0xc9d   : > { %v2603_v49 = vpop.f32.mrf.mxu0 }
 0xc9e   : > { %v2769_v46 = vsel %vm506_vm0, %v2603_v49, 0.0  ;;  %v2576_v15 = vpop.f32.mrf.mxu3  ;;  %v2657_v10 = vpop.f32.mrf.mxu2 }
 0xc9f   : > { %v2768_v52 = vsel %vm506_vm0, %v2576_v15, 0.0  ;;  %v2773_v59 = vsel %vm506_vm0, %v2657_v10, 0.0  ;;  %v4128_v10 = vld [vmem:[#allocation13 + $0x2] ss:$0 sm:$0xff] }
 0xca0   : > { %v2770_v43 = vadd.f32 %v2769_v46, %v2768_v52 }
 0xca2   : > { %v2772_v30 = vadd.f32 %v2771_v57, %v2770_v43 }
 0xca4   : > { %v2774_v56 = vadd.f32 %v2773_v59, %v2772_v30  ;;  %v4129_v30 = vld [vmem:[#allocation14 + $0x2] ss:$0 sm:$0xff] }
 0xca5   : > { %v2738_v62 = vpop.f32.mrf.mxu1  ;;  %v2711_v38 = vpop.f32.mrf.mxu0 }
 0xca6   : > { %v2684_v50 = vpop.f32.mrf.mxu3  ;;  %v2777_v6 = vsel %vm506_vm0, %v2711_v38, 0.0  ;;  %v2765_v44 = vpop.f32.mrf.mxu2  ;;  %v2779_v3 = vsel %vm506_vm0, %v2738_v62, 0.0 }
 0xca7   : > { %v2775_v63 = vsel %vm506_vm0, %v2684_v50, 0.0  ;;  %v2781_v27 = vsel %vm506_vm0, %v2765_v44, 0.0 }
 0xca8   : > { %v2776_v25 = vadd.f32 %v2775_v63, %v2774_v56 }
 0xcaa   : > { %v2778_v53 = vadd.f32 %v2777_v6, %v2776_v25 }
 0xcac   : > { %v2780_v40 = vadd.f32 %v2779_v3, %v2778_v53 }
 0xcad   : > { %v2901_v7 = vpop.f32.mrf.mxu1 }
 0xcae   : > { %v2782_v45 = vadd.f32 %v2781_v27, %v2780_v40  ;;  %v5650_v2 = vadd.f32 %v5645_v47, %v2901_v7 }
 0xcb0   : > { %3908 = vmatmul.msk.f32.vlgmr.msrb.gmra.mxu3 %vm506_vm0, %v2782_v45  ;;  %v2904_v12 = vmul.f32 %v5650_v2, %v4871_v14  ;;  %v2905_v35 = vmul.f32 %v5650_v2, %v4869_v13  ;;  %v2908_v22 = vmul.f32 %v5650_v2, %v4887_v23  ;;  %v2909_v1 = vmul.f32 %v5650_v2, %v4873_v16 }
 0xcb1   : > { %v2906_v14 = vmul.f32 %v5650_v2, %v4877_v19  ;;  %v2910_v13 = vmul.f32 %v5650_v2, %v4901_v28  ;;  %v4127_v28 = vld [vmem:[%s5909_s6 + $0x2] ss:$0 sm:$0xff]  ;;  %v2907_v36 = vmul.f32 %v5650_v2, %v4890_v24  ;;  %v2912_v39 = vmul.f32 %v5650_v2, %v4952_v60 }
 0xcb2   : > { %2921 = vrot.lane.b32.xlu2 %v2904_v12, %s4611_s3  ;;  %v2911_v24 = vmul.f32 %v5650_v2, %v4903_v29  ;;  %v2913_v60 = vmul.f32 %v5650_v2, %v4950_v58 }
 0xcba   : > { %2949 = vrot.lane.b32.xlu2 %v2905_v35, %s4611_s3 }
 0xcc2   : > { %3024 = vrot.lane.b32.xlu2 %v2908_v22, %s4611_s3 }
 0xcca   : > { %3049 = vrot.lane.b32.xlu2 %v2909_v1, %s4611_s3 }
 0xcd2   : > { %2974 = vrot.lane.b32.xlu2 %v2906_v14, %s4611_s3 }
 0xcda   : > { %3074 = vrot.lane.b32.xlu2 %v2910_v13, %s4611_s3 }
 0xd0c   : > { %v2922_v54 = vpop.permute.xlu2 %2921 }
 0xd0d   : > { %3911 = vmatpush.xpose.msk.msra.mxu2 %vm506_vm0, %v2922_v54 }
 0xd14   : > { %v2950_v23 = vpop.permute.xlu2 %2949 }
 0xd15   : > { %3913 = vmatpush.xpose.msk.msra.mxu3 %vm506_vm0, %v2950_v23 }
 0xd1c   : > { %v3025_v48 = vpop.permute.xlu2 %3024 }
 0xd1d   : > { %3919 = vmatpush.xpose.msk.msrb.mxu2 %vm506_vm0, %v3025_v48 }
 0xd24   : > { %v3050_v16 = vpop.permute.xlu2 %3049 }
 0xd25   : > { %3921 = vmatpush.xpose.msk.msrb.mxu3 %vm506_vm0, %v3050_v16 }
 0xd2c   : > { %v2975_v19 = vpop.permute.xlu2 %2974 }
 0xd2d   : > { %3915 = vmatpush.xpose.msk.msra.mxu0 %vm506_vm0, %v2975_v19 }
 0xd33   : > { %v2813_v33 = vpop.f32.mrf.mxu3 }
 0xd34   : > { %v2814_v31 = vadd.f32 %v4127_v28, %v2813_v33  ;;  %v3075_v56 = vpop.permute.xlu2 %3074 }
 0xd36   : > { %v2816_v4 = vadd.f32 %v2814_v31, %v5370_v34 }
 0xd38   : > { %v2817_v32 = vsel %vm506_vm0, %v2816_v4, 0.0 }
 0xd39   : > { %2818 = vadd.xlane.f32.xlu1 %v2817_v32  ;;  %v2917_v32 = vmul.f32 %v5650_v2, %v4964_v5 }
 0xd52   : > { %2999 = vrot.lane.b32.xlu1 %v2907_v36, %s4611_s3  ;;  %v2914_v36 = vmul.f32 %v5650_v2, %v4968_v9 }
 0xd5a   : > { %3324 = vrot.lane.b32.xlu1 %v2912_v39, %s4612_s23  ;;  %v2916_v39 = vmul.f32 %v5650_v2, %v4966_v8 }
 0xdac   : > { %v2819_v41 = vpop.xlane.xlu1 %2818 }
 0xdad   : > { %v2820_v37 = vmul.f32 %v2819_v41, %v5172_v55 }
 0xdaf   : > { %v2821_v21 = vsub.f32 %v2816_v4, %v2820_v37 }
 0xdb1   : > { %v2822_v61 = vmul.f32 %v2821_v21, %v2821_v21 }
 0xdb3   : > { %v2823_v34 = vsel %vm506_vm0, %v2822_v61, 0.0 }
 0xdb4   : > { %2824 = vadd.xlane.f32.xlu0 %v2823_v34 }
 0xdc4   : > { %v3000_v51 = vpop.permute.xlu1 %2999 }
 0xdc5   : > { %3917 = vmatpush.xpose.msk.msrb.mxu1 %vm506_vm0, %v3000_v51 }
 0xdc8   : > { %3099 = vrot.lane.b32.xlu0 %v2911_v24, %s4611_s3  ;;  %s4528_s3 = scalar_lea.hbm %s4527_s26, 8 }
 0xdc9   : > { %p4529_p1 = scmp.ne.s32.totalorder %s4527_s26, %s4528_s3  ;;  %p4534_p9 = scmp.lt.s32.totalorder %s4532_s22, %s4528_s3 }
 0xdcb   : > { %p4530_p3 = pnand %p4529_p1, %p4775_p4  ;;  %p4535_p5 = por %p4534_p9, %p4533_p7 }
 0xdcc   : > { %v3325_v63 = vpop.permute.xlu1 %3324 }
 0xdcd   : > { %p4531_p12 = pneg %p4530_p3 }
 0xdcf   : > { %p4536_p8 = pnand %p4535_p5, %p4531_p12 }
 0xdd0   : > { %3352 = vrot.lane.b32.xlu0 %v2913_v60, %s4612_s23 }
 0xe27   : > { %v2825_v11 = vpop.xlane.xlu0 %2824 }
 0xe28   : > { %v2826_v18 = vmul.f32 %v2825_v11, %v5172_v55 }
 0xe2a   : > { %v2827_v42 = vadd.f32 1e-05, %v2826_v18 }
 0xe2c   : > { %4235 = vrsqrt.f32 %v2827_v42  ;;  %vm2834_vm5 = vweird.f32 %v2827_v42 }
 0xe32   : > { %v4236_v26 = vpop.eup %4235 }
 0xe33   : > { %v2829_v49 = vmul.f32 %v4236_v26, %v2827_v42  ;;  %vm2835_vm1 = vweird.f32 %v4236_v26 }
 0xe34   : > { %vm2836_vm6 = vmor %vm2834_vm5, %vm2835_vm1 }
 0xe35   : > { %v2830_v46 = vmul.f32 %v4236_v26, %v2829_v49 }
 0xe37   : > { %v2831_v15 = vmul.f32 0.5, %v2830_v46 }
 0xe39   : > { %v2832_v52 = vsub.f32 1.5, %v2831_v15 }
 0xe3a   : > { %v3100_v43 = vpop.permute.xlu0 %3099 }
 0xe3b   : > { %v2833_v29 = vmul.f32 %v4236_v26, %v2832_v52  ;;  %3925 = vmatpush.xpose.msk.msra.mxu1 %vm506_vm0, %v3100_v43 }
 0xe3d   : > { %v2837_v58 = vsel %vm2836_vm6, %v4236_v26, %v2833_v29 }
 0xe3e   : > { %v2838_v57 = vmul.f32 %v2837_v58, %v2821_v21 }
 0xe40   : > { %v2844_v59 = vmul.f32 %v4128_v10, %v2838_v57 }
 0xe42   : > { %v5698_v62 = vadd.f32 %v4129_v30, %v2844_v59  ;;  %v3353_v25 = vpop.permute.xlu0 %3352 }
 0xe44   : > { %3909 = vmatmul.msk.f32.vlgmr.msrb.gmra.mxu0 %vm506_vm0, %v5698_v62 }
 0xe45   : > { %3923 = vmatpush.xpose.msk.msrb.mxu0 %vm506_vm0, %v3075_v56 }
 0xec1   : > { %v2881_v38 = vpop.f32.mrf.mxu0 }
 0xec2   : > { %v2882_v50 = vadd.f32 %v5645_v47, %v2881_v38 }
 0xec4   : > { %3912 = vmatmul.msk.f32.vlgmr.msra.gmra.mxu2 %vm506_vm0, %v2882_v50  ;;  %3914 = vmatmul.msk.f32.vlgmr.msra.gmra.mxu3 %vm506_vm0, %v2882_v50 }
 0xec5   : > { %3916 = vmatmul.msk.f32.vlgmr.msra.gmra.mxu0 %vm506_vm0, %v2882_v50  ;;  %3918 = vmatmul.msk.f32.vlgmr.msrb.gmra.mxu1 %vm506_vm0, %v2882_v50 }
 0xec6   : > { %3927 = vmatpush.msk.msra.mxu2 %vm1798_vm10, %v3325_v63  ;;  %3929 = vmatpush.msk.msra.mxu3 %vm1798_vm10, %v3353_v25 }
 0xecc   : > { %3920 = vmatmul.msk.f32.vlgmr.msrb.gmra.mxu2 %vm506_vm0, %v2882_v50  ;;  %3922 = vmatmul.msk.f32.vlgmr.msrb.gmra.mxu3 %vm506_vm0, %v2882_v50 }
 0xecd   : > { %3924 = vmatmul.msk.f32.vlgmr.msrb.gmra.mxu0 %vm506_vm0, %v2882_v50  ;;  %3926 = vmatmul.msk.f32.vlgmr.msra.gmra.mxu1 %vm506_vm0, %v2882_v50 }
 0xf42   : > { %v2995_v6 = vpop.f32.mrf.mxu0  ;;  %v3020_v53 = vpop.f32.mrf.mxu1 }
 0xf43   : > { %v3125_v44 = vmul.f32 0.5, %v2995_v6  ;;  %v3126_v47 = vmul.f32 0.5, %v3020_v53 }
 0xf45   : > { %v3137_v3 = vsel %vm1599_vm11, %v3125_v44, -inf  ;;  %v3140_v40 = vsel %vm1599_vm11, %v3126_v47, -inf }
 0xf46   : > { %3138 = vmax.xlane.f32.xlu2 %v3137_v3  ;;  %3141 = vmax.xlane.f32.xlu0 %v3140_v40 }
 0xf47   : > { %v2945_v27 = vpop.f32.mrf.mxu2  ;;  %v2970_v7 = vpop.f32.mrf.mxu3 }
 0xf48   : > { %v3123_v45 = vmul.f32 0.5, %v2945_v27  ;;  %v3124_v12 = vmul.f32 0.5, %v2970_v7 }
 0xf4a   : > { %v3095_v35 = vpop.f32.mrf.mxu0  ;;  %v3131_v14 = vsel %vm1599_vm11, %v3123_v45, -inf  ;;  %v3120_v13 = vpop.f32.mrf.mxu1  ;;  %v3134_v54 = vsel %vm1599_vm11, %v3124_v12, -inf }
 0xf4b   : > { %v3129_v22 = vmul.f32 0.5, %v3095_v35  ;;  %v3130_v48 = vmul.f32 0.5, %v3120_v13  ;;  %v2915_v13 = vmul.f32 %v5650_v2, %v4972_v17 }
 0xf4d   : > { %v3149_v1 = vsel %vm1599_vm11, %v3129_v22, -inf  ;;  %v3152_v28 = vsel %vm1599_vm11, %v3130_v48, -inf }
 0xf4e   : > { %3150 = vmax.xlane.f32.xlu1 %v3149_v1  ;;  %3132 = vmax.xlane.f32.xlu2 %v3131_v14  ;;  %v2919_v1 = vmul.f32 %v5650_v2, %v5005_v0  ;;  %v2918_v14 = vmul.f32 %v5650_v2, %v4974_v20 }
 0xf4f   : > { %3135 = vmax.xlane.f32.xlu0 %v3134_v54  ;;  %v3045_v23 = vpop.f32.mrf.mxu2  ;;  %v3070_v33 = vpop.f32.mrf.mxu3 }
 0xf50   : > { %v3127_v16 = vmul.f32 0.5, %v3045_v23  ;;  %v3128_v31 = vmul.f32 0.5, %v3070_v33 }
 0xf52   : > { %v3143_v19 = vsel %vm1599_vm11, %v3127_v16, -inf  ;;  %v3146_v4 = vsel %vm1599_vm11, %v3128_v31, -inf }
 0xf56   : > { %3144 = vmax.xlane.f32.xlu1 %v3143_v19  ;;  %3153 = vmax.xlane.f32.xlu2 %v3152_v28 }
 0xf5e   : > { %3147 = vmax.xlane.f32.xlu2 %v3146_v4 }
 0xf63   : > { %3464 = vrot.lane.b32.xlu0 %v2917_v32, %s4612_s23 }
 0xf6f   : > { %3380 = vrot.lane.b32.xlu1 %v2914_v36, %s4612_s23 }
 0xf76   : > { %3436 = vrot.lane.b32.xlu2 %v2916_v39, %s4612_s23 }
 0xfb9   : > { %v3139_v41 = vpop.xlane.xlu2 %3138  ;;  %v3142_v37 = vpop.xlane.xlu0 %3141 }
 0xfba   : > { %v3157_v21 = vsub.f32 %v3125_v44, %v3139_v41  ;;  %v3158_v61 = vsub.f32 %v3126_v47, %v3142_v37 }
 0xfbc   : > { %v3167_v34 = vmul.f32 1.442695, %v3157_v21  ;;  %v3169_v51 = vmul.f32 1.442695, %v3158_v61 }
 0xfbe   : > { %4237 = vpow2.f32 %v3167_v34 }
 0xfbf   : > { %4239 = vpow2.f32 %v3169_v51 }
 0xfc1   : > { %v3133_v5 = vpop.xlane.xlu2 %3132  ;;  %v3151_v24 = vpop.xlane.xlu1 %3150 }
 0xfc2   : > { %v3155_v60 = vsub.f32 %v3123_v45, %v3133_v5  ;;  %v3136_v11 = vpop.xlane.xlu0 %3135  ;;  %v3161_v49 = vsub.f32 %v3129_v22, %v3151_v24 }
 0xfc3   : > { %v3156_v9 = vsub.f32 %v3124_v12, %v3136_v11 }
 0xfc4   : > { %v5731_v18 = vpop.eup %4237  ;;  %v3163_v42 = vmul.f32 1.442695, %v3155_v60  ;;  %v3175_v52 = vmul.f32 1.442695, %v3161_v49 }
 0xfc5   : > { %v5733_v26 = vpop.eup %4239  ;;  %v3165_v8 = vmul.f32 1.442695, %v3156_v9  ;;  %v3185_v46 = vsel %vm1599_vm11, %v5731_v18, 0.0 }
 0xfc6   : > { %4241 = vpow2.f32 %v3163_v42  ;;  %3186 = vadd.xlane.f32.xlu0 %v3185_v46  ;;  %v3188_v15 = vsel %vm1599_vm11, %v5733_v26, 0.0 }
 0xfc7   : > { %4243 = vpow2.f32 %v3165_v8  ;;  %3189 = vadd.xlane.f32.xlu2 %v3188_v15 }
 0xfc8   : > { %4245 = vpow2.f32 %v3175_v52 }
 0xfc9   : > { %v3154_v43 = vpop.xlane.xlu2 %3153  ;;  %v3145_v29 = vpop.xlane.xlu1 %3144 }
 0xfca   : > { %v3162_v10 = vsub.f32 %v3130_v48, %v3154_v43  ;;  %v3159_v30 = vsub.f32 %v3127_v16, %v3145_v29 }
 0xfcc   : > { %v5739_v58 = vpop.eup %4241  ;;  %v3177_v57 = vmul.f32 1.442695, %v3162_v10  ;;  %v3171_v50 = vmul.f32 1.442695, %v3159_v30 }
 0xfcd   : > { %v5741_v59 = vpop.eup %4243  ;;  %v3179_v56 = vsel %vm1599_vm11, %v5739_v58, 0.0 }
 0xfce   : > { %4247 = vpow2.f32 %v3177_v57  ;;  %3180 = vadd.xlane.f32.xlu0 %v3179_v56  ;;  %v3182_v38 = vsel %vm1599_vm11, %v5741_v59, 0.0  ;;  %v5747_v6 = vpop.eup %4245 }
 0xfcf   : > { %3183 = vadd.xlane.f32.xlu1 %v3182_v38  ;;  %4249 = vpow2.f32 %v3171_v50  ;;  %v3197_v40 = vsel %vm1599_vm11, %v5747_v6, 0.0 }
 0xfd1   : > { %v3148_v63 = vpop.xlane.xlu2 %3147 }
 0xfd2   : > { %v3160_v25 = vsub.f32 %v3128_v31, %v3148_v63 }
 0xfd4   : > { %v5749_v53 = vpop.eup %4247  ;;  %v3173_v44 = vmul.f32 1.442695, %v3160_v25 }
 0xfd5   : > { %v3465_v47 = vpop.permute.xlu0 %3464  ;;  %v3200_v3 = vsel %vm1599_vm11, %v5749_v53, 0.0  ;;  %v5756_v7 = vpop.eup %4249 }
 0xfd6   : > { %4251 = vpow2.f32 %v3173_v44  ;;  %3937 = vmatpush.msk.msrb.mxu3 %vm1798_vm10, %v3465_v47  ;;  %3201 = vadd.xlane.f32.xlu2 %v3200_v3  ;;  %v3191_v35 = vsel %vm1599_vm11, %v5756_v7, 0.0 }
 0xfd7   : > { %3198 = vadd.xlane.f32.xlu0 %v3197_v40 }
 0xfd9   : > { %v3437_v27 = vpop.permute.xlu2 %3436 }
 0xfda   : > { %3935 = vmatpush.msk.msrb.mxu2 %vm1798_vm10, %v3437_v27 }
 0xfdc   : > { %v5759_v45 = vpop.eup %4251 }
 0xfdd   : > { %v3194_v12 = vsel %vm1599_vm11, %v5759_v45, 0.0 }
 0xfde   : > { %3195 = vadd.xlane.f32.xlu1 %v3194_v12  ;;  %3192 = vadd.xlane.f32.xlu2 %v3191_v35 }
 0xfe1   : > { %v3381_v22 = vpop.permute.xlu1 %3380 }
 0xfe2   : > { %3931 = vmatpush.msk.msra.mxu0 %vm1798_vm10, %v3381_v22 }
 0xfeb   : > { %3520 = vrot.lane.b32.xlu0 %v2919_v1, %s4612_s23 }
 0xff6   : > { %3492 = vrot.lane.b32.xlu2 %v2918_v14, %s4612_s23 }
 0xff7   : > { %3408 = vrot.lane.b32.xlu1 %v2915_v13, %s4612_s23 }
0x1039   : > { %v3187_v54 = vpop.xlane.xlu0 %3186 }
0x103a   : > { %4253 = vrcp.f32 %v3187_v54  ;;  %v5775_v16 = vpop.xlane.xlu2 %3189  ;;  %v3244_v20 = vand.u32 2147483648, %v3187_v54  ;;  %v3242_v31 = vand.u32 2147483647, %v3187_v54  ;;  %vm3238_vm8 = vweird.f32 %v3187_v54 }
0x103c   : > { %v3245_v36 = vor.u32 1.1754944e-38, %v3244_v20  ;;  %vm3243_vm12 = vcmp.eq.f32.partialorder %v3242_v31, 8.507059e+37  ;;  %v3259_v20 = vand.u32 2147483648, %v5775_v16 }
0x1040   : > { %v4254_v23 = vpop.eup %4253 }
0x1041   : > { %v3234_v48 = vmul.f32 %v4254_v23, %v3187_v54  ;;  %v3181_v19 = vpop.xlane.xlu0 %3180  ;;  %vm3239_vm7 = vweird.f32 %v4254_v23 }
0x1042   : > { %4255 = vrcp.f32 %v3181_v19  ;;  %v3184_v0 = vpop.xlane.xlu1 %3183  ;;  %vm3240_vm9 = vmor %vm3238_vm8, %vm3239_vm7  ;;  %v3214_v24 = vand.u32 2147483648, %v3181_v19  ;;  %vm3208_vm3 = vweird.f32 %v3181_v19  ;;  %v3212_v49 = vand.u32 2147483647, %v3181_v19 }
0x1043   : > { %v3235_v28 = vsub.f32 1.0, %v3234_v48  ;;  %4257 = vrcp.f32 %v3184_v0  ;;  %v3229_v9 = vand.u32 2147483648, %v3184_v0  ;;  %v3227_v46 = vand.u32 2147483647, %v3184_v0 }
0x1044   : > { %4259 = vrcp.f32 %v5775_v16  ;;  %vm3223_vm2 = vweird.f32 %v3184_v0  ;;  %v3215_v57 = vor.u32 1.1754944e-38, %v3214_v24  ;;  %vm3213_vm1 = vcmp.eq.f32.partialorder %v3212_v49, 8.507059e+37 }
0x1045   : > { %v3236_v33 = vmul.f32 %v4254_v23, %v3235_v28  ;;  %v3230_v56 = vor.u32 1.1754944e-38, %v3229_v9  ;;  %vm3228_vm5 = vcmp.eq.f32.partialorder %v3227_v46, 8.507059e+37  ;;  %v3260_v49 = vor.u32 1.1754944e-38, %v3259_v20 }
0x1047   : > { %v3237_v17 = vadd.f32 %v4254_v23, %v3236_v33 }
0x1048   : > { %v4256_v2 = vpop.eup %4255 }
0x1049   : > { %v4258_v4 = vpop.eup %4257  ;;  %v3241_v32 = vsel %vm3240_vm9, %v4254_v23, %v3237_v17  ;;  %v3204_v39 = vmul.f32 %v4256_v2, %v3181_v19  ;;  %v5778_v41 = vpop.xlane.xlu2 %3201  ;;  %vm3209_vm13 = vweird.f32 %v4256_v2 }
0x104a   : > { %v3219_v37 = vmul.f32 %v4258_v4, %v3184_v0  ;;  %v3199_v21 = vpop.xlane.xlu0 %3198  ;;  %v3246_v61 = vsel %vm3243_vm12, %v3245_v36, %v3241_v32  ;;  %v5780_v60 = vpop.eup %4259  ;;  %vm3224_vm14 = vweird.f32 %v4258_v4  ;;  %vm5783_vm4 = vmor %vm3208_vm3, %vm3209_vm13 }
0x104b   : > { %v3205_v34 = vsub.f32 1.0, %v3204_v39  ;;  %4261 = vrcp.f32 %v3199_v21  ;;  %v3247_v42 = vmul.f32 %v5731_v18, %v3246_v61  ;;  %v3249_v43 = vmul.f32 %v5780_v60, %v5775_v16  ;;  %vm3225_vm15 = vmor %vm3223_vm2, %vm3224_vm14 }
0x104c   : > { %v3220_v51 = vsub.f32 1.0, %v3219_v37  ;;  %4263 = vrcp.f32 %v5778_v41  ;;  %v3302_v3 = vand.u32 2147483647, %v3199_v21  ;;  %v3304_v40 = vand.u32 2147483648, %v3199_v21 }
0x104d   : > { %v3206_v5 = vmul.f32 %v4256_v2, %v3205_v34  ;;  %3932 = vmatmul.msk.f32.vlgmr.msra.gmra.mxu0 %vm1599_vm11, %v3247_v42  ;;  %v3250_v47 = vsub.f32 1.0, %v3249_v43  ;;  %vm3298_vm7 = vweird.f32 %v3199_v21  ;;  %vm3254_vm12 = vweird.f32 %v5780_v60 }
0x104e   : > { %v3221_v11 = vmul.f32 %v4258_v4, %v3220_v51  ;;  %v3305_v54 = vor.u32 1.1754944e-38, %v3304_v40  ;;  %vm3303_vm9 = vcmp.eq.f32.partialorder %v3302_v3, 8.507059e+37 }
0x104f   : > { %v3207_v8 = vadd.f32 %v4256_v2, %v3206_v5 }
0x1050   : > { %v3222_v52 = vadd.f32 %v4258_v4, %v3221_v11 }
0x1051   : > { %v3211_v29 = vsel %vm5783_vm4, %v4256_v2, %v3207_v8  ;;  %v5792_v18 = vpop.xlane.xlu2 %3192  ;;  %v4262_v10 = vpop.eup %4261  ;;  %vm3253_vm4 = vweird.f32 %v5775_v16 }
0x1052   : > { %v3226_v30 = vsel %vm3225_vm15, %v4258_v4, %v3222_v52  ;;  %v5795_v38 = vpop.xlane.xlu1 %3195  ;;  %v3294_v50 = vmul.f32 %v4262_v10, %v3199_v21  ;;  %4265 = vrcp.f32 %v5792_v18  ;;  %v3216_v63 = vsel %vm3213_vm1, %v3215_v57, %v3211_v29  ;;  %v5801_v22 = vpop.eup %4263  ;;  %vm5825_vm15 = vmor %vm3253_vm4, %vm3254_vm12 }
0x1053   : > { %v3231_v25 = vsel %vm3228_vm5, %v3230_v56, %v3226_v30  ;;  %4267 = vrcp.f32 %v5795_v38  ;;  %vm3299_vm6 = vweird.f32 %v4262_v10  ;;  %v3217_v12 = vmul.f32 %v5739_v58, %v3216_v63  ;;  %v3565_v63 = vld [vmem:[#allocation11 + $0x70] sm:$0xff] }
0x1054   : > { %v3295_v44 = vsub.f32 1.0, %v3294_v50  ;;  %v3232_v35 = vmul.f32 %v5741_v59, %v3231_v25  ;;  %vm3300_vm8 = vmor %vm3298_vm7, %vm3299_vm6  ;;  %v3251_v58 = vmul.f32 %v5780_v60, %v3250_v47  ;;  %v3309_v59 = vmul.f32 %v5801_v22, %v5778_v41  ;;  %v3563_v25 = vld [vmem:[#allocation11 + $0x60] sm:$0xff] }
0x1055   : > { %3928 = vmatmul.msk.f32.vlgmr.msra.gmra.mxu2 %vm1599_vm11, %v3217_v12  ;;  %v3274_v31 = vand.u32 2147483648, %v5792_v18  ;;  %v3272_v4 = vand.u32 2147483647, %v5792_v18  ;;  %vm3268_vm14 = vweird.f32 %v5792_v18  ;;  %v3289_v37 = vand.u32 2147483648, %v5795_v38 }
0x1056   : > { %v3296_v27 = vmul.f32 %v4262_v10, %v3295_v44  ;;  %3930 = vmatmul.msk.f32.vlgmr.msra.gmra.mxu3 %vm1599_vm11, %v3232_v35  ;;  %v3252_v36 = vadd.f32 %v5780_v60, %v3251_v58  ;;  %v3310_v39 = vsub.f32 1.0, %v3309_v59  ;;  %v3287_v34 = vand.u32 2147483647, %v5795_v38 }
0x1057   : > { %v3275_v51 = vor.u32 1.1754944e-38, %v3274_v31  ;;  %vm3273_vm1 = vcmp.eq.f32.partialorder %v3272_v4, 8.507059e+37  ;;  %vm3283_vm5 = vweird.f32 %v5795_v38  ;;  %v3290_v8 = vor.u32 1.1754944e-38, %v3289_v37 }
0x1058   : > { %v4266_v1 = vpop.eup %4265  ;;  %v3297_v14 = vadd.f32 %v4262_v10, %v3296_v27  ;;  %v3256_v9 = vsel %vm5825_vm15, %v5780_v60, %v3252_v36  ;;  %v3311_v42 = vmul.f32 %v5801_v22, %v3310_v39  ;;  %vm3288_vm7 = vcmp.eq.f32.partialorder %v3287_v34, 8.507059e+37 }
0x1059   : > { %v3493_v13 = vpop.permute.xlu2 %3492  ;;  %v3264_v23 = vmul.f32 %v4266_v1, %v5792_v18  ;;  %v4268_v48 = vpop.eup %4267  ;;  %vm3269_vm13 = vweird.f32 %v4266_v1  ;;  %v3319_v60 = vand.u32 2147483648, %v5778_v41  ;;  %vm3313_vm12 = vweird.f32 %v5778_v41 }
0x105a   : > { %3939 = vmatpush.msk.msrb.mxu0 %vm1798_vm10, %v3493_v13  ;;  %v3301_v19 = vsel %vm3300_vm8, %v4262_v10, %v3297_v14  ;;  %v3279_v33 = vmul.f32 %v4268_v48, %v5795_v38  ;;  %vm3284_vm3 = vweird.f32 %v4268_v48  ;;  %vm3270_vm2 = vmor %vm3268_vm14, %vm3269_vm13  ;;  %v3312_v18 = vadd.f32 %v5801_v22, %v3311_v42 }
0x105b   : > { %v3306_v0 = vsel %vm3303_vm9, %v3305_v54, %v3301_v19  ;;  %v3265_v28 = vsub.f32 1.0, %v3264_v23  ;;  %vm3285_vm6 = vmor %vm3283_vm5, %vm3284_vm3  ;;  %vm3314_vm9 = vweird.f32 %v5801_v22  ;;  %v3317_v10 = vand.u32 2147483647, %v5778_v41  ;;  %v3566_v41 = vld [vmem:[#allocation11 + $0x78] sm:$0xff] }
0x105c   : > { %v3307_v17 = vmul.f32 %v5747_v6, %v3306_v0  ;;  %v3280_v32 = vsub.f32 1.0, %v3279_v33  ;;  %v3257_v6 = vand.u32 2147483647, %v5775_v16  ;;  %vm3315_vm13 = vmor %vm3313_vm12, %vm3314_vm9  ;;  %v3320_v56 = vor.u32 1.1754944e-38, %v3319_v60  ;;  %3587 = vmatpush.msra.mxu2 %v3566_v41 }
0x105d   : > { %v3266_v2 = vmul.f32 %v4266_v1, %v3265_v28  ;;  %v3521_v30 = vpop.permute.xlu0 %3520  ;;  %vm3318_vm14 = vcmp.eq.f32.partialorder %v3317_v10, 8.507059e+37 }
0x105e   : > { %3940 = vmatmul.msk.f32.vlgmr.msrb.gmra.mxu0 %vm1599_vm11, %v3307_v17  ;;  %v3281_v61 = vmul.f32 %v4268_v48, %v3280_v32  ;;  %vm3258_vm8 = vcmp.eq.f32.partialorder %v3257_v6, 8.507059e+37  ;;  %3588 = vmatpush.msra.mxu2 %v3565_v63  ;;  %v4130_v17 = vld [vmem:[%s5909_s6 + $0x3] ss:$0 sm:$0xff] }
0x105f   : > { %v3267_v21 = vadd.f32 %v4266_v1, %v3266_v2  ;;  %v3261_v43 = vsel %vm3258_vm8, %v3260_v49, %v3256_v9 }
0x1060   : > { %v3282_v11 = vadd.f32 %v4268_v48, %v3281_v61  ;;  %v3262_v57 = vmul.f32 %v5733_v26, %v3261_v43  ;;  %v3564_v26 = vld [vmem:[#allocation11 + $0x68] sm:$0xff] }
0x1061   : > { %v3271_v24 = vsel %vm3270_vm2, %v4266_v1, %v3267_v21  ;;  %3589 = vmatpush.msra.mxu2 %v3564_v26 }
0x1062   : > { %v3276_v16 = vsel %vm3273_vm1, %v3275_v51, %v3271_v24  ;;  %v3286_v46 = vsel %vm3285_vm6, %v4268_v48, %v3282_v11 }
0x1063   : > { %v3277_v15 = vmul.f32 %v5756_v7, %v3276_v16  ;;  %v3291_v52 = vsel %vm3288_vm7, %v3290_v8, %v3286_v46  ;;  %3590 = vmatpush.msra.mxu2 %v3563_v25  ;;  %v4131_v8 = vld [vmem:[#allocation13 + $0x3] ss:$0 sm:$0xff]  ;;  %v4132_v46 = vld [vmem:[#allocation14 + $0x3] ss:$0 sm:$0xff] }
0x1064   : > { %v3292_v29 = vmul.f32 %v5759_v45, %v3291_v52  ;;  %v3316_v45 = vsel %vm3315_vm13, %v5801_v22, %v3312_v18 }
0x1065   : > { %3936 = vmatmul.msk.f32.vlgmr.msrb.gmra.mxu2 %vm1599_vm11, %v3277_v15  ;;  %v3321_v38 = vsel %vm3318_vm14, %v3320_v56, %v3316_v45 }
0x1066   : > { %3938 = vmatmul.msk.f32.vlgmr.msrb.gmra.mxu3 %vm1599_vm11, %v3292_v29  ;;  %v3322_v50 = vmul.f32 %v5749_v53, %v3321_v38 }
0x1069   : > { %v3409_v7 = vpop.permute.xlu1 %3408 }
0x106a   : > { %3933 = vmatpush.msk.msrb.mxu1 %vm1798_vm10, %v3409_v7 }
0x106b   : > { %3934 = vmatmul.msk.f32.vlgmr.msrb.gmra.mxu1 %vm1599_vm11, %v3262_v57 }
0x106c   : > { %3941 = vmatpush.msk.msra.mxu1 %vm1798_vm10, %v3521_v30 }
0x1073   : > { %3942 = vmatmul.msk.f32.vlgmr.msra.gmra.mxu1 %vm1599_vm11, %v3322_v50 }
0x10ca   : > { %v3404_v27 = vpop.f32.mrf.mxu0 }
0x10cb   : > { %v3550_v53 = vsel %vm506_vm0, %v3404_v27, 0.0 }
0x10d8   : > { %v3348_v44 = vpop.f32.mrf.mxu2 }
0x10d9   : > { %v3376_v47 = vpop.f32.mrf.mxu3  ;;  %v3547_v3 = vsel %vm506_vm0, %v3348_v44, 0.0 }
0x10da   : > { %v3548_v40 = vsel %vm506_vm0, %v3376_v47, 0.0 }
0x10db   : > { %v3549_v12 = vadd.f32 %v3548_v40, %v3547_v3  ;;  %v3516_v48 = vpop.f32.mrf.mxu0 }
0x10dc   : > { %v3558_v0 = vsel %vm506_vm0, %v3516_v48, 0.0 }
0x10dd   : > { %v3551_v22 = vadd.f32 %v3550_v53, %v3549_v12 }
0x10e8   : > { %v3432_v35 = vpop.f32.mrf.mxu1  ;;  %v3460_v14 = vpop.f32.mrf.mxu2 }
0x10e9   : > { %v3552_v1 = vsel %vm506_vm0, %v3432_v35, 0.0  ;;  %v3554_v54 = vsel %vm506_vm0, %v3460_v14, 0.0  ;;  %v3488_v23 = vpop.f32.mrf.mxu3 }
0x10ea   : > { %v3553_v13 = vadd.f32 %v3552_v1, %v3551_v22  ;;  %v3556_v59 = vsel %vm506_vm0, %v3488_v23, 0.0 }
0x10ec   : > { %v3555_v58 = vadd.f32 %v3554_v54, %v3553_v13 }
0x10ee   : > { %v3557_v19 = vadd.f32 %v3556_v59, %v3555_v58 }
0x10f0   : > { %v3544_v28 = vpop.f32.mrf.mxu1  ;;  %v3559_v33 = vadd.f32 %v3558_v0, %v3557_v19 }
0x10f1   : > { %v3560_v20 = vsel %vm506_vm0, %v3544_v28, 0.0 }
0x10f2   : > { %v3561_v31 = vadd.f32 %v3560_v20, %v3559_v33 }
0x10f4   : > { %3944 = vmatmul.msk.f32.vlgmr.msra.gmra.mxu2 %vm506_vm0, %v3561_v31 }
0x1177   : > { %v3592_v2 = vpop.f32.mrf.mxu2 }
0x1178   : > { %v3593_v4 = vadd.f32 %v4130_v17, %v3592_v2 }
0x117a   : > { %v3595_v32 = vadd.f32 %v3593_v4, %v5698_v62 }
0x117c   : > { %v3596_v36 = vsel %vm506_vm0, %v3595_v32, 0.0 }
0x117d   : > { %3597 = vadd.xlane.f32.xlu1 %v3596_v36 }
0x11f0   : > { %v3598_v39 = vpop.xlane.xlu1 %3597 }
0x11f1   : > { %v3599_v37 = vmul.f32 %v3598_v39, %v5172_v55 }
0x11f3   : > { %v3600_v21 = vsub.f32 %v3595_v32, %v3599_v37 }
0x11f5   : > { %v3601_v61 = vmul.f32 %v3600_v21, %v3600_v21 }
0x11f7   : > { %v3602_v34 = vsel %vm506_vm0, %v3601_v61, 0.0 }
0x11f8   : > { %3603 = vadd.xlane.f32.xlu2 %v3602_v34 }
0x126b   : > { %v3604_v6 = vpop.xlane.xlu2 %3603 }
0x126c   : > { %v3605_v51 = vmul.f32 %v3604_v6, %v5172_v55 }
0x126e   : > { %v3606_v5 = vadd.f32 1e-05, %v3605_v51 }
0x1270   : > { %4269 = vrsqrt.f32 %v3606_v5  ;;  %vm3613_vm11 = vweird.f32 %v3606_v5 }
0x1276   : > { %v4270_v24 = vpop.eup %4269 }
0x1277   : > { %v3608_v62 = vmul.f32 %v4270_v24, %v3606_v5  ;;  %vm3614_vm10 = vweird.f32 %v4270_v24 }
0x1278   : > { %vm3615_vm3 = vmor %vm3613_vm11, %vm3614_vm10 }
0x1279   : > { %v3609_v11 = vmul.f32 %v4270_v24, %v3608_v62 }
0x127b   : > { %v3610_v9 = vmul.f32 0.5, %v3609_v11 }
0x127d   : > { %v3611_v42 = vsub.f32 1.5, %v3610_v9 }
0x127f   : > { %v3612_v16 = vmul.f32 %v4270_v24, %v3611_v42 }
0x1281   : > { %v3616_v55 = vsel %vm3615_vm3, %v4270_v24, %v3612_v16 }
0x1282   : > { %v3617_v49 = vmul.f32 %v3616_v55, %v3600_v21 }
0x1284   : > { %v3623_v15 = vmul.f32 %v4131_v8, %v3617_v49 }
0x1286   : > { %v3629_v52 = vadd.f32 %v4132_v46, %v3623_v15 }
0x1288   : > { %3630 = vst.msk [vmem:[%s487_s17] sm:$0xff] %vm506_vm0, %v3629_v52 }
0x1289   : > { %4539 = shalt.err (!%p4536_p8)
}
0x128a   : > { %3977 = dma.vmem_to_hbm [thread:$0]  (%p4775_p4), %s3645_s15, 128, %s3647_s18, %s3632_s16  }
0x128b PF: > { %s3658_s4 = sand.u32 1, %s4586_s30   ;;  %p5971_p10 = scmp.ge.s32.totalorder %s4598_s12, 2 }
0x128c   : > { %s3659_s28 = scalar_lea.sflag [#allocation4], %s3658_s4 }
0x128d   : > { %p4006_p13 = pnand %p5971_p10, %p4779_p6 }
0x128f   : > { %p4007_p11 = pneg %p4006_p13 }
0x1291   : > { %4581 = dma.done.wait (%p4007_p11), %s3659_s28, 128  }
0x1292   : > { %4583 = vsyncadd (%p4007_p11), %s3659_s28, 4294967168  ;;  %s5972_s5 = sld [smem:[#allocation24_spill]]  ;;  %p28_p0 = scmp.ge.s32.totalorder %s4747_s24, 4  }
0x1293   : > { %s5973_s11 = sld [smem:[#allocation25_spill]]  ;;  %s5974_s30 = smov %s4590_s10 }
0x1294   : > { %s5976_s12 = smov %s4747_s24  ;;  %30 = sbr.rel (!%p28_p0) target bundleno = 17 (0x11), region = 156 }
0x1298   : > { %s5975_s10 = smov %s5972_s5 }
0x1299   :  { %3665 = vsyncpa [#allocation3], 1 }
0x129a   :  { %3667 = vsyncpa [#allocation3 + $0x1], 1 }
0x129b   :  { %3668 = vsyncpa [#allocation6], 1 }
0x129c   :  { %3670 = vsyncpa [#allocation6 + $0x1], 1 }
0x129d   :  { %3671 = vsyncpa [#allocation9], 1 }
0x129e   :  { %3672 = vsyncpa [#allocation12], 1 }
0x129f   :  { %3673 = vsyncpa [#allocation15], 1 }
0x12a0   :  { %3674 = vsyncpa [#allocation4], 1 }
0x12a1   :  { %3676 = vsyncpa [#allocation4 + $0x1], 1 }

</bundles_post_ra>
